<compile_context>
chip_gen: v6e
topology: v6e:2x2x1
jax: 0.10.0
libtpu: 0.0.40
codegen_flags: <defaults>
</compile_context>

<pallas_src>
import jax
import jax.numpy as jnp
from jax.experimental import pallas as pl
from jax.experimental.pallas import tpu as pltpu

N_JOINTS = 24
FEAT_DIM = 128
OUT_CH = N_JOINTS * 4          # 96 real conv output channels
GROUPS = 4                     # [vote-logit, x, y, z] column groups
PTS_LANES = 8                  # xyz zero-padded to 8 lanes
OUT_LANES = 128                # conv columns padded 96 -> 128 for unmasked stores
XYZ_LANES = 3 * N_JOINTS       # 72 useful output lanes


def voting_kernel(pts_ref, we_ref, be_ref, wc_ref, bc_ref, out_ref):
    """Processes G frames per step: pts_ref (G*N, 8) -> out_ref (1, G, 128)."""
    g_frames = out_ref.shape[1]
    n_pts = pts_ref.shape[0] // g_frames

    # TODO(synk): P4TransformerVoter has no provided definition; stand-in is a
    # deterministic per-point linear + ReLU embedding (3 -> 128), run on the
    # MXU as a skinny K=8 matmul (pts and we are zero-padded to 8).
    feat = jnp.dot(pts_ref[...], we_ref[...],
                   preferred_element_type=jnp.float32) + be_ref[...]
    feat = jnp.maximum(feat, 0.0)                                   # (G*N, 128)

    # Single fused 1x1-conv matmul; columns = [logit(24)|x(24)|y(24)|z(24)|0(32)].
    y = jnp.dot(feat, wc_ref[...],
                preferred_element_type=jnp.float32) + bc_ref[...]   # (G*N, 128)
    y = y.reshape(g_frames, n_pts, OUT_LANES)                       # (G, N, 128)

    # Per-frame softmax over the N points (vote weights), with 1/N folded in.
    logits = y[:, :, :N_JOINTS]                                     # (G, N, 24)
    m = jnp.max(logits, axis=1, keepdims=True)
    e = jnp.exp(logits - m)
    denom = jnp.sum(e, axis=1, keepdims=True) * float(n_pts)
    w = e * pl.reciprocal(denom, approx=True)                       # (G, N, 24)

    # Per-group weighted reductions over points; only the small (G, 24) results
    # are concatenated, then stored as one dense unmasked (G, 128) block.
    gx = jnp.sum(y[:, :, N_JOINTS:2 * N_JOINTS] * w, axis=1)        # (G, 24)
    gy = jnp.sum(y[:, :, 2 * N_JOINTS:3 * N_JOINTS] * w, axis=1)    # (G, 24)
    gz = jnp.sum(y[:, :, 3 * N_JOINTS:4 * N_JOINTS] * w, axis=1)    # (G, 24)
    pad = jnp.zeros((g_frames, OUT_LANES - XYZ_LANES), jnp.float32)
    out_ref[0] = jnp.concatenate([gx, gy, gz, pad], axis=-1)        # (G, 128)


def prepare_voting_params(we, be, conv_w, conv_b):
    """Pre-fuse / pre-permute / pre-pad weights once, outside the per-call path.

    Conv2d(128, 96, k=1) weight is (96, 128); after the PyTorch permute+reshape,
    conv channel k maps to joint k // 4 and slot k % 4 (slot 3 = vote logit).
    Fused matrix columns are [logit | x | y | z | zero-pad], 24+24+24+24+32.
    The embedding weight is zero-padded to (8, 128) for the K=8 MXU matmul.
    """
    we_pad = jnp.zeros((PTS_LANES, FEAT_DIM), we.dtype).at[:3, :].set(we)
    be_row = be[None, :]
    w_all = jnp.concatenate(
        [conv_w[3::4].T, conv_w[0::4].T, conv_w[1::4].T, conv_w[2::4].T,
         jnp.zeros((FEAT_DIM, OUT_LANES - GROUPS * N_JOINTS), conv_w.dtype)],
        axis=1)
    b_all = jnp.concatenate(
        [conv_b[3::4], conv_b[0::4], conv_b[1::4], conv_b[2::4],
         jnp.zeros((OUT_LANES - GROUPS * N_JOINTS,), conv_b.dtype)])[None, :]
    # shapes: (8, 128), (1, 128), (128, 128), (1, 128)
    return we_pad, be_row, w_all, b_all


def _num_grid_steps_hint():
    """>=2 steps only on dual-TensorCore chips (v7x); 1 fat step elsewhere."""
    try:
        kind = jax.devices()[0].device_kind.lower()
    except Exception:  # pragma: no cover - e.g. interpret mode
        return 1
    return 2 if ("v7" in kind or "7x" in kind) else 1


def _pick_frames_per_step(n_frames, n_points, target_rows=2048, min_steps=1):
    """Largest divisor G of n_frames with G*N <= target_rows, >= min_steps grid
    steps, and a Mosaic-legal (G*N, lanes) block (G*N % 8 == 0 or full extent)."""
    best = None
    for g in range(1, n_frames + 1):
        if n_frames % g:
            continue
        if (n_frames // g) < min(min_steps, n_frames):
            continue
        if (g * n_points) % 8 and g != n_frames:
            continue                        # keep the (8, 128) block constraint
        if g * n_points > max(target_rows, n_points):
            continue
        if best is None or g > best:
            best = g
    if best is None:
        # Fallback: one full-extent step is always legal (e.g. N not a multiple
        # of 8), even if it sacrifices the multi-core min_steps preference.
        best = n_frames
    return best


@jax.jit
def voting_regressor(pts, we_pad, be_row, w_all, b_all):
    """pts: (B, T, N, 3) human points. Returns pred_full_joints: (B, T, 24, 3)."""
    B, T, N, C = pts.shape
    F = B * T
    G = _pick_frames_per_step(F, N, target_rows=2048,
                              min_steps=_num_grid_steps_hint())

    # Zero-pad xyz to 8 lanes so the per-step block spans the full last dim
    # (single contiguous DMA) and feeds the K=8 embedding matmul directly.
    pts_pad = jnp.concatenate(
        [pts, jnp.zeros((B, T, N, PTS_LANES - C), pts.dtype)], axis=-1)
    pts_flat = pts_pad.reshape(F * N, PTS_LANES)

    n_rows = F * N
    cost = pl.CostEstimate(
        flops=2 * n_rows * FEAT_DIM * (PTS_LANES + OUT_LANES)
        + 8 * n_rows * N_JOINTS,
        transcendentals=n_rows * N_JOINTS,
        bytes_accessed=4 * (n_rows * PTS_LANES + F * OUT_LANES
                            + PTS_LANES * FEAT_DIM + FEAT_DIM
                            + FEAT_DIM * OUT_LANES + OUT_LANES),
    )

    out = pl.pallas_call(
        voting_kernel,
        out_shape=jax.ShapeDtypeStruct((F // G, G, OUT_LANES), jnp.float32),
        grid_spec=pltpu.PrefetchScalarGridSpec(
            num_scalar_prefetch=0,
            grid=(F // G,),
            in_specs=[
                pl.BlockSpec((G * N, PTS_LANES), lambda i: (i, 0)),
                pl.BlockSpec((PTS_LANES, FEAT_DIM), lambda i: (0, 0)),
                pl.BlockSpec((1, FEAT_DIM), lambda i: (0, 0)),
                pl.BlockSpec((FEAT_DIM, OUT_LANES), lambda i: (0, 0)),
                pl.BlockSpec((1, OUT_LANES), lambda i: (0, 0)),
            ],
            out_specs=pl.BlockSpec((1, G, OUT_LANES), lambda i: (i, 0, 0)),
        ),
        compiler_params=pltpu.CompilerParams(dimension_semantics=("parallel",)),
        cost_estimate=cost,
    )(pts_flat, we_pad, be_row, w_all, b_all)

    # (F//G, G, 128) -> (B, T, 128); keep [x|y|z] lanes -> (B, T, 24, 3).
    out = out.reshape(B, T, OUT_LANES)[..., :XYZ_LANES]
    out = out.reshape(B, T, 3, N_JOINTS)
    return jnp.swapaxes(out, -1, -2)


def reference(pts, we, be, conv_w, conv_b):
    """Pure-JAX reference mirroring the PyTorch forward (train_step='first')."""
    B, T, N, _ = pts.shape
    feat = jnp.maximum(pts @ we + be, 0.0)              # voter stub, (B,T,N,128)
    y = feat @ conv_w.T + conv_b                        # 1x1 conv, (B,T,N,96)
    y = y.reshape(B, T, N, N_JOINTS, 4)
    sm = jax.nn.softmax(y[..., 3:], axis=2)             # softmax over N points
    return jnp.mean(y[..., :3] * sm, axis=2)            # (B,T,24,3)


if __name__ == "__main__":
    key = jax.random.PRNGKey(0)
    k1, k2, k3, k4, k5 = jax.random.split(key, 5)
    B, T, N = 2, 4, 64
    pts = jax.random.normal(k1, (B, T, N, 3), dtype=jnp.float32)

    # Deterministic parameter init (synthetic weights, no checkpoint).
    we = jax.random.normal(k2, (3, FEAT_DIM), dtype=jnp.float32) * 0.5
    be = jax.random.normal(k3, (FEAT_DIM,), dtype=jnp.float32) * 0.1
    conv_w = jax.random.normal(k4, (OUT_CH, FEAT_DIM), dtype=jnp.float32) * (FEAT_DIM ** -0.5)
    conv_b = jax.random.normal(k5, (OUT_CH,), dtype=jnp.float32) * 0.1

    params = prepare_voting_params(we, be, conv_w, conv_b)  # fused once, reused per call
    pred_full_joints = jax.block_until_ready(voting_regressor(pts, *params))
    ref = reference(pts, we, be, conv_w, conv_b)

    assert pred_full_joints.shape == (B, T, N_JOINTS, 3)
    # Tolerance covers the approx EUP reciprocal used for the softmax denominator.
    assert jnp.allclose(pred_full_joints, ref, atol=1e-3, rtol=1e-3)
    print("KERNEL_OK")
</pallas_src>

<mosaic_0001>
module attributes {stable_mosaic.version = 11 : i64} {
  func.func @voting_kernel(%arg0: i32, %arg1: memref<512x8xf32, #tpu.memory_space<vmem>>, %arg2: memref<8x128xf32, #tpu.memory_space<vmem>>, %arg3: memref<1x128xf32, #tpu.memory_space<vmem>>, %arg4: memref<128x128xf32, #tpu.memory_space<vmem>>, %arg5: memref<1x128xf32, #tpu.memory_space<vmem>>, %arg6: memref<1x8x128xf32, #tpu.memory_space<vmem>>) attributes {dimension_semantics = [#tpu.dimension_semantics<parallel>], iteration_bounds = array<i64: 1>, scalar_prefetch = 0 : i64, scratch_operands = 0 : i64, tpu.core_type = #tpu.core_type<tc>, window_params = [{transform_indices = @transform_0, window_bounds = array<i64: 512, 8>}, {pipeline_mode = #tpu.pipeline_mode<synchronous>, transform_indices = @transform_1, window_bounds = array<i64: 8, 128>}, {pipeline_mode = #tpu.pipeline_mode<synchronous>, transform_indices = @transform_2, window_bounds = array<i64: 1, 128>}, {pipeline_mode = #tpu.pipeline_mode<synchronous>, transform_indices = @transform_3, window_bounds = array<i64: 128, 128>}, {pipeline_mode = #tpu.pipeline_mode<synchronous>, transform_indices = @transform_4, window_bounds = array<i64: 1, 128>}, {transform_indices = @transform_5, window_bounds = array<i64: 1, 8, 128>}]} {
    %c0 = arith.constant 0 : index
    %c0_0 = arith.constant 0 : index
    %0 = vector.load %arg1[%c0, %c0_0] : memref<512x8xf32, #tpu.memory_space<vmem>>, vector<512x8xf32>
    %c0_1 = arith.constant 0 : index
    %c0_2 = arith.constant 0 : index
    %1 = vector.load %arg2[%c0_1, %c0_2] : memref<8x128xf32, #tpu.memory_space<vmem>>, vector<8x128xf32>
    %cst = arith.constant dense<0.000000e+00> : vector<512x128xf32>
    %2 = tpu.matmul %0, %1, %cst {dimension_numbers = #tpu.dot_dimension_numbers<[1], [0], [0], [1], [0, 0, 1, 1], [], []>} : vector<512x8xf32>, vector<8x128xf32>, vector<512x128xf32> -> vector<512x128xf32>
    %c0_3 = arith.constant 0 : index
    %c0_4 = arith.constant 0 : index
    %3 = vector.load %arg3[%c0_3, %c0_4] : memref<1x128xf32, #tpu.memory_space<vmem>>, vector<1x128xf32>
    %4 = vector.broadcast %3 : vector<1x128xf32> to vector<512x128xf32>
    %5 = arith.addf %2, %4 : vector<512x128xf32>
    %cst_5 = arith.constant 0.000000e+00 : f32
    %6 = vector.broadcast %cst_5 : f32 to vector<512x128xf32>
    %7 = arith.maximumf %5, %6 : vector<512x128xf32>
    %c0_6 = arith.constant 0 : index
    %c0_7 = arith.constant 0 : index
    %8 = vector.load %arg4[%c0_6, %c0_7] : memref<128x128xf32, #tpu.memory_space<vmem>>, vector<128x128xf32>
    %cst_8 = arith.constant dense<0.000000e+00> : vector<512x128xf32>
    %9 = tpu.matmul %7, %8, %cst_8 {dimension_numbers = #tpu.dot_dimension_numbers<[1], [0], [0], [1], [0, 0, 1, 1], [], []>} : vector<512x128xf32>, vector<128x128xf32>, vector<512x128xf32> -> vector<512x128xf32>
    %c0_9 = arith.constant 0 : index
    %c0_10 = arith.constant 0 : index
    %10 = vector.load %arg5[%c0_9, %c0_10] : memref<1x128xf32, #tpu.memory_space<vmem>>, vector<1x128xf32>
    %11 = vector.broadcast %10 : vector<1x128xf32> to vector<512x128xf32>
    %12 = arith.addf %9, %11 : vector<512x128xf32>
    %13 = vector.shape_cast %12 : vector<512x128xf32> to vector<8x64x128xf32>
    %14 = vector.extract_strided_slice %13 {offsets = [0, 0, 0], sizes = [8, 64, 24], strides = [1, 1, 1]} : vector<8x64x128xf32> to vector<8x64x24xf32>
    %cst_11 = arith.constant dense<0xFF800000> : vector<8x24xf32>
    %15 = vector.multi_reduction <maximumf>, %14, %cst_11 [1] : vector<8x64x24xf32> to vector<8x24xf32>
    %16 = vector.shape_cast %15 : vector<8x24xf32> to vector<8x1x24xf32>
    %17 = vector.broadcast %16 : vector<8x1x24xf32> to vector<8x64x24xf32>
    %18 = arith.subf %14, %17 : vector<8x64x24xf32>
    %19 = math.exp %18 : vector<8x64x24xf32>
    %cst_12 = arith.constant dense<0.000000e+00> : vector<8x24xf32>
    %20 = vector.multi_reduction <add>, %19, %cst_12 [1] : vector<8x64x24xf32> to vector<8x24xf32>
    %21 = vector.shape_cast %20 : vector<8x24xf32> to vector<8x1x24xf32>
    %cst_13 = arith.constant 6.400000e+01 : f32
    %22 = vector.broadcast %cst_13 : f32 to vector<8x1x24xf32>
    %23 = arith.mulf %21, %22 : vector<8x1x24xf32>
    %24 = tpu.reciprocal %23 {approx = true} : vector<8x1x24xf32> -> vector<8x1x24xf32>
    %25 = vector.broadcast %24 : vector<8x1x24xf32> to vector<8x64x24xf32>
    %26 = arith.mulf %19, %25 : vector<8x64x24xf32>
    %27 = vector.extract_strided_slice %13 {offsets = [0, 0, 24], sizes = [8, 64, 24], strides = [1, 1, 1]} : vector<8x64x128xf32> to vector<8x64x24xf32>
    %28 = arith.mulf %27, %26 : vector<8x64x24xf32>
    %cst_14 = arith.constant dense<0.000000e+00> : vector<8x24xf32>
    %29 = vector.multi_reduction <add>, %28, %cst_14 [1] : vector<8x64x24xf32> to vector<8x24xf32>
    %30 = vector.extract_strided_slice %13 {offsets = [0, 0, 48], sizes = [8, 64, 24], strides = [1, 1, 1]} : vector<8x64x128xf32> to vector<8x64x24xf32>
    %31 = arith.mulf %30, %26 : vector<8x64x24xf32>
    %cst_15 = arith.constant dense<0.000000e+00> : vector<8x24xf32>
    %32 = vector.multi_reduction <add>, %31, %cst_15 [1] : vector<8x64x24xf32> to vector<8x24xf32>
    %33 = vector.extract_strided_slice %13 {offsets = [0, 0, 72], sizes = [8, 64, 24], strides = [1, 1, 1]} : vector<8x64x128xf32> to vector<8x64x24xf32>
    %34 = arith.mulf %33, %26 : vector<8x64x24xf32>
    %cst_16 = arith.constant dense<0.000000e+00> : vector<8x24xf32>
    %35 = vector.multi_reduction <add>, %34, %cst_16 [1] : vector<8x64x24xf32> to vector<8x24xf32>
    %cst_17 = arith.constant 0.000000e+00 : f32
    %36 = vector.broadcast %cst_17 : f32 to vector<8x56xf32>
    %37 = tpu.concatenate %29, %32, %35, %36 in 1 : vector<8x24xf32>, vector<8x24xf32>, vector<8x24xf32>, vector<8x56xf32> -> vector<8x128xf32>
    %c0_18 = arith.constant 0 : index
    %c0_19 = arith.constant 0 : index
    %c0_20 = arith.constant 0 : index
    %38 = vector.load %arg6[%c0_18, %c0_19, %c0_20] : memref<1x8x128xf32, #tpu.memory_space<vmem>>, vector<1x8x128xf32>
    %39 = vector.shape_cast %38 : vector<1x8x128xf32> to vector<8x128xf32>
    %40 = vector.shape_cast %37 : vector<8x128xf32> to vector<1x8x128xf32>
    tpu.vector_store %arg6[%c0_18, %c0_19, %c0_20], %40 {strides = array<i32>} : memref<1x8x128xf32, #tpu.memory_space<vmem>>, vector<1x8x128xf32>,
    return
  }
  func.func @transform_0(%arg0: i32) -> (i32, i32) {
    %c0_i32 = arith.constant 0 : i32
    %c0_i32_0 = arith.constant 0 : i32
    return %arg0, %c0_i32 : i32, i32
  }
  func.func @transform_1(%arg0: i32) -> (i32, i32) {
    %c0_i32 = arith.constant 0 : i32
    %c0_i32_0 = arith.constant 0 : i32
    %c0_i32_1 = arith.constant 0 : i32
    return %c0_i32, %c0_i32_0 : i32, i32
  }
  func.func @transform_2(%arg0: i32) -> (i32, i32) {
    %c0_i32 = arith.constant 0 : i32
    %c0_i32_0 = arith.constant 0 : i32
    %c0_i32_1 = arith.constant 0 : i32
    return %c0_i32, %c0_i32_0 : i32, i32
  }
  func.func @transform_3(%arg0: i32) -> (i32, i32) {
    %c0_i32 = arith.constant 0 : i32
    %c0_i32_0 = arith.constant 0 : i32
    %c0_i32_1 = arith.constant 0 : i32
    return %c0_i32, %c0_i32_0 : i32, i32
  }
  func.func @transform_4(%arg0: i32) -> (i32, i32) {
    %c0_i32 = arith.constant 0 : i32
    %c0_i32_0 = arith.constant 0 : i32
    %c0_i32_1 = arith.constant 0 : i32
    return %c0_i32, %c0_i32_0 : i32, i32
  }
  func.func @transform_5(%arg0: i32) -> (i32, i32, i32) {
    %c0_i32 = arith.constant 0 : i32
    %c0_i32_0 = arith.constant 0 : i32
    %c0_i32_1 = arith.constant 0 : i32
    return %arg0, %c0_i32, %c0_i32_0 : i32, i32, i32
  }
}

</mosaic_0001>

<bundles_post_ra>
// kernel: voting_regressor.1
= control target key start
LH: loop header
LB: loop body
LE: loop exit
PB: predicated region body
PF: predicated region fallthrough
CT: control target
= control target key end

     0   :  { %vm92_vm0 = vcmask 64512   ;;  %vm1142_vm1 = vcmask 195584   ;;  %s3780_s23 = smov 48   ;;  %s3781_s24 = smov 72   ;;  %vm2921_vm2 = vcmask 785984   ;;  %vm2071_vm3 = vcmask 392384   ;;  %s6374_s1 = inlined_call_operand.vmem [shape: f32[8,128], index: 1, kind: input, shape index: {}]   ;;  %s6375_s0 = inlined_call_operand.vmem [shape: f32[512,8], index: 0, kind: input, shape index: {}]   ;;  %s6376_s3 = inlined_call_operand.vmem [shape: f32[128,128], index: 3, kind: input, shape index: {}]   ;;  %s6377_s2 = inlined_call_operand.vmem [shape: f32[1,128], index: 2, kind: input, shape index: {}]   ;;  %s6378_s4 = inlined_call_operand.vmem [shape: f32[1,128], index: 4, kind: input, shape index: {}]   ;;  %s6379_s5 = inlined_call_operand.vmem [shape: f32[1,8,128], index: 5, kind: output, shape index: {}]  }
   0x1   :  { %v84_v0 = vld [vmem:[%s6374_s1] sm:$0xff]  ;;  %v21_v2 = vld [vmem:[%s6375_s0 + $0x8] sm:$0xff]  ;;  %v22_v3 = vld [vmem:[%s6375_s0 + $0x10] sm:$0xff]  ;;  %vm2496_vm4 = vcmask 589184   ;;  %vm3098_vm5 = vcmask 1041409   ;;  %vm3100_vm6 = vcmask 1042434  }
   0x2   :  { %v20_v1 = vld [vmem:[%s6375_s0] sm:$0xff]  ;;  %3372 = vmatprep.subr.mxu0 %v84_v0  ;;  %v23_v4 = vld [vmem:[%s6375_s0 + $0x18] sm:$0xff]  ;;  %v25_v6 = vld [vmem:[%s6375_s0 + $0x28] sm:$0xff]  ;;  %vm3102_vm7 = vcmask 1043459   ;;  %vm3104_vm8 = vcmask 1044484   ;;  %vm3106_vm9 = vcmask 1045509  }
   0x3   :  { %3374 = vmatprep.mubr.msk.f32.mxu0 %vm92_vm0, %v20_v1  ;;  %3373 = vmatpush3.msra.mxu0 %v84_v0  ;;  %v24_v5 = vld [vmem:[%s6375_s0 + $0x20] sm:$0xff]  ;;  %v26_v7 = vld [vmem:[%s6375_s0 + $0x30] sm:$0xff]  ;;  %v27_v8 = vld [vmem:[%s6375_s0 + $0x38] sm:$0xff]  ;;  %vm3108_vm10 = vcmask 1046534   ;;  %vm3110_vm11 = vcmask 1047559   ;;  %vm3152_vm12 = vcmask 392192  }
   0x4   :  { %3375 = vmatmul.mubr.msk.f32.vlgmr.msra.gmra.mxu0 %vm92_vm0, %v21_v2  ;;  %v749_v9 = vld [vmem:[%s6376_s3 + $0x78] sm:$0xff]  ;;  %v28_v10 = vld [vmem:[%s6375_s0 + $0x40] sm:$0xff]  ;;  %v748_v11 = vld [vmem:[%s6376_s3 + $0x70] sm:$0xff]  ;;  %vm3154_vm13 = vcmask 588800  }
   0x5   :  { %3377 = vmatprep.mubr.msk.f32.mxu0 %vm92_vm0, %v22_v3  ;;  %3470 = vmatprep.subr.mxu0 %v749_v9  ;;  %v29_v12 = vld [vmem:[%s6375_s0 + $0x48] sm:$0xff]  ;;  %v30_v14 = vld [vmem:[%s6375_s0 + $0x50] sm:$0xff]  ;;  %v746_v15 = vld [vmem:[%s6376_s3 + $0x60] sm:$0xff] }
   0x6   :  { %3598 = vmatprep.subr.mxu1 %v749_v9  ;;  %3471 = vmatpush3.msra.mxu0 %v749_v9  ;;  %v747_v13 = vld [vmem:[%s6376_s3 + $0x68] sm:$0xff]  ;;  %v745_v16 = vld [vmem:[%s6376_s3 + $0x58] sm:$0xff]  ;;  %v32_v18 = vld [vmem:[%s6375_s0 + $0x60] sm:$0xff] }
   0x7   :  { %3614 = vmatpush3.msra.mxu1 %v749_v9  ;;  %3472 = vmatprep.subr.mxu0 %v748_v11  ;;  %v31_v17 = vld [vmem:[%s6375_s0 + $0x58] sm:$0xff]  ;;  %v744_v19 = vld [vmem:[%s6376_s3 + $0x50] sm:$0xff]  ;;  %v743_v20 = vld [vmem:[%s6376_s3 + $0x48] sm:$0xff] }
   0x8   :  { %3378 = vmatmul.mubr.msk.f32.gmra.mxu0 %vm92_vm0, %v23_v4  ;;  %3599 = vmatprep.subr.mxu1 %v748_v11  ;;  %v33_v21 = vld [vmem:[%s6375_s0 + $0x68] sm:$0xff]  ;;  %v742_v22 = vld [vmem:[%s6376_s3 + $0x40] sm:$0xff]  ;;  %v34_v23 = vld [vmem:[%s6375_s0 + $0x70] sm:$0xff] }
   0x9   :  { %3380 = vmatprep.mubr.msk.f32.mxu0 %vm92_vm0, %v24_v5  ;;  %3473 = vmatpush3.msra.mxu0 %v748_v11  ;;  %v741_v24 = vld [vmem:[%s6376_s3 + $0x38] sm:$0xff]  ;;  %v740_v26 = vld [vmem:[%s6376_s3 + $0x30] sm:$0xff]  ;;  %v36_v27 = vld [vmem:[%s6375_s0 + $0x80] sm:$0xff] }
   0xa   :  { %3474 = vmatprep.subr.mxu0 %v747_v13  ;;  %3615 = vmatpush3.msra.mxu1 %v748_v11  ;;  %v35_v25 = vld [vmem:[%s6375_s0 + $0x78] sm:$0xff]  ;;  %v739_v28 = vld [vmem:[%s6376_s3 + $0x28] sm:$0xff]  ;;  %v738_v30 = vld [vmem:[%s6376_s3 + $0x20] sm:$0xff] }
   0xb   :  { %3475 = vmatpush3.msra.mxu0 %v747_v13  ;;  %3600 = vmatprep.subr.mxu1 %v747_v13  ;;  %v37_v29 = vld [vmem:[%s6375_s0 + $0x88] sm:$0xff]  ;;  %v38_v31 = vld [vmem:[%s6375_s0 + $0x90] sm:$0xff]  ;;  %v737_v32 = vld [vmem:[%s6376_s3 + $0x18] sm:$0xff] }
   0xc   :  { %3381 = vmatmul.mubr.msk.f32.gmra.mxu0 %vm92_vm0, %v25_v6  ;;  %3476 = vmatprep.subr.mxu0 %v746_v15  ;;  %v39_v33 = vld [vmem:[%s6375_s0 + $0x98] sm:$0xff]  ;;  %v736_v34 = vld [vmem:[%s6376_s3 + $0x10] sm:$0xff]  ;;  %v40_v35 = vld [vmem:[%s6375_s0 + $0xa0] sm:$0xff] }
   0xd   :  { %3383 = vmatprep.mubr.msk.f32.mxu0 %vm92_vm0, %v26_v7  ;;  %3477 = vmatpush3.msra.mxu0 %v746_v15  ;;  %v735_v36 = vld [vmem:[%s6376_s3 + $0x8] sm:$0xff]  ;;  %v734_v38 = vld [vmem:[%s6376_s3] sm:$0xff]  ;;  %v42_v39 = vld [vmem:[%s6375_s0 + $0xb0] sm:$0xff]  ;;  %s3779_s3 = smov 24  }
   0xe   :  { %3478 = vmatprep.subr.mxu0 %v745_v16  ;;  %3616 = vmatpush3.msra.mxu1 %v747_v13  ;;  %v41_v37 = vld [vmem:[%s6375_s0 + $0xa8] sm:$0xff]  ;;  %v43_v40 = vld [vmem:[%s6375_s0 + $0xb8] sm:$0xff]  ;;  %v44_v41 = vld [vmem:[%s6375_s0 + $0xc0] sm:$0xff] }
   0xf   :  { %3479 = vmatpush3.msra.mxu0 %v745_v16  ;;  %3601 = vmatprep.subr.mxu1 %v746_v15  ;;  %v45_v42 = vld [vmem:[%s6375_s0 + $0xc8] sm:$0xff]  ;;  %v46_v43 = vld [vmem:[%s6375_s0 + $0xd0] sm:$0xff]  ;;  %v47_v44 = vld [vmem:[%s6375_s0 + $0xd8] sm:$0xff] }
  0x10   :  { %3384 = vmatmul.mubr.msk.f32.gmra.mxu0 %vm92_vm0, %v27_v8  ;;  %3480 = vmatprep.subr.mxu0 %v744_v19  ;;  %v48_v45 = vld [vmem:[%s6375_s0 + $0xe0] sm:$0xff]  ;;  %v49_v46 = vld [vmem:[%s6375_s0 + $0xe8] sm:$0xff]  ;;  %v50_v47 = vld [vmem:[%s6375_s0 + $0xf0] sm:$0xff] }
  0x11   :  { %3386 = vmatprep.mubr.msk.f32.mxu0 %vm92_vm0, %v28_v10  ;;  %3481 = vmatpush3.msra.mxu0 %v744_v19  ;;  %v51_v48 = vld [vmem:[%s6375_s0 + $0xf8] sm:$0xff]  ;;  %v52_v49 = vld [vmem:[%s6375_s0 + $0x100] sm:$0xff]  ;;  %v53_v50 = vld [vmem:[%s6375_s0 + $0x108] sm:$0xff] }
  0x12   :  { %3482 = vmatprep.subr.mxu0 %v743_v20  ;;  %3617 = vmatpush3.msra.mxu1 %v746_v15  ;;  %v54_v51 = vld [vmem:[%s6375_s0 + $0x110] sm:$0xff]  ;;  %v55_v52 = vld [vmem:[%s6375_s0 + $0x118] sm:$0xff]  ;;  %v56_v53 = vld [vmem:[%s6375_s0 + $0x120] sm:$0xff] }
  0x13   :  { %3483 = vmatpush3.msra.mxu0 %v743_v20  ;;  %3602 = vmatprep.subr.mxu1 %v745_v16  ;;  %v57_v54 = vld [vmem:[%s6375_s0 + $0x128] sm:$0xff]  ;;  %v58_v55 = vld [vmem:[%s6375_s0 + $0x130] sm:$0xff]  ;;  %v59_v56 = vld [vmem:[%s6375_s0 + $0x138] sm:$0xff] }
  0x14   :  { %3387 = vmatmul.mubr.msk.f32.gmra.mxu0 %vm92_vm0, %v29_v12  ;;  %3484 = vmatprep.subr.mxu0 %v742_v22  ;;  %v60_v57 = vld [vmem:[%s6375_s0 + $0x140] sm:$0xff]  ;;  %v61_v58 = vld [vmem:[%s6375_s0 + $0x148] sm:$0xff]  ;;  %v62_v59 = vld [vmem:[%s6375_s0 + $0x150] sm:$0xff] }
  0x15   :  { %3389 = vmatprep.mubr.msk.f32.mxu0 %vm92_vm0, %v30_v14  ;;  %3485 = vmatpush3.msra.mxu0 %v742_v22  ;;  %v63_v60 = vld [vmem:[%s6375_s0 + $0x158] sm:$0xff]  ;;  %v64_v61 = vld [vmem:[%s6375_s0 + $0x160] sm:$0xff]  ;;  %v65_v62 = vld [vmem:[%s6375_s0 + $0x168] sm:$0xff] }
  0x16   :  { %3486 = vmatprep.subr.mxu0 %v741_v24  ;;  %3618 = vmatpush3.msra.mxu1 %v745_v16  ;;  %v66_v63 = vld [vmem:[%s6375_s0 + $0x170] sm:$0xff]  ;;  %v67_v0 = vld [vmem:[%s6375_s0 + $0x178] sm:$0xff]  ;;  %v68_v1 = vld [vmem:[%s6375_s0 + $0x180] sm:$0xff] }
  0x17   :  { %3487 = vmatpush3.msra.mxu0 %v741_v24  ;;  %3603 = vmatprep.subr.mxu1 %v744_v19  ;;  %v69_v2 = vld [vmem:[%s6375_s0 + $0x188] sm:$0xff]  ;;  %v70_v3 = vld [vmem:[%s6375_s0 + $0x190] sm:$0xff]  ;;  %v71_v4 = vld [vmem:[%s6375_s0 + $0x198] sm:$0xff] }
  0x18   :  { %3390 = vmatmul.mubr.msk.f32.gmra.mxu0 %vm92_vm0, %v31_v17  ;;  %3488 = vmatprep.subr.mxu0 %v740_v26  ;;  %v72_v5 = vld [vmem:[%s6375_s0 + $0x1a0] sm:$0xff]  ;;  %v73_v6 = vld [vmem:[%s6375_s0 + $0x1a8] sm:$0xff]  ;;  %v74_v7 = vld [vmem:[%s6375_s0 + $0x1b0] sm:$0xff] }
  0x19   :  { %3392 = vmatprep.mubr.msk.f32.mxu0 %vm92_vm0, %v32_v18  ;;  %3489 = vmatpush3.msra.mxu0 %v740_v26  ;;  %v75_v8 = vld [vmem:[%s6375_s0 + $0x1b8] sm:$0xff]  ;;  %v76_v9 = vld [vmem:[%s6375_s0 + $0x1c0] sm:$0xff]  ;;  %v77_v10 = vld [vmem:[%s6375_s0 + $0x1c8] sm:$0xff] }
  0x1a   :  { %3490 = vmatprep.subr.mxu0 %v739_v28  ;;  %3619 = vmatpush3.msra.mxu1 %v744_v19  ;;  %v78_v11 = vld [vmem:[%s6375_s0 + $0x1d0] sm:$0xff]  ;;  %v79_v12 = vld [vmem:[%s6375_s0 + $0x1d8] sm:$0xff]  ;;  %v80_v13 = vld [vmem:[%s6375_s0 + $0x1e0] sm:$0xff] }
  0x1b   :  { %3491 = vmatpush3.msra.mxu0 %v739_v28  ;;  %3604 = vmatprep.subr.mxu1 %v743_v20  ;;  %v81_v14 = vld [vmem:[%s6375_s0 + $0x1e8] sm:$0xff]  ;;  %v82_v15 = vld [vmem:[%s6375_s0 + $0x1f0] sm:$0xff]  ;;  %v83_v16 = vld [vmem:[%s6375_s0 + $0x1f8] sm:$0xff] }
  0x1c   :  { %3393 = vmatmul.mubr.msk.f32.gmra.mxu0 %vm92_vm0, %v33_v21  ;;  %3492 = vmatprep.subr.mxu0 %v738_v30  ;;  %v4123_v17 = vld [vmem:[%s6377_s2] ss:$0 sm:$0xff] }
  0x1d   :  { %3395 = vmatprep.mubr.msk.f32.mxu0 %vm92_vm0, %v34_v23  ;;  %3493 = vmatpush3.msra.mxu0 %v738_v30 }
  0x1e   :  { %3494 = vmatprep.subr.mxu0 %v737_v32  ;;  %3620 = vmatpush3.msra.mxu1 %v743_v20 }
  0x1f   :  { %3495 = vmatpush3.msra.mxu0 %v737_v32  ;;  %3605 = vmatprep.subr.mxu1 %v742_v22 }
  0x20   :  { %3396 = vmatmul.mubr.msk.f32.gmra.mxu0 %vm92_vm0, %v35_v25  ;;  %3496 = vmatprep.subr.mxu0 %v736_v34 }
  0x21   :  { %3398 = vmatprep.mubr.msk.f32.mxu0 %vm92_vm0, %v36_v27  ;;  %3497 = vmatpush3.msra.mxu0 %v736_v34 }
  0x22   :  { %3498 = vmatprep.subr.mxu0 %v735_v36  ;;  %3621 = vmatpush3.msra.mxu1 %v742_v22 }
  0x23   :  { %3499 = vmatpush3.msra.mxu0 %v735_v36  ;;  %3606 = vmatprep.subr.mxu1 %v741_v24 }
  0x24   :  { %3399 = vmatmul.mubr.msk.f32.gmra.mxu0 %vm92_vm0, %v37_v29  ;;  %3500 = vmatprep.subr.mxu0 %v734_v38 }
  0x25   :  { %3401 = vmatprep.mubr.msk.f32.mxu0 %vm92_vm0, %v38_v31  ;;  %3501 = vmatpush3.msra.mxu0 %v734_v38 }
  0x26   :  { %3622 = vmatpush3.msra.mxu1 %v741_v24 }
  0x27   :  { %3607 = vmatprep.subr.mxu1 %v740_v26 }
  0x28   :  { %3402 = vmatmul.mubr.msk.f32.gmra.mxu0 %vm92_vm0, %v39_v33  ;;  %3623 = vmatpush3.msra.mxu1 %v740_v26 }
  0x29   :  { %3404 = vmatprep.mubr.msk.f32.mxu0 %vm92_vm0, %v40_v35  ;;  %3608 = vmatprep.subr.mxu1 %v739_v28 }
  0x2a   :  { %3624 = vmatpush3.msra.mxu1 %v739_v28 }
  0x2b   :  { %3609 = vmatprep.subr.mxu1 %v738_v30 }
  0x2c   :  { %3405 = vmatmul.mubr.msk.f32.gmra.mxu0 %vm92_vm0, %v41_v37  ;;  %3625 = vmatpush3.msra.mxu1 %v738_v30 }
  0x2d   :  { %3407 = vmatprep.mubr.msk.f32.mxu0 %vm92_vm0, %v42_v39  ;;  %3610 = vmatprep.subr.mxu1 %v737_v32 }
  0x2e   :  { %3626 = vmatpush3.msra.mxu1 %v737_v32 }
  0x2f   :  { %3611 = vmatprep.subr.mxu1 %v736_v34 }
  0x30   :  { %3408 = vmatmul.mubr.msk.f32.gmra.mxu0 %vm92_vm0, %v43_v40  ;;  %3627 = vmatpush3.msra.mxu1 %v736_v34 }
  0x31   :  { %3410 = vmatprep.mubr.msk.f32.mxu0 %vm92_vm0, %v44_v41  ;;  %3612 = vmatprep.subr.mxu1 %v735_v36 }
  0x32   :  { %3628 = vmatpush3.msra.mxu1 %v735_v36 }
  0x33   :  { %3613 = vmatprep.subr.mxu1 %v734_v38 }
  0x34   :  { %3411 = vmatmul.mubr.msk.f32.gmra.mxu0 %vm92_vm0, %v45_v42  ;;  %3629 = vmatpush3.msra.mxu1 %v734_v38 }
  0x35   :  { %3413 = vmatprep.mubr.msk.f32.mxu0 %vm92_vm0, %v46_v43 }
  0x38   :  { %3414 = vmatmul.mubr.msk.f32.gmra.mxu0 %vm92_vm0, %v47_v44 }
  0x39   :  { %3416 = vmatprep.mubr.msk.f32.mxu0 %vm92_vm0, %v48_v45 }
  0x3c   :  { %3417 = vmatmul.mubr.msk.f32.gmra.mxu0 %vm92_vm0, %v49_v46 }
  0x3d   :  { %3419 = vmatprep.mubr.msk.f32.mxu0 %vm92_vm0, %v50_v47 }
  0x40   :  { %3420 = vmatmul.mubr.msk.f32.gmra.mxu0 %vm92_vm0, %v51_v48 }
  0x41   :  { %3422 = vmatprep.mubr.msk.f32.mxu0 %vm92_vm0, %v52_v49 }
  0x44   :  { %3423 = vmatmul.mubr.msk.f32.gmra.mxu0 %vm92_vm0, %v53_v50 }
  0x45   :  { %3425 = vmatprep.mubr.msk.f32.mxu0 %vm92_vm0, %v54_v51 }
  0x48   :  { %3426 = vmatmul.mubr.msk.f32.gmra.mxu0 %vm92_vm0, %v55_v52 }
  0x49   :  { %3428 = vmatprep.mubr.msk.f32.mxu0 %vm92_vm0, %v56_v53 }
  0x4c   :  { %3429 = vmatmul.mubr.msk.f32.gmra.mxu0 %vm92_vm0, %v57_v54 }
  0x4d   :  { %3431 = vmatprep.mubr.msk.f32.mxu0 %vm92_vm0, %v58_v55 }
  0x50   :  { %3432 = vmatmul.mubr.msk.f32.gmra.mxu0 %vm92_vm0, %v59_v56 }
  0x51   :  { %3434 = vmatprep.mubr.msk.f32.mxu0 %vm92_vm0, %v60_v57 }
  0x54   :  { %3435 = vmatmul.mubr.msk.f32.gmra.mxu0 %vm92_vm0, %v61_v58 }
  0x55   :  { %3437 = vmatprep.mubr.msk.f32.mxu0 %vm92_vm0, %v62_v59 }
  0x58   :  { %3438 = vmatmul.mubr.msk.f32.gmra.mxu0 %vm92_vm0, %v63_v60 }
  0x59   :  { %3440 = vmatprep.mubr.msk.f32.mxu0 %vm92_vm0, %v64_v61 }
  0x5c   :  { %3441 = vmatmul.mubr.msk.f32.gmra.mxu0 %vm92_vm0, %v65_v62 }
  0x5d   :  { %3443 = vmatprep.mubr.msk.f32.mxu0 %vm92_vm0, %v66_v63 }
  0x60   :  { %3444 = vmatmul.mubr.msk.f32.gmra.mxu0 %vm92_vm0, %v67_v0 }
  0x61   :  { %3446 = vmatprep.mubr.msk.f32.mxu0 %vm92_vm0, %v68_v1 }
  0x64   :  { %3447 = vmatmul.mubr.msk.f32.gmra.mxu0 %vm92_vm0, %v69_v2 }
  0x65   :  { %3449 = vmatprep.mubr.msk.f32.mxu0 %vm92_vm0, %v70_v3 }
  0x68   :  { %3450 = vmatmul.mubr.msk.f32.gmra.mxu0 %vm92_vm0, %v71_v4 }
  0x69   :  { %3452 = vmatprep.mubr.msk.f32.mxu0 %vm92_vm0, %v72_v5 }
  0x6c   :  { %3453 = vmatmul.mubr.msk.f32.gmra.mxu0 %vm92_vm0, %v73_v6 }
  0x6d   :  { %3455 = vmatprep.mubr.msk.f32.mxu0 %vm92_vm0, %v74_v7 }
  0x70   :  { %3456 = vmatmul.mubr.msk.f32.gmra.mxu0 %vm92_vm0, %v75_v8 }
  0x71   :  { %3458 = vmatprep.mubr.msk.f32.mxu0 %vm92_vm0, %v76_v9 }
  0x74   :  { %3459 = vmatmul.mubr.msk.f32.gmra.mxu0 %vm92_vm0, %v77_v10 }
  0x75   :  { %3461 = vmatprep.mubr.msk.f32.mxu0 %vm92_vm0, %v78_v11 }
  0x78   :  { %3462 = vmatmul.mubr.msk.f32.gmra.mxu0 %vm92_vm0, %v79_v12 }
  0x79   :  { %3464 = vmatprep.mubr.msk.f32.mxu0 %vm92_vm0, %v80_v13 }
  0x7c   :  { %3465 = vmatmul.mubr.msk.f32.gmra.mxu0 %vm92_vm0, %v81_v14 }
  0x7d   :  { %3467 = vmatprep.mubr.msk.f32.mxu0 %vm92_vm0, %v82_v15 }
  0x80   :  { %3468 = vmatmul.mubr.msk.f32.gmra.mxu0 %vm92_vm0, %v83_v16 }
  0xc4   :  { %v3376_v18 = vpop.f32.mrf.mxu0 }
  0xc5   :  { %v357_v19 = vadd.f32 %v3376_v18, %v4123_v17 }
  0xc6   :  { %v351_v20 = vpop.f32.mrf.mxu0 }
  0xc7   :  { %v352_v21 = vadd.f32 %v4123_v17, %v351_v20  ;;  %v671_v24 = vmax.f32 %v357_v19, 0.0 }
  0xc8   :  { %v3379_v22 = vpop.f32.mrf.mxu0 }
  0xc9   :  { %v670_v23 = vmax.f32 %v352_v21, 0.0  ;;  %v367_v25 = vadd.f32 %v3379_v22, %v4123_v17 }
  0xca   :  { %v361_v26 = vpop.f32.mrf.mxu0 }
  0xcb   :  { %v362_v27 = vadd.f32 %v4123_v17, %v361_v26  ;;  %3502 = vmatprep.mubr.f32.mxu0 %v670_v23  ;;  %v673_v30 = vmax.f32 %v367_v25, 0.0 }
  0xcc   :  { %v3382_v28 = vpop.f32.mrf.mxu0  ;;  %3503 = vmatmul.mubr.f32.vlgmr.msra.gmra.mxu0 %v671_v24 }
  0xcd   :  { %v672_v29 = vmax.f32 %v362_v27, 0.0  ;;  %v377_v31 = vadd.f32 %v3382_v28, %v4123_v17 }
  0xce   :  { %v371_v32 = vpop.f32.mrf.mxu0 }
  0xcf   :  { %v372_v33 = vadd.f32 %v4123_v17, %v371_v32  ;;  %3505 = vmatprep.mubr.f32.mxu0 %v672_v29  ;;  %v675_v36 = vmax.f32 %v377_v31, 0.0 }
  0xd0   :  { %v3385_v34 = vpop.f32.mrf.mxu0  ;;  %3506 = vmatmul.mubr.f32.gmra.mxu0 %v673_v30 }
  0xd1   :  { %v674_v35 = vmax.f32 %v372_v33, 0.0  ;;  %v387_v37 = vadd.f32 %v3385_v34, %v4123_v17 }
  0xd2   :  { %v381_v38 = vpop.f32.mrf.mxu0 }
  0xd3   :  { %3508 = vmatprep.mubr.f32.mxu0 %v674_v35  ;;  %v382_v39 = vadd.f32 %v4123_v17, %v381_v38  ;;  %v677_v43 = vmax.f32 %v387_v37, 0.0 }
  0xd4   :  { %v3388_v40 = vpop.f32.mrf.mxu0  ;;  %3509 = vmatmul.mubr.f32.gmra.mxu0 %v675_v36 }
  0xd5   :  { %v397_v41 = vadd.f32 %v3388_v40, %v4123_v17  ;;  %v676_v42 = vmax.f32 %v382_v39, 0.0 }
  0xd6   :  { %v391_v44 = vpop.f32.mrf.mxu0 }
  0xd7   :  { %v392_v45 = vadd.f32 %v4123_v17, %v391_v44  ;;  %3511 = vmatprep.mubr.f32.mxu1 %v676_v42  ;;  %v679_v46 = vmax.f32 %v397_v41, 0.0 }
  0xd8   :  { %v3391_v47 = vpop.f32.mrf.mxu0  ;;  %3512 = vmatmul.mubr.f32.vlgmr.msra.gmra.mxu1 %v677_v43 }
  0xd9   :  { %v678_v48 = vmax.f32 %v392_v45, 0.0  ;;  %v407_v49 = vadd.f32 %v3391_v47, %v4123_v17 }
  0xda   :  { %v401_v50 = vpop.f32.mrf.mxu0 }
  0xdb   :  { %v402_v51 = vadd.f32 %v4123_v17, %v401_v50  ;;  %3514 = vmatprep.mubr.f32.mxu1 %v678_v48  ;;  %v681_v52 = vmax.f32 %v407_v49, 0.0 }
  0xdc   :  { %v3394_v53 = vpop.f32.mrf.mxu0  ;;  %3515 = vmatmul.mubr.f32.gmra.mxu1 %v679_v46 }
  0xdd   :  { %v680_v54 = vmax.f32 %v402_v51, 0.0  ;;  %v417_v55 = vadd.f32 %v3394_v53, %v4123_v17 }
  0xde   :  { %v411_v56 = vpop.f32.mrf.mxu0 }
  0xdf   :  { %v412_v57 = vadd.f32 %v4123_v17, %v411_v56  ;;  %3517 = vmatprep.mubr.f32.mxu1 %v680_v54  ;;  %v683_v58 = vmax.f32 %v417_v55, 0.0 }
  0xe0   :  { %v3397_v59 = vpop.f32.mrf.mxu0  ;;  %3518 = vmatmul.mubr.f32.gmra.mxu1 %v681_v52 }
  0xe1   :  { %v682_v60 = vmax.f32 %v412_v57, 0.0  ;;  %v427_v61 = vadd.f32 %v3397_v59, %v4123_v17 }
  0xe2   :  { %v421_v62 = vpop.f32.mrf.mxu0 }
  0xe3   :  { %v422_v63 = vadd.f32 %v4123_v17, %v421_v62  ;;  %3520 = vmatprep.mubr.f32.mxu1 %v682_v60  ;;  %v685_v0 = vmax.f32 %v427_v61, 0.0 }
  0xe4   :  { %v3400_v1 = vpop.f32.mrf.mxu0  ;;  %3521 = vmatmul.mubr.f32.gmra.mxu1 %v683_v58 }
  0xe5   :  { %v684_v2 = vmax.f32 %v422_v63, 0.0  ;;  %v437_v3 = vadd.f32 %v3400_v1, %v4123_v17 }
  0xe6   :  { %v431_v4 = vpop.f32.mrf.mxu0 }
  0xe7   :  { %v432_v5 = vadd.f32 %v4123_v17, %v431_v4  ;;  %3523 = vmatprep.mubr.f32.mxu1 %v684_v2  ;;  %v687_v6 = vmax.f32 %v437_v3, 0.0 }
  0xe8   :  { %v3403_v7 = vpop.f32.mrf.mxu0  ;;  %3524 = vmatmul.mubr.f32.gmra.mxu1 %v685_v0 }
  0xe9   :  { %v686_v8 = vmax.f32 %v432_v5, 0.0  ;;  %v447_v9 = vadd.f32 %v3403_v7, %v4123_v17 }
  0xea   :  { %v441_v10 = vpop.f32.mrf.mxu0 }
  0xeb   :  { %v442_v11 = vadd.f32 %v4123_v17, %v441_v10  ;;  %3526 = vmatprep.mubr.f32.mxu1 %v686_v8  ;;  %v689_v12 = vmax.f32 %v447_v9, 0.0 }
  0xec   :  { %v3406_v13 = vpop.f32.mrf.mxu0  ;;  %3527 = vmatmul.mubr.f32.gmra.mxu1 %v687_v6 }
  0xed   :  { %v688_v14 = vmax.f32 %v442_v11, 0.0  ;;  %v457_v15 = vadd.f32 %v3406_v13, %v4123_v17 }
  0xee   :  { %v451_v16 = vpop.f32.mrf.mxu0 }
  0xef   :  { %v452_v18 = vadd.f32 %v4123_v17, %v451_v16  ;;  %3529 = vmatprep.mubr.f32.mxu1 %v688_v14  ;;  %v691_v19 = vmax.f32 %v457_v15, 0.0 }
  0xf0   :  { %v3409_v20 = vpop.f32.mrf.mxu0  ;;  %3530 = vmatmul.mubr.f32.gmra.mxu1 %v689_v12 }
  0xf1   :  { %v690_v21 = vmax.f32 %v452_v18, 0.0  ;;  %v467_v22 = vadd.f32 %v3409_v20, %v4123_v17 }
  0xf2   :  { %v461_v23 = vpop.f32.mrf.mxu0 }
  0xf3   :  { %v462_v24 = vadd.f32 %v4123_v17, %v461_v23  ;;  %3532 = vmatprep.mubr.f32.mxu1 %v690_v21  ;;  %v693_v25 = vmax.f32 %v467_v22, 0.0 }
  0xf4   :  { %v3412_v26 = vpop.f32.mrf.mxu0  ;;  %3533 = vmatmul.mubr.f32.gmra.mxu1 %v691_v19 }
  0xf5   :  { %v692_v27 = vmax.f32 %v462_v24, 0.0  ;;  %v477_v28 = vadd.f32 %v3412_v26, %v4123_v17 }
  0xf6   :  { %v471_v29 = vpop.f32.mrf.mxu0 }
  0xf7   :  { %v472_v30 = vadd.f32 %v4123_v17, %v471_v29  ;;  %3535 = vmatprep.mubr.f32.mxu1 %v692_v27  ;;  %v695_v31 = vmax.f32 %v477_v28, 0.0 }
  0xf8   :  { %v3415_v32 = vpop.f32.mrf.mxu0  ;;  %3536 = vmatmul.mubr.f32.gmra.mxu1 %v693_v25 }
  0xf9   :  { %v694_v33 = vmax.f32 %v472_v30, 0.0  ;;  %v487_v34 = vadd.f32 %v3415_v32, %v4123_v17 }
  0xfa   :  { %v481_v35 = vpop.f32.mrf.mxu0 }
  0xfb   :  { %v482_v36 = vadd.f32 %v4123_v17, %v481_v35  ;;  %3538 = vmatprep.mubr.f32.mxu1 %v694_v33  ;;  %v697_v37 = vmax.f32 %v487_v34, 0.0 }
  0xfc   :  { %v3418_v38 = vpop.f32.mrf.mxu0  ;;  %3539 = vmatmul.mubr.f32.gmra.mxu1 %v695_v31 }
  0xfd   :  { %v696_v39 = vmax.f32 %v482_v36, 0.0  ;;  %v497_v40 = vadd.f32 %v3418_v38, %v4123_v17 }
  0xfe   :  { %v491_v41 = vpop.f32.mrf.mxu0 }
  0xff   :  { %v492_v42 = vadd.f32 %v4123_v17, %v491_v41  ;;  %3541 = vmatprep.mubr.f32.mxu1 %v696_v39  ;;  %v699_v43 = vmax.f32 %v497_v40, 0.0 }
 0x100   :  { %v3421_v44 = vpop.f32.mrf.mxu0  ;;  %3542 = vmatmul.mubr.f32.gmra.mxu1 %v697_v37 }
 0x101   :  { %v698_v45 = vmax.f32 %v492_v42, 0.0  ;;  %v507_v46 = vadd.f32 %v3421_v44, %v4123_v17 }
 0x102   :  { %v501_v47 = vpop.f32.mrf.mxu0 }
 0x103   :  { %v502_v48 = vadd.f32 %v4123_v17, %v501_v47  ;;  %3544 = vmatprep.mubr.f32.mxu1 %v698_v45  ;;  %v701_v49 = vmax.f32 %v507_v46, 0.0 }
 0x104   :  { %v3424_v50 = vpop.f32.mrf.mxu0  ;;  %3545 = vmatmul.mubr.f32.gmra.mxu1 %v699_v43 }
 0x105   :  { %v700_v51 = vmax.f32 %v502_v48, 0.0  ;;  %v517_v52 = vadd.f32 %v3424_v50, %v4123_v17 }
 0x106   :  { %v511_v53 = vpop.f32.mrf.mxu0 }
 0x107   :  { %v512_v54 = vadd.f32 %v4123_v17, %v511_v53  ;;  %3547 = vmatprep.mubr.f32.mxu1 %v700_v51  ;;  %v703_v55 = vmax.f32 %v517_v52, 0.0 }
 0x108   :  { %v3427_v56 = vpop.f32.mrf.mxu0  ;;  %3548 = vmatmul.mubr.f32.gmra.mxu1 %v701_v49 }
 0x109   :  { %v702_v57 = vmax.f32 %v512_v54, 0.0  ;;  %v527_v58 = vadd.f32 %v3427_v56, %v4123_v17 }
 0x10a   :  { %v521_v59 = vpop.f32.mrf.mxu0 }
 0x10b   :  { %v522_v60 = vadd.f32 %v4123_v17, %v521_v59  ;;  %3550 = vmatprep.mubr.f32.mxu1 %v702_v57  ;;  %v705_v61 = vmax.f32 %v527_v58, 0.0 }
 0x10c   :  { %v3430_v62 = vpop.f32.mrf.mxu0  ;;  %3551 = vmatmul.mubr.f32.gmra.mxu1 %v703_v55 }
 0x10d   :  { %v704_v63 = vmax.f32 %v522_v60, 0.0  ;;  %v537_v0 = vadd.f32 %v3430_v62, %v4123_v17 }
 0x10e   :  { %v531_v1 = vpop.f32.mrf.mxu0 }
 0x10f   :  { %v532_v2 = vadd.f32 %v4123_v17, %v531_v1  ;;  %3553 = vmatprep.mubr.f32.mxu1 %v704_v63  ;;  %v707_v3 = vmax.f32 %v537_v0, 0.0 }
 0x110   :  { %v3433_v4 = vpop.f32.mrf.mxu0  ;;  %3554 = vmatmul.mubr.f32.gmra.mxu1 %v705_v61 }
 0x111   :  { %v706_v5 = vmax.f32 %v532_v2, 0.0  ;;  %v547_v6 = vadd.f32 %v3433_v4, %v4123_v17 }
 0x112   :  { %v541_v7 = vpop.f32.mrf.mxu0 }
 0x113   :  { %v542_v8 = vadd.f32 %v4123_v17, %v541_v7  ;;  %3556 = vmatprep.mubr.f32.mxu1 %v706_v5  ;;  %v709_v9 = vmax.f32 %v547_v6, 0.0 }
 0x114   :  { %v3436_v10 = vpop.f32.mrf.mxu0  ;;  %3557 = vmatmul.mubr.f32.gmra.mxu1 %v707_v3 }
 0x115   :  { %v708_v11 = vmax.f32 %v542_v8, 0.0  ;;  %v557_v12 = vadd.f32 %v3436_v10, %v4123_v17 }
 0x116   :  { %v551_v13 = vpop.f32.mrf.mxu0 }
 0x117   :  { %v552_v14 = vadd.f32 %v4123_v17, %v551_v13  ;;  %3559 = vmatprep.mubr.f32.mxu1 %v708_v11  ;;  %v711_v15 = vmax.f32 %v557_v12, 0.0 }
 0x118   :  { %v3439_v16 = vpop.f32.mrf.mxu0  ;;  %3560 = vmatmul.mubr.f32.gmra.mxu1 %v709_v9 }
 0x119   :  { %v710_v18 = vmax.f32 %v552_v14, 0.0  ;;  %v567_v19 = vadd.f32 %v3439_v16, %v4123_v17 }
 0x11a   :  { %v561_v20 = vpop.f32.mrf.mxu0 }
 0x11b   :  { %v562_v21 = vadd.f32 %v4123_v17, %v561_v20  ;;  %3562 = vmatprep.mubr.f32.mxu1 %v710_v18  ;;  %v713_v22 = vmax.f32 %v567_v19, 0.0 }
 0x11c   :  { %v3442_v23 = vpop.f32.mrf.mxu0  ;;  %3563 = vmatmul.mubr.f32.gmra.mxu1 %v711_v15 }
 0x11d   :  { %v712_v24 = vmax.f32 %v562_v21, 0.0  ;;  %v577_v25 = vadd.f32 %v3442_v23, %v4123_v17 }
 0x11e   :  { %v571_v26 = vpop.f32.mrf.mxu0 }
 0x11f   :  { %v572_v27 = vadd.f32 %v4123_v17, %v571_v26  ;;  %3565 = vmatprep.mubr.f32.mxu1 %v712_v24  ;;  %v715_v28 = vmax.f32 %v577_v25, 0.0 }
 0x120   :  { %v3445_v29 = vpop.f32.mrf.mxu0  ;;  %3566 = vmatmul.mubr.f32.gmra.mxu1 %v713_v22  ;;  %v4192_v22 = vld [vmem:[%s6378_s4] ss:$0 sm:$0xff] }
 0x121   :  { %v714_v30 = vmax.f32 %v572_v27, 0.0  ;;  %v587_v31 = vadd.f32 %v3445_v29, %v4123_v17 }
 0x122   :  { %v581_v32 = vpop.f32.mrf.mxu0 }
 0x123   :  { %v582_v33 = vadd.f32 %v4123_v17, %v581_v32  ;;  %3568 = vmatprep.mubr.f32.mxu1 %v714_v30  ;;  %v717_v34 = vmax.f32 %v587_v31, 0.0 }
 0x124   :  { %v3448_v35 = vpop.f32.mrf.mxu0  ;;  %3569 = vmatmul.mubr.f32.gmra.mxu1 %v715_v28 }
 0x125   :  { %v716_v36 = vmax.f32 %v582_v33, 0.0  ;;  %v597_v37 = vadd.f32 %v3448_v35, %v4123_v17 }
 0x126   :  { %v591_v38 = vpop.f32.mrf.mxu0 }
 0x127   :  { %v592_v39 = vadd.f32 %v4123_v17, %v591_v38  ;;  %3571 = vmatprep.mubr.f32.mxu1 %v716_v36  ;;  %v719_v40 = vmax.f32 %v597_v37, 0.0 }
 0x128   :  { %v3451_v41 = vpop.f32.mrf.mxu0  ;;  %3572 = vmatmul.mubr.f32.gmra.mxu1 %v717_v34 }
 0x129   :  { %v718_v42 = vmax.f32 %v592_v39, 0.0  ;;  %v607_v43 = vadd.f32 %v3451_v41, %v4123_v17 }
 0x12a   :  { %v601_v44 = vpop.f32.mrf.mxu0 }
 0x12b   :  { %v602_v45 = vadd.f32 %v4123_v17, %v601_v44  ;;  %3574 = vmatprep.mubr.f32.mxu1 %v718_v42  ;;  %v721_v46 = vmax.f32 %v607_v43, 0.0 }
 0x12c   :  { %v3454_v47 = vpop.f32.mrf.mxu0  ;;  %3575 = vmatmul.mubr.f32.gmra.mxu1 %v719_v40 }
 0x12d   :  { %v720_v48 = vmax.f32 %v602_v45, 0.0  ;;  %v617_v49 = vadd.f32 %v3454_v47, %v4123_v17 }
 0x12e   :  { %v611_v50 = vpop.f32.mrf.mxu0 }
 0x12f   :  { %v612_v51 = vadd.f32 %v4123_v17, %v611_v50  ;;  %3577 = vmatprep.mubr.f32.mxu1 %v720_v48  ;;  %v723_v52 = vmax.f32 %v617_v49, 0.0 }
 0x130   :  { %v3457_v53 = vpop.f32.mrf.mxu0  ;;  %3578 = vmatmul.mubr.f32.gmra.mxu1 %v721_v46 }
 0x131   :  { %v722_v54 = vmax.f32 %v612_v51, 0.0  ;;  %v627_v55 = vadd.f32 %v3457_v53, %v4123_v17 }
 0x132   :  { %v621_v56 = vpop.f32.mrf.mxu0 }
 0x133   :  { %v622_v57 = vadd.f32 %v4123_v17, %v621_v56  ;;  %3580 = vmatprep.mubr.f32.mxu1 %v722_v54  ;;  %v725_v58 = vmax.f32 %v627_v55, 0.0 }
 0x134   :  { %v3460_v59 = vpop.f32.mrf.mxu0  ;;  %3581 = vmatmul.mubr.f32.gmra.mxu1 %v723_v52 }
 0x135   :  { %v724_v60 = vmax.f32 %v622_v57, 0.0  ;;  %v637_v61 = vadd.f32 %v3460_v59, %v4123_v17 }
 0x136   :  { %v631_v62 = vpop.f32.mrf.mxu0 }
 0x137   :  { %v632_v63 = vadd.f32 %v4123_v17, %v631_v62  ;;  %3583 = vmatprep.mubr.f32.mxu1 %v724_v60  ;;  %v727_v0 = vmax.f32 %v637_v61, 0.0 }
 0x138   :  { %v3463_v1 = vpop.f32.mrf.mxu0  ;;  %3584 = vmatmul.mubr.f32.gmra.mxu1 %v725_v58 }
 0x139   :  { %v726_v2 = vmax.f32 %v632_v63, 0.0  ;;  %v647_v3 = vadd.f32 %v3463_v1, %v4123_v17 }
 0x13a   :  { %v641_v4 = vpop.f32.mrf.mxu0 }
 0x13b   :  { %v642_v5 = vadd.f32 %v4123_v17, %v641_v4  ;;  %3586 = vmatprep.mubr.f32.mxu1 %v726_v2  ;;  %v729_v6 = vmax.f32 %v647_v3, 0.0 }
 0x13c   :  { %v3466_v7 = vpop.f32.mrf.mxu0  ;;  %3587 = vmatmul.mubr.f32.gmra.mxu1 %v727_v0 }
 0x13d   :  { %v728_v8 = vmax.f32 %v642_v5, 0.0  ;;  %v657_v9 = vadd.f32 %v3466_v7, %v4123_v17 }
 0x13e   :  { %v651_v10 = vpop.f32.mrf.mxu0 }
 0x13f   :  { %v652_v11 = vadd.f32 %v4123_v17, %v651_v10  ;;  %3589 = vmatprep.mubr.f32.mxu1 %v728_v8  ;;  %v731_v12 = vmax.f32 %v657_v9, 0.0 }
 0x140   :  { %v3469_v13 = vpop.f32.mrf.mxu0  ;;  %3590 = vmatmul.mubr.f32.gmra.mxu1 %v729_v6 }
 0x141   :  { %v730_v14 = vmax.f32 %v652_v11, 0.0  ;;  %v667_v15 = vadd.f32 %v3469_v13, %v4123_v17 }
 0x142   :  { %v661_v16 = vpop.f32.mrf.mxu0 }
 0x143   :  { %v662_v18 = vadd.f32 %v4123_v17, %v661_v16  ;;  %3592 = vmatprep.mubr.f32.mxu1 %v730_v14  ;;  %v733_v19 = vmax.f32 %v667_v15, 0.0 }
 0x144   :  { %3593 = vmatmul.mubr.f32.gmra.mxu1 %v731_v12 }
 0x145   :  { %v732_v20 = vmax.f32 %v662_v18, 0.0 }
 0x147   :  { %3595 = vmatprep.mubr.f32.mxu1 %v732_v20 }
 0x148   :  { %3596 = vmatmul.mubr.f32.gmra.mxu1 %v733_v19 }
 0x18c   :  { %v3504_v21 = vpop.f32.mrf.mxu0 }
 0x18d   :  { %v4195_v24 = vadd.f32 %v3504_v21, %v4192_v22 }
 0x18e   :  { %v823_v23 = vpop.f32.mrf.mxu0 }
 0x18f   :  { %v4198_v25 = vadd.f32 %v4192_v22, %v823_v23  ;;  %v1144_v28 = vsel %vm1142_vm1, %v4195_v24, -inf }
 0x190   :  { %v3507_v17 = vpop.f32.mrf.mxu0 }
 0x191   :  { %v1143_v26 = vsel %vm1142_vm1, %v4198_v25, -inf  ;;  %v4205_v29 = vadd.f32 %v3507_v17, %v4192_v22 }
 0x192   :  { %v833_v27 = vpop.f32.mrf.mxu0  ;;  %v1145_v31 = vmax.f32 %v1143_v26, %v1144_v28 }
 0x193   :  { %6512 = vst [vmem:[#allocation2_spill] sm:$0xff] %v4205_v29  ;;  %v4208_v30 = vadd.f32 %v4192_v22, %v833_v27  ;;  %v1148_v36 = vsel %vm1142_vm1, %v4205_v29, -inf }
 0x194   :  { %v3510_v32 = vpop.f32.mrf.mxu0 }
 0x195   :  { %v1146_v33 = vsel %vm1142_vm1, %v4208_v30, -inf  ;;  %v4215_v37 = vadd.f32 %v3510_v32, %v4192_v22 }
 0x196   :  { %v1147_v34 = vmax.f32 %v1145_v31, %v1146_v33  ;;  %v843_v35 = vpop.f32.mrf.mxu0 }
 0x197   :  { %6513 = vst [vmem:[#allocation3_spill] sm:$0xff] %v4215_v37  ;;  %v4218_v38 = vadd.f32 %v4192_v22, %v843_v35  ;;  %v1152_v44 = vsel %vm1142_vm1, %v4215_v37, -inf }
 0x198   :  { %v1149_v39 = vmax.f32 %v1147_v34, %v1148_v36  ;;  %v3513_v40 = vpop.f32.mrf.mxu1 }
 0x199   :  { %6514 = vst [vmem:[#allocation4_spill] sm:$0xff] %v4218_v38  ;;  %v1150_v41 = vsel %vm1142_vm1, %v4218_v38, -inf  ;;  %v4225_v45 = vadd.f32 %v3513_v40, %v4192_v22 }
 0x19a   :  { %v1151_v42 = vmax.f32 %v1149_v39, %v1150_v41  ;;  %v853_v43 = vpop.f32.mrf.mxu1 }
 0x19b   :  { %6515 = vst [vmem:[#allocation5_spill] sm:$0xff] %v4225_v45  ;;  %v4228_v46 = vadd.f32 %v4192_v22, %v853_v43  ;;  %v1156_v53 = vsel %vm1142_vm1, %v4225_v45, -inf }
 0x19c   :  { %v1153_v47 = vmax.f32 %v1151_v42, %v1152_v44  ;;  %v3516_v48 = vpop.f32.mrf.mxu1 }
 0x19d   :  { %6516 = vst [vmem:[#allocation6_spill] sm:$0xff] %v4228_v46  ;;  %v1154_v49 = vsel %vm1142_vm1, %v4228_v46, -inf  ;;  %v4233_v50 = vadd.f32 %v3516_v48, %v4192_v22 }
 0x19e   :  { %v1155_v51 = vmax.f32 %v1153_v47, %v1154_v49  ;;  %v863_v52 = vpop.f32.mrf.mxu1 }
 0x19f   :  { %6517 = vst [vmem:[#allocation7_spill] sm:$0xff] %v4233_v50  ;;  %v1165_v54 = vsel %vm1142_vm1, %v4233_v50, -inf  ;;  %v4240_v55 = vadd.f32 %v4192_v22, %v863_v52 }
 0x1a0   :  { %v1157_v56 = vmax.f32 %v1155_v51, %v1156_v53  ;;  %v3519_v57 = vpop.f32.mrf.mxu1 }
 0x1a1   :  { %6518 = vst [vmem:[#allocation8_spill] sm:$0xff] %v4240_v55  ;;  %v1164_v58 = vsel %vm1142_vm1, %v4240_v55, -inf  ;;  %v4245_v59 = vadd.f32 %v3519_v57, %v4192_v22 }
 0x1a2   :  { %v1158_v60 = vrot.slane %v1157_v56, 4  ;;  %v1166_v61 = vmax.f32 %v1164_v58, %v1165_v54  ;;  %v873_v62 = vpop.f32.mrf.mxu1 }
 0x1a3   :  { %6519 = vst [vmem:[#allocation9_spill] sm:$0xff] %v4245_v59  ;;  %v4248_v63 = vadd.f32 %v4192_v22, %v873_v62  ;;  %v1169_v2 = vsel %vm1142_vm1, %v4245_v59, -inf }
 0x1a4   :  { %v1159_v0 = vmax.f32 %v1157_v56, %v1158_v60  ;;  %v3522_v1 = vpop.f32.mrf.mxu1 }
 0x1a5   :  { %6520 = vst [vmem:[#allocation10_spill] sm:$0xff] %v4248_v63  ;;  %v1167_v3 = vsel %vm1142_vm1, %v4248_v63, -inf  ;;  %v4255_v4 = vadd.f32 %v3522_v1, %v4192_v22 }
 0x1a6   :  { %v1160_v5 = vrot.slane %v1159_v0, 2  ;;  %v1168_v6 = vmax.f32 %v1166_v61, %v1167_v3  ;;  %v883_v7 = vpop.f32.mrf.mxu1 }
 0x1a7   :  { %6521 = vst [vmem:[#allocation11_spill] sm:$0xff] %v4255_v4  ;;  %v4258_v8 = vadd.f32 %v4192_v22, %v883_v7  ;;  %v1173_v12 = vsel %vm1142_vm1, %v4255_v4, -inf }
 0x1a8   :  { %v1161_v9 = vmax.f32 %v1159_v0, %v1160_v5  ;;  %v1170_v10 = vmax.f32 %v1168_v6, %v1169_v2  ;;  %v3525_v11 = vpop.f32.mrf.mxu1 }
 0x1a9   :  { %6522 = vst [vmem:[#allocation12_spill] sm:$0xff] %v4258_v8  ;;  %v1171_v13 = vsel %vm1142_vm1, %v4258_v8, -inf  ;;  %v4265_v14 = vadd.f32 %v3525_v11, %v4192_v22 }
 0x1aa   :  { %v1162_v15 = vrot.slane %v1161_v9, 1  ;;  %v1172_v16 = vmax.f32 %v1170_v10, %v1171_v13  ;;  %v893_v18 = vpop.f32.mrf.mxu1 }
 0x1ab   :  { %6523 = vst [vmem:[#allocation13_spill] sm:$0xff] %v4265_v14  ;;  %v4268_v19 = vadd.f32 %v4192_v22, %v893_v18  ;;  %v1177_v17 = vsel %vm1142_vm1, %v4265_v14, -inf }
 0x1ac   :  { %v1163_v20 = vmax.f32 %v1161_v9, %v1162_v15  ;;  %v1174_v21 = vmax.f32 %v1172_v16, %v1173_v12  ;;  %v3528_v23 = vpop.f32.mrf.mxu1 }
 0x1ad   :  { %6524 = vst [vmem:[#allocation14_spill] sm:$0xff] %v4268_v19  ;;  %v1175_v26 = vsel %vm1142_vm1, %v4268_v19, -inf  ;;  %v4281_v43 = vadd.f32 %v3528_v23, %v4192_v22 }
 0x1ae   :  { %v1176_v27 = vmax.f32 %v1174_v21, %v1175_v26  ;;  %v903_v28 = vpop.f32.mrf.mxu1  ;;  %v1311_v31 = vsub.f32 %v4198_v25, %v1163_v20  ;;  %v1312_v32 = vsub.f32 %v4195_v24, %v1163_v20  ;;  %v1313_v34 = vsub.f32 %v4208_v30, %v1163_v20 }
 0x1af   :  { %v1314_v36 = vsub.f32 %v4205_v29, %v1163_v20  ;;  %v1315_v40 = vsub.f32 %v4218_v38, %v1163_v20  ;;  %v1316_v42 = vsub.f32 %v4215_v37, %v1163_v20  ;;  %6525 = vst [vmem:[#allocation15_spill] sm:$0xff] %v4281_v43  ;;  %v4284_v44 = vadd.f32 %v4192_v22, %v903_v28 }
 0x1b0   :  { %v1178_v33 = vmax.f32 %v1176_v27, %v1177_v17  ;;  %v3531_v35 = vpop.f32.mrf.mxu1  ;;  %v1375_v41 = vmul.f32 1.442695, %v1311_v31  ;;  %v1377_v47 = vmul.f32 1.442695, %v1312_v32  ;;  %v1379_v49 = vmul.f32 1.442695, %v1313_v34 }
 0x1b1   :  { %6526 = vst [vmem:[#allocation16_spill] sm:$0xff] %v4284_v44  ;;  %v1381_v51 = vmul.f32 1.442695, %v1314_v36  ;;  %v1383_v54 = vmul.f32 1.442695, %v1315_v40  ;;  %v1317_v56 = vsub.f32 %v4228_v46, %v1163_v20  ;;  %v1186_v57 = vsel %vm1142_vm1, %v4281_v43, -inf }
 0x1b2   :  { %v1179_v39 = vrot.slane %v1178_v33, 4  ;;  %3634 = vpow2.f32 %v1375_v41  ;;  %v913_v52 = vpop.f32.mrf.mxu1  ;;  %v1185_v58 = vsel %vm1142_vm1, %v4284_v44, -inf  ;;  %v1385_v62 = vmul.f32 1.442695, %v1316_v42 }
 0x1b3   :  { %3636 = vpow2.f32 %v1377_v47  ;;  %v4292_v61 = vadd.f32 %v4192_v22, %v913_v52  ;;  %v1318_v0 = vsub.f32 %v4225_v45, %v1163_v20  ;;  %v1387_v2 = vmul.f32 1.442695, %v1317_v56 }
 0x1b4   :  { %v1180_v48 = vmax.f32 %v1178_v33, %v1179_v39  ;;  %3638 = vpow2.f32 %v1379_v49  ;;  %v3534_v1 = vpop.f32.mrf.mxu1  ;;  %v1187_v3 = vmax.f32 %v1185_v58, %v1186_v57  ;;  %v4296_v6 = vadd.f32 %v3531_v35, %v4192_v22 }
 0x1b5   :  { %6527 = vst [vmem:[#allocation17_spill] sm:$0xff] %v4292_v61  ;;  %3640 = vpow2.f32 %v1381_v51  ;;  %v1188_v7 = vsel %vm1142_vm1, %v4292_v61, -inf  ;;  %v1389_v9 = vmul.f32 1.442695, %v1318_v0  ;;  %v4316_v17 = vadd.f32 %v3534_v1, %v4192_v22 }
 0x1b6   :  { %v1181_v53 = vrot.slane %v1180_v48, 2  ;;  %3642 = vpow2.f32 %v1383_v54  ;;  %6528 = vst [vmem:[#allocation18_spill] sm:$0xff] %v4296_v6  ;;  %v923_v10 = vpop.f32.mrf.mxu1  ;;  %v1189_v11 = vmax.f32 %v1187_v3, %v1188_v7  ;;  %v1190_v13 = vsel %vm1142_vm1, %v4296_v6, -inf }
 0x1b7   :  { %3644 = vpow2.f32 %v1385_v62  ;;  %v4305_v15 = vadd.f32 %v4192_v22, %v923_v10  ;;  %6530 = vst [vmem:[#allocation20_spill] sm:$0xff] %v4316_v17  ;;  %v1194_v40 = vsel %vm1142_vm1, %v4316_v17, -inf }
 0x1b8   :  { %v1182_v60 = vmax.f32 %v1180_v48, %v1181_v53  ;;  %3646 = vpow2.f32 %v1387_v2  ;;  %v3537_v18 = vpop.f32.mrf.mxu1  ;;  %v1191_v26 = vmax.f32 %v1189_v11, %v1190_v13 }
 0x1b9   :  { %6529 = vst [vmem:[#allocation19_spill] sm:$0xff] %v4305_v15  ;;  %3648 = vpow2.f32 %v1389_v9  ;;  %v1192_v27 = vsel %vm1142_vm1, %v4305_v15, -inf  ;;  %v4348_v62 = vadd.f32 %v3537_v18, %v4192_v22 }
 0x1ba   :  { %v1183_v5 = vrot.slane %v1182_v60, 1  ;;  %v933_v34 = vpop.f32.mrf.mxu1  ;;  %v1193_v41 = vmax.f32 %v1191_v26, %v1192_v27 }
 0x1bb   :  { %v4335_v47 = vadd.f32 %v4192_v22, %v933_v34  ;;  %6532 = vst [vmem:[#allocation22_spill] sm:$0xff] %v4348_v62  ;;  %v1198_v13 = vsel %vm1142_vm1, %v4348_v62, -inf }
 0x1bc   :  { %v4300_v12 = vmax.f32 %v1182_v60, %v1183_v5  ;;  %v1195_v57 = vmax.f32 %v1193_v41, %v1194_v40 }
 0x1bd   :  { %6531 = vst [vmem:[#allocation21_spill] sm:$0xff] %v4335_v47  ;;  %v1196_v0 = vsel %vm1142_vm1, %v4335_v47, -inf }
 0x1be   :  { %v1319_v31 = vsub.f32 %v4240_v55, %v4300_v12  ;;  %v1320_v32 = vsub.f32 %v4233_v50, %v4300_v12  ;;  %v1321_v54 = vsub.f32 %v4248_v63, %v4300_v12  ;;  %v1322_v7 = vsub.f32 %v4245_v59, %v4300_v12 }
 0x1bf   :  { %v4307_v16 = vpop.eup %3634  ;;  %v1323_v10 = vsub.f32 %v4258_v8, %v4300_v12  ;;  %v1197_v11 = vmax.f32 %v1195_v57, %v1196_v0  ;;  %v1326_v41 = vsub.f32 %v4265_v14, %v4300_v12 }
 0x1c0   :  { %v4309_v20 = vpop.eup %3636  ;;  %v1503_v21 = vsel %vm1142_vm1, %v4307_v16, 0.0  ;;  %v1391_v49 = vmul.f32 1.442695, %v1319_v31  ;;  %v1393_v51 = vmul.f32 1.442695, %v1320_v32  ;;  %v1325_v31 = vsub.f32 %v4268_v19, %v4300_v12 }
 0x1c1   :  { %v4313_v23 = vpop.eup %3638  ;;  %v1504_v28 = vsel %vm1142_vm1, %v4309_v20, 0.0  ;;  %v1395_v3 = vmul.f32 1.442695, %v1321_v54  ;;  %v1199_v32 = vmax.f32 %v1197_v11, %v1198_v13  ;;  %v1399_v34 = vmul.f32 1.442695, %v1323_v10 }
 0x1c2   :  { %v4326_v33 = vpop.eup %3640  ;;  %v1505_v35 = vadd.f32 %v1504_v28, %v1503_v21  ;;  %v1506_v36 = vsel %vm1142_vm1, %v4313_v23, 0.0  ;;  %3650 = vpow2.f32 %v1391_v49  ;;  %v1324_v21 = vsub.f32 %v4255_v4, %v4300_v12 }
 0x1c3   :  { %v4330_v39 = vpop.eup %3642  ;;  %v1508_v48 = vsel %vm1142_vm1, %v4326_v33, 0.0  ;;  %3652 = vpow2.f32 %v1393_v51  ;;  %v1397_v28 = vmul.f32 1.442695, %v1322_v7  ;;  %v1200_v49 = vrot.slane %v1199_v32, 4 }
 0x1c4   :  { %v1507_v42 = vadd.f32 %v1506_v36, %v1505_v35  ;;  %v4339_v52 = vpop.eup %3644  ;;  %v1510_v56 = vsel %vm1142_vm1, %v4330_v39, 0.0  ;;  %3654 = vpow2.f32 %v1395_v3  ;;  %v3540_v35 = vpop.f32.mrf.mxu1  ;;  %v1401_v40 = vmul.f32 1.442695, %v1324_v21 }
 0x1c5   :  { %v4345_v60 = vpop.eup %3646  ;;  %v1512_v1 = vsel %vm1142_vm1, %v4339_v52, 0.0  ;;  %3656 = vpow2.f32 %v1397_v28  ;;  %v1405_v57 = vmul.f32 1.442695, %v1326_v41  ;;  %v1201_v0 = vmax.f32 %v1199_v32, %v1200_v49 }
 0x1c6   :  { %v1509_v53 = vadd.f32 %v1508_v48, %v1507_v42  ;;  %v4354_v5 = vpop.eup %3648  ;;  %v1514_v9 = vsel %vm1142_vm1, %v4345_v60, 0.0  ;;  %v1403_v48 = vmul.f32 1.442695, %v1325_v31  ;;  %3658 = vpow2.f32 %v1399_v34 }
 0x1c7   :  { %v1516_v26 = vsel %vm1142_vm1, %v4354_v5, 0.0  ;;  %3660 = vpow2.f32 %v1401_v40  ;;  %v1202_v10 = vrot.slane %v1201_v0, 2  ;;  %v4383_v11 = vadd.f32 %v3540_v35, %v4192_v22 }
 0x1c8   :  { %v1511_v58 = vadd.f32 %v1510_v56, %v1509_v53  ;;  %v943_v53 = vpop.f32.mrf.mxu1  ;;  %3662 = vpow2.f32 %v1403_v48 }
 0x1c9   :  { %3664 = vpow2.f32 %v1405_v57  ;;  %6533 = vst [vmem:[#allocation23_spill] sm:$0xff] %v4383_v11  ;;  %v4386_v13 = vadd.f32 %v4192_v22, %v943_v53  ;;  %v1203_v32 = vmax.f32 %v1201_v0, %v1202_v10  ;;  %v1207_v34 = vsel %vm1142_vm1, %v4383_v11, -inf }
 0x1ca   :  { %v1513_v2 = vadd.f32 %v1512_v1, %v1511_v58 }
 0x1cb   :  { %6534 = vst [vmem:[#allocation24_spill] sm:$0xff] %v4386_v13  ;;  %v1206_v35 = vsel %vm1142_vm1, %v4386_v13, -inf }
 0x1cc   :  { %v1515_v18 = vadd.f32 %v1514_v9, %v1513_v2  ;;  %v3543_v2 = vpop.f32.mrf.mxu1  ;;  %v1208_v49 = vmax.f32 %v1206_v35, %v1207_v34 }
 0x1cd   :  { %v4406_v57 = vadd.f32 %v3543_v2, %v4192_v22 }
 0x1ce   :  { %v1517_v27 = vadd.f32 %v1516_v26, %v1515_v18  ;;  %v953_v21 = vpop.f32.mrf.mxu1 }
 0x1cf   :  { %v4372_v51 = vpop.eup %3650  ;;  %6536 = vst [vmem:[#allocation26_spill] sm:$0xff] %v4406_v57 }
 0x1d0   :  { %v1518_v36 = vrot.slane %v1517_v27, 4  ;;  %v4374_v56 = vpop.eup %3652  ;;  %v1524_v1 = vsel %vm1142_vm1, %v4372_v51, 0.0  ;;  %v3546_v41 = vpop.f32.mrf.mxu1 }
 0x1d1   :  { %v1525_v12 = vsel %vm1142_vm1, %v4374_v56, 0.0  ;;  %v4380_v7 = vpop.eup %3654 }
 0x1d2   :  { %v1519_v42 = vadd.f32 %v1518_v36, %v1517_v27  ;;  %v1526_v9 = vadd.f32 %v1525_v12, %v1524_v1  ;;  %v1527_v27 = vsel %vm1142_vm1, %v4380_v7, 0.0  ;;  %v4390_v31 = vpop.eup %3656  ;;  %v4397_v36 = vadd.f32 %v4192_v22, %v953_v21  ;;  %v963_v12 = vpop.f32.mrf.mxu1 }
 0x1d3   :  { %v4399_v40 = vpop.eup %3658 }
 0x1d4   :  { %v1520_v54 = vrot.slane %v1519_v42, 2  ;;  %v1528_v28 = vadd.f32 %v1527_v27, %v1526_v9  ;;  %6535 = vst [vmem:[#allocation25_spill] sm:$0xff] %v4397_v36  ;;  %v4403_v48 = vpop.eup %3660  ;;  %v1531_v0 = vsel %vm1142_vm1, %v4399_v40, 0.0  ;;  %v1211_v27 = vsel %vm1142_vm1, %v4406_v57, -inf  ;;  %v3549_v35 = vpop.f32.mrf.mxu1 }
 0x1d5   :  { %v4412_v1 = vpop.eup %3662  ;;  %v1533_v9 = vsel %vm1142_vm1, %v4403_v48, 0.0 }
 0x1d6   :  { %v1521_v58 = vadd.f32 %v1520_v54, %v1519_v42  ;;  %v1529_v42 = vsel %vm1142_vm1, %v4390_v31, 0.0  ;;  %v1204_v54 = vrot.slane %v1203_v32, 1  ;;  %v4416_v21 = vpop.eup %3664  ;;  %v1535_v2 = vsel %vm1142_vm1, %v4412_v1, 0.0 }
 0x1d7   :  { %v1530_v53 = vadd.f32 %v1529_v42, %v1528_v28  ;;  %v4425_v28 = vadd.f32 %v4192_v22, %v963_v12  ;;  %v4428_v42 = vadd.f32 %v3546_v41, %v4192_v22  ;;  %v973_v12 = vpop.f32.mrf.mxu1 }
 0x1d8   :  { %v1522_v3 = vrot.slane %v1521_v58, 1 }
 0x1d9   :  { %6537 = vst [vmem:[#allocation27_spill] sm:$0xff] %v4425_v28  ;;  %6538 = vst [vmem:[#allocation28_spill] sm:$0xff] %v4428_v42  ;;  %v1215_v41 = vsel %vm1142_vm1, %v4428_v42, -inf }
 0x1da   :  { %v1523_v18 = vadd.f32 %v1522_v3, %v1521_v58  ;;  %v1209_v58 = vsel %vm1142_vm1, %v4397_v36, -inf  ;;  %v1532_v3 = vadd.f32 %v1531_v0, %v1530_v53  ;;  %v1537_v53 = vsel %vm1142_vm1, %v4416_v21, 0.0 }
 0x1db   :  { %v1210_v10 = vmax.f32 %v1208_v49, %v1209_v58  ;;  %v1213_v58 = vsel %vm1142_vm1, %v4425_v28, -inf }
 0x1dc   :  { %v1671_v26 = vmul.f32 64.0, %v1523_v18  ;;  %v1534_v18 = vadd.f32 %v1533_v9, %v1532_v3 }
 0x1dd   :  { %v1212_v49 = vmax.f32 %v1210_v10, %v1211_v27 }
 0x1de   :  { %3666 = vrcp.f32 %v1671_v26  ;;  %v4420_v26 = vmax.f32 %v1203_v32, %v1204_v54  ;;  %v1536_v34 = vadd.f32 %v1535_v2, %v1534_v18 }
 0x1df   :  { %v1214_v9 = vmax.f32 %v1212_v49, %v1213_v58 }
 0x1e0   :  { %v1538_v32 = vadd.f32 %v1537_v53, %v1536_v34  ;;  %v1327_v54 = vsub.f32 %v4284_v44, %v4420_v26  ;;  %v1328_v0 = vsub.f32 %v4281_v43, %v4420_v26  ;;  %v4447_v34 = vadd.f32 %v4192_v22, %v973_v12 }
 0x1e1   :  { %v1329_v53 = vsub.f32 %v4292_v61, %v4420_v26  ;;  %v1330_v12 = vsub.f32 %v4296_v6, %v4420_v26 }
 0x1e2   :  { %v1539_v2 = vrot.slane %v1538_v32, 4  ;;  %v1407_v27 = vmul.f32 1.442695, %v1327_v54  ;;  %6539 = vst [vmem:[#allocation29_spill] sm:$0xff] %v4447_v34  ;;  %v1409_v44 = vmul.f32 1.442695, %v1328_v0 }
 0x1e3   :  { %v1217_v0 = vsel %vm1142_vm1, %v4447_v34, -inf  ;;  %v1411_v61 = vmul.f32 1.442695, %v1329_v53  ;;  %v1332_v53 = vsub.f32 %v4316_v17, %v4420_v26 }
 0x1e4   :  { %v1540_v54 = vadd.f32 %v1539_v2, %v1538_v32  ;;  %3668 = vpow2.f32 %v1407_v27 }
 0x1e5   :  { %3670 = vpow2.f32 %v1409_v44 }
 0x1e6   :  { %v1541_v32 = vrot.slane %v1540_v54, 2  ;;  %3672 = vpow2.f32 %v1411_v61 }
 0x1e8   :  { %v1542_v27 = vadd.f32 %v1541_v32, %v1540_v54  ;;  %v1334_v32 = vsub.f32 %v4348_v62, %v4420_v26 }
 0x1eb   :  { %v3667_v3 = vpop.eup %3666 }
 0x1ec   :  { %v4441_v10 = vmul.f32 %v3667_v3, %v4313_v23  ;;  %v4444_v18 = vmul.f32 %v3667_v3, %v4307_v16  ;;  %v4456_v23 = vadd.f32 %v3549_v35, %v4192_v22  ;;  %v1216_v16 = vmax.f32 %v1214_v9, %v1215_v41 }
 0x1ed   :  { %v4459_v49 = vmul.f32 %v3667_v3, %v4326_v33  ;;  %v4462_v58 = vmul.f32 %v3667_v3, %v4309_v20  ;;  %v4473_v20 = vmul.f32 %v3667_v3, %v4339_v52  ;;  %v4476_v35 = vmul.f32 %v3667_v3, %v4330_v39 }
 0x1ee   :  { %1819 = vrot.lane.b32.xlu1 %v4441_v10, %s3779_s3  ;;  %1815 = vrot.lane.b32.xlu0 %v4444_v18, %s3779_s3  ;;  %6540 = vst [vmem:[#allocation30_spill] sm:$0xff] %v4456_v23  ;;  %v1218_v33 = vmax.f32 %v1216_v16, %v1217_v0  ;;  %v1331_v41 = vsub.f32 %v4305_v15, %v4420_v26  ;;  %v1219_v44 = vsel %vm1142_vm1, %v4456_v23, -inf  ;;  %v1413_v9 = vmul.f32 1.442695, %v1330_v12  ;;  %v3552_v16 = vpop.f32.mrf.mxu1 }
 0x1ef   :  { %v4487_v2 = vmul.f32 %v3667_v3, %v4354_v5  ;;  %v4490_v39 = vmul.f32 %v3667_v3, %v4345_v60  ;;  %v1543_v12 = vrot.slane %v1542_v27, 1  ;;  %v1333_v60 = vsub.f32 %v4335_v47, %v4420_v26 }
 0x1f0   :  { %v1220_v52 = vmax.f32 %v1218_v33, %v1219_v44  ;;  %3674 = vpow2.f32 %v1413_v9  ;;  %v1415_v61 = vmul.f32 1.442695, %v1331_v41  ;;  %v1417_v3 = vmul.f32 1.442695, %v1332_v53  ;;  %v983_v33 = vpop.f32.mrf.mxu1 }
 0x1f1   :  { %v4498_v5 = vpop.eup %3668  ;;  %v1544_v44 = vadd.f32 %v1543_v12, %v1542_v27  ;;  %v1419_v9 = vmul.f32 1.442695, %v1333_v60  ;;  %v1421_v12 = vmul.f32 1.442695, %v1334_v32  ;;  %v4524_v60 = vadd.f32 %v4192_v22, %v983_v33 }
 0x1f2   :  { %1821 = vrot.lane.b32.xlu1 %v4459_v49, %s3779_s3  ;;  %1817 = vrot.lane.b32.xlu0 %v4462_v58, %s3779_s3  ;;  %v1221_v0 = vrot.slane %v1220_v52, 4  ;;  %3676 = vpow2.f32 %v1415_v61  ;;  %v4502_v54 = vpop.eup %3670  ;;  %v1545_v53 = vsel %vm1142_vm1, %v4498_v5, 0.0  ;;  %v3555_v17 = vpop.f32.mrf.mxu1 }
 0x1f3   :  { %3678 = vpow2.f32 %v1417_v3  ;;  %v1546_v61 = vsel %vm1142_vm1, %v4502_v54, 0.0  ;;  %v4514_v47 = vpop.eup %3672  ;;  %v1672_v27 = vmul.f32 64.0, %v1544_v44  ;;  %6542 = vst [vmem:[#allocation32_spill] sm:$0xff] %v4524_v60  ;;  %v1227_v33 = vsel %vm1142_vm1, %v4524_v60, -inf }
 0x1f4   :  { %v1222_v41 = vmax.f32 %v1220_v52, %v1221_v0  ;;  %v4521_v52 = vadd.f32 %v3552_v16, %v4192_v22  ;;  %v1547_v0 = vadd.f32 %v1546_v61, %v1545_v53  ;;  %3680 = vpow2.f32 %v1419_v9  ;;  %v993_v15 = vpop.f32.mrf.mxu1 }
 0x1f5   :  { %v1548_v3 = vsel %vm1142_vm1, %v4514_v47, 0.0  ;;  %3682 = vrcp.f32 %v1672_v27  ;;  %v4539_v9 = vadd.f32 %v4192_v22, %v993_v15 }
 0x1f6   :  { %1825 = vrot.lane.b32.xlu1 %v4473_v20, %s3779_s3  ;;  %1823 = vrot.lane.b32.xlu0 %v4476_v35, %s3779_s3  ;;  %v1223_v26 = vrot.slane %v1222_v41, 2  ;;  %6541 = vst [vmem:[#allocation31_spill] sm:$0xff] %v4521_v52  ;;  %v1228_v44 = vsel %vm1142_vm1, %v4521_v52, -inf  ;;  %v1549_v32 = vadd.f32 %v1548_v3, %v1547_v0  ;;  %3684 = vpow2.f32 %v1421_v12  ;;  %v3558_v6 = vpop.f32.mrf.mxu1 }
 0x1f7   :  { %6543 = vst [vmem:[#allocation33_spill] sm:$0xff] %v4539_v9  ;;  %v4550_v0 = vadd.f32 %v3555_v17, %v4192_v22  ;;  %v1230_v15 = vsel %vm1142_vm1, %v4539_v9, -inf }
 0x1f8   :  { %v1224_v16 = vmax.f32 %v1222_v41, %v1223_v26  ;;  %v1229_v26 = vmax.f32 %v1227_v33, %v1228_v44  ;;  %v1003_v43 = vpop.f32.mrf.mxu1 }
 0x1f9   :  { %6544 = vst [vmem:[#allocation34_spill] sm:$0xff] %v4550_v0  ;;  %v1232_v33 = vsel %vm1142_vm1, %v4550_v0, -inf }
 0x1fa   :  { %1829 = vrot.lane.b32.xlu1 %v4487_v2, %s3779_s3  ;;  %1827 = vrot.lane.b32.xlu0 %v4490_v39, %s3779_s3  ;;  %v1225_v41 = vrot.slane %v1224_v16, 1  ;;  %v1231_v17 = vmax.f32 %v1229_v26, %v1230_v15  ;;  %v3561_v4 = vpop.f32.mrf.mxu1 }
 0x1fc   :  { %v4562_v44 = vmax.f32 %v1224_v16, %v1225_v41  ;;  %v1013_v15 = vpop.f32.mrf.mxu1 }
 0x1fd   :  { %v4528_v62 = vpop.eup %3674 }
 0x1fe   :  { %2242 = vrot.lane.b32.xlu1 %v4462_v58, %s3780_s23  ;;  %2240 = vrot.lane.b32.xlu0 %v4444_v18, %s3780_s23  ;;  %v1550_v53 = vsel %vm1142_vm1, %v4528_v62, 0.0 }
 0x1ff   :  { %v4543_v61 = vpop.eup %3676  ;;  %v1551_v27 = vadd.f32 %v1550_v53, %v1549_v32  ;;  %v4567_v53 = vadd.f32 %v4192_v22, %v1003_v43  ;;  %v1335_v43 = vsub.f32 %v4386_v13, %v4562_v44 }
 0x200   :  { %v1552_v12 = vsel %vm1142_vm1, %v4543_v61, 0.0  ;;  %v4556_v3 = vpop.eup %3678 }
 0x201   :  { %v1553_v32 = vadd.f32 %v1552_v12, %v1551_v27  ;;  %6545 = vst [vmem:[#allocation35_spill] sm:$0xff] %v4567_v53  ;;  %v1554_v14 = vsel %vm1142_vm1, %v4556_v3, 0.0  ;;  %v4571_v19 = vpop.eup %3680  ;;  %v1234_v27 = vsel %vm1142_vm1, %v4567_v53, -inf }
 0x202   :  { %2246 = vrot.lane.b32.xlu1 %v4459_v49, %s3780_s23  ;;  %2244 = vrot.lane.b32.xlu0 %v4441_v10, %s3780_s23  ;;  %v4582_v41 = vpop.eup %3682  ;;  %v1556_v26 = vsel %vm1142_vm1, %v4571_v19, 0.0 }
 0x203   :  { %v1555_v16 = vadd.f32 %v1554_v14, %v1553_v32  ;;  %v4600_v12 = vmul.f32 %v4582_v41, %v4374_v56  ;;  %v1423_v32 = vmul.f32 1.442695, %v1335_v43 }
 0x205   :  { %3686 = vpow2.f32 %v1423_v32 }
 0x206   :  { %2250 = vrot.lane.b32.xlu1 %v4473_v20, %s3780_s23  ;;  %2248 = vrot.lane.b32.xlu0 %v4476_v35, %s3780_s23 }
 0x20a   :  { %2254 = vrot.lane.b32.xlu1 %v4487_v2, %s3780_s23  ;;  %2252 = vrot.lane.b32.xlu0 %v4490_v39, %s3780_s23 }
 0x20e   :  { %2667 = vrot.lane.b32.xlu1 %v4462_v58, %s3781_s24  ;;  %2665 = vrot.lane.b32.xlu0 %v4444_v18, %s3781_s24  ;;  %v4576_v18 = vadd.f32 %v3558_v6, %v4192_v22  ;;  %v1233_v58 = vmax.f32 %v1231_v17, %v1232_v33  ;;  %v1336_v6 = vsub.f32 %v4383_v11, %v4562_v44 }
 0x20f   :  { %v1557_v17 = vadd.f32 %v1556_v26, %v1555_v16  ;;  %v4603_v33 = vadd.f32 %v4192_v22, %v1013_v15  ;;  %v1338_v26 = vsub.f32 %v4406_v57, %v4562_v44 }
 0x210   :  { %6546 = vst [vmem:[#allocation36_spill] sm:$0xff] %v4576_v18  ;;  %v1236_v14 = vsel %vm1142_vm1, %v4576_v18, -inf  ;;  %v1425_v13 = vmul.f32 1.442695, %v1336_v6  ;;  %v1339_v6 = vsub.f32 %v4425_v28, %v4562_v44 }
 0x211   :  { %6547 = vst [vmem:[#allocation37_spill] sm:$0xff] %v4603_v33  ;;  %v1238_v43 = vsel %vm1142_vm1, %v4603_v33, -inf  ;;  %v1429_v15 = vmul.f32 1.442695, %v1338_v26 }
 0x212   :  { %2671 = vrot.lane.b32.xlu1 %v4459_v49, %s3781_s24  ;;  %2669 = vrot.lane.b32.xlu0 %v4441_v10, %s3781_s24  ;;  %v4590_v49 = vpop.eup %3684  ;;  %v1235_v10 = vmax.f32 %v1233_v58, %v1234_v27  ;;  %v4618_v58 = vmul.f32 %v4582_v41, %v4390_v31  ;;  %3688 = vpow2.f32 %v1425_v13  ;;  %v4638_v13 = vmul.f32 %v4582_v41, %v4372_v51 }
 0x213   :  { %v1558_v11 = vsel %vm1142_vm1, %v4590_v49, 0.0  ;;  %v4652_v51 = vmul.f32 %v4582_v41, %v4380_v7  ;;  %v1431_v32 = vmul.f32 1.442695, %v1339_v6  ;;  %v4664_v7 = vmul.f32 %v4582_v41, %v4399_v40 }
 0x214   :  { %v1237_v56 = vmax.f32 %v1235_v10, %v1236_v14  ;;  %v1559_v16 = vadd.f32 %v1558_v11, %v1557_v17  ;;  %v4632_v11 = vmul.f32 %v4582_v41, %v4403_v48  ;;  %v4646_v48 = vmul.f32 %v4582_v41, %v4416_v21  ;;  %v3564_v17 = vpop.f32.mrf.mxu1 }
 0x215   :  { %v1340_v10 = vsub.f32 %v4428_v42, %v4562_v44  ;;  %v1341_v21 = vsub.f32 %v4447_v34, %v4562_v44  ;;  %v4676_v40 = vmul.f32 %v4582_v41, %v4412_v1 }
 0x216   :  { %2677 = vrot.lane.b32.xlu1 %v4490_v39, %s3781_s24  ;;  %2673 = vrot.lane.b32.xlu0 %v4476_v35, %s3781_s24  ;;  %v1337_v39 = vsub.f32 %v4397_v36, %v4562_v44  ;;  %v4612_v35 = vadd.f32 %v3561_v4, %v4192_v22  ;;  %v1239_v31 = vmax.f32 %v1237_v56, %v1238_v43  ;;  %v1023_v26 = vpop.f32.mrf.mxu1 }
 0x217   :  { %v1433_v43 = vmul.f32 1.442695, %v1340_v10 }
 0x218   :  { %6548 = vst [vmem:[#allocation38_spill] sm:$0xff] %v4612_v35  ;;  %v1427_v27 = vmul.f32 1.442695, %v1337_v39  ;;  %v1240_v4 = vsel %vm1142_vm1, %v4612_v35, -inf }
 0x21a   :  { %1833 = vrot.lane.b32.xlu1 %v4600_v12, %s3779_s3  ;;  %2675 = vrot.lane.b32.xlu0 %v4473_v20, %s3781_s24  ;;  %v1560_v20 = vrot.slane %v1559_v16, 4  ;;  %3690 = vpow2.f32 %v1427_v27 }
 0x21b   :  { %3692 = vpow2.f32 %v1429_v15  ;;  %v3567_v15 = vpop.f32.mrf.mxu1 }
 0x21c   :  { %v1561_v14 = vadd.f32 %v1560_v20, %v1559_v16  ;;  %v4660_v16 = vpop.eup %3686  ;;  %3694 = vpow2.f32 %v1431_v32 }
 0x21d   :  { %3696 = vpow2.f32 %v1433_v43  ;;  %v1566_v10 = vsel %vm1142_vm1, %v4660_v16, 0.0  ;;  %v1033_v41 = vpop.f32.mrf.mxu1 }
 0x21e   :  { %1837 = vrot.lane.b32.xlu1 %v4618_v58, %s3779_s3  ;;  %2679 = vrot.lane.b32.xlu0 %v4487_v2, %s3781_s24  ;;  %v1241_v2 = vmax.f32 %v1239_v31, %v1240_v4  ;;  %v1562_v56 = vrot.slane %v1561_v14, 2  ;;  %v1342_v4 = vsub.f32 %v4456_v23, %v4562_v44  ;;  %v1435_v31 = vmul.f32 1.442695, %v1341_v21 }
 0x21f   :  { %v4666_v27 = vpop.eup %3688 }
 0x220   :  { %v1242_v39 = vrot.slane %v1241_v2, 4  ;;  %v1563_v6 = vadd.f32 %v1562_v56, %v1561_v14  ;;  %v1567_v32 = vsel %vm1142_vm1, %v4666_v27, 0.0  ;;  %3698 = vpow2.f32 %v1435_v31  ;;  %v3570_v31 = vpop.f32.mrf.mxu1 }
 0x221   :  { %v1568_v14 = vadd.f32 %v1567_v32, %v1566_v10  ;;  %v1437_v1 = vmul.f32 1.442695, %v1342_v4  ;;  %v4697_v10 = vadd.f32 %v3564_v17, %v4192_v22  ;;  %v4700_v4 = vadd.f32 %v4192_v22, %v1023_v26 }
 0x222   :  { %1841 = vrot.lane.b32.xlu1 %v4632_v11, %s3779_s3  ;;  %1831 = vrot.lane.b32.xlu0 %v4638_v13, %s3779_s3  ;;  %v1243_v20 = vmax.f32 %v1241_v2, %v1242_v39  ;;  %v1564_v2 = vrot.slane %v1563_v6, 1 }
 0x223   :  { %3700 = vpow2.f32 %v1437_v1  ;;  %6549 = vst [vmem:[#allocation39_spill] sm:$0xff] %v4697_v10  ;;  %6550 = vst [vmem:[#allocation40_spill] sm:$0xff] %v4700_v4  ;;  %v1249_v17 = vsel %vm1142_vm1, %v4697_v10, -inf  ;;  %v1248_v26 = vsel %vm1142_vm1, %v4700_v4, -inf }
 0x224   :  { %v1244_v44 = vrot.slane %v1243_v20, 2  ;;  %v1565_v43 = vadd.f32 %v1564_v2, %v1563_v6  ;;  %v4715_v2 = vadd.f32 %v4192_v22, %v1033_v41  ;;  %v4728_v41 = vadd.f32 %v3567_v15, %v4192_v22 }
 0x226   :  { %1845 = vrot.lane.b32.xlu1 %v4646_v48, %s3779_s3  ;;  %1835 = vrot.lane.b32.xlu0 %v4652_v51, %s3779_s3  ;;  %v1245_v56 = vmax.f32 %v1243_v20, %v1244_v44  ;;  %v1673_v6 = vmul.f32 64.0, %v1565_v43  ;;  %6551 = vst [vmem:[#allocation41_spill] sm:$0xff] %v4715_v2  ;;  %v1250_v43 = vmax.f32 %v1248_v26, %v1249_v17  ;;  %6552 = vst [vmem:[#allocation42_spill] sm:$0xff] %v4728_v41 }
 0x227   :  { %v4682_v34 = vpop.eup %3690  ;;  %v1251_v28 = vsel %vm1142_vm1, %v4715_v2, -inf }
 0x228   :  { %v1569_v21 = vsel %vm1142_vm1, %v4682_v34, 0.0  ;;  %v4690_v39 = vpop.eup %3692  ;;  %v1246_v20 = vrot.slane %v1245_v56, 1  ;;  %3702 = vrcp.f32 %v1673_v6  ;;  %v1253_v6 = vsel %vm1142_vm1, %v4728_v41, -inf }
 0x229   :  { %v1570_v23 = vadd.f32 %v1569_v21, %v1568_v14  ;;  %v1571_v32 = vsel %vm1142_vm1, %v4690_v39, 0.0  ;;  %v4704_v42 = vpop.eup %3694  ;;  %v1043_v14 = vpop.f32.mrf.mxu1 }
 0x22a   :  { %2258 = vrot.lane.b32.xlu1 %v4600_v12, %s3780_s23  ;;  %1839 = vrot.lane.b32.xlu0 %v4664_v7, %s3779_s3  ;;  %v1573_v1 = vsel %vm1142_vm1, %v4704_v42, 0.0  ;;  %v4719_v21 = vpop.eup %3696 }
 0x22b   :  { %v1572_v44 = vadd.f32 %v1571_v32, %v1570_v23  ;;  %v4725_v23 = vmax.f32 %v1245_v56, %v1246_v20  ;;  %v3573_v57 = vpop.f32.mrf.mxu1  ;;  %v1575_v36 = vsel %vm1142_vm1, %v4719_v21, 0.0 }
 0x22d   :  { %v1574_v32 = vadd.f32 %v1573_v1, %v1572_v44  ;;  %v4734_v45 = vpop.eup %3698  ;;  %v1343_v15 = vsub.f32 %v4524_v60, %v4725_v23  ;;  %v4747_v44 = vadd.f32 %v4192_v22, %v1043_v14  ;;  %v1053_v17 = vpop.f32.mrf.mxu1 }
 0x22e   :  { %2262 = vrot.lane.b32.xlu1 %v4618_v58, %s3780_s23  ;;  %1843 = vrot.lane.b32.xlu0 %v4676_v40, %s3779_s3  ;;  %v1577_v20 = vsel %vm1142_vm1, %v4734_v45, 0.0 }
 0x22f   :  { %v1576_v56 = vadd.f32 %v1575_v36, %v1574_v32  ;;  %6553 = vst [vmem:[#allocation43_spill] sm:$0xff] %v4747_v44  ;;  %v4758_v36 = vadd.f32 %v3570_v31, %v4192_v22  ;;  %v1255_v14 = vsel %vm1142_vm1, %v4747_v44, -inf  ;;  %v4762_v32 = vpop.f32.mrf.mxu1  ;;  %v4773_v31 = vadd.f32 %v4192_v22, %v1053_v17 }
 0x230   :  { %v4751_v26 = vpop.eup %3700 }
 0x231   :  { %6554 = vst [vmem:[#allocation44_spill] sm:$0xff] %v4758_v36  ;;  %v1578_v1 = vadd.f32 %v1577_v20, %v1576_v56  ;;  %v1579_v60 = vsel %vm1142_vm1, %v4751_v26, 0.0  ;;  %6555 = vst [vmem:[#allocation45_spill] sm:$0xff] %v4773_v31  ;;  %v4777_v20 = vpop.f32.mrf.mxu1  ;;  %v1259_v17 = vsel %vm1142_vm1, %v4773_v31, -inf }
 0x232   :  { %2266 = vrot.lane.b32.xlu1 %v4632_v11, %s3780_s23  ;;  %2256 = vrot.lane.b32.xlu0 %v4638_v13, %s3780_s23 }
 0x235   :  { %v3703_v56 = vpop.eup %3702 }
 0x236   :  { %2270 = vrot.lane.b32.xlu1 %v4646_v48, %s3780_s23  ;;  %2260 = vrot.lane.b32.xlu0 %v4652_v51, %s3780_s23 }
 0x23a   :  { %2683 = vrot.lane.b32.xlu1 %v4600_v12, %s3781_s24  ;;  %2264 = vrot.lane.b32.xlu0 %v4664_v7, %s3780_s23  ;;  %v1252_v12 = vmax.f32 %v1250_v43, %v1251_v28  ;;  %v1439_v43 = vmul.f32 1.442695, %v1343_v15  ;;  %v1257_v15 = vsel %vm1142_vm1, %v4758_v36, -inf }
 0x23c   :  { %v1254_v28 = vmax.f32 %v1252_v12, %v1253_v6  ;;  %v1580_v12 = vadd.f32 %v1579_v60, %v1578_v1  ;;  %3704 = vpow2.f32 %v1439_v43  ;;  %v1346_v6 = vsub.f32 %v4550_v0, %v4725_v23  ;;  %v4795_v1 = vpop.f32.mrf.mxu1 }
 0x23e   :  { %2685 = vrot.lane.b32.xlu1 %v4652_v51, %s3781_s24  ;;  %2268 = vrot.lane.b32.xlu0 %v4676_v40, %s3780_s23  ;;  %v1344_v51 = vsub.f32 %v4521_v52, %v4725_v23 }
 0x240   :  { %v1441_v52 = vmul.f32 1.442695, %v1344_v51  ;;  %v4791_v51 = vmul.f32 %v3703_v56, %v4502_v54 }
 0x242   :  { %2689 = vrot.lane.b32.xlu1 %v4664_v7, %s3781_s24  ;;  %2681 = vrot.lane.b32.xlu0 %v4638_v13, %s3781_s24  ;;  %v1345_v7 = vsub.f32 %v4539_v9, %v4725_v23  ;;  %v1256_v13 = vmax.f32 %v1254_v28, %v1255_v14  ;;  %3706 = vpow2.f32 %v1441_v52  ;;  %v1581_v28 = vrot.slane %v1580_v12, 4  ;;  %v1073_v14 = vpop.f32.mrf.mxu1 }
 0x243   :  { %v1347_v52 = vsub.f32 %v4567_v53, %v4725_v23 }
 0x244   :  { %v1258_v60 = vmax.f32 %v1256_v13, %v1257_v15  ;;  %v1582_v43 = vadd.f32 %v1581_v28, %v1580_v12  ;;  %v4821_v12 = vmul.f32 %v3703_v56, %v4556_v3 }
 0x245   :  { %v1447_v13 = vmul.f32 1.442695, %v1347_v52  ;;  %v1350_v52 = vsub.f32 %v4612_v35, %v4725_v23  ;;  %v4865_v35 = vld [vmem:[%s6378_s4] ss:$0 sm:$0xff]  ;;  %s3782_s4 = smov 104  }
 0x246   :  { %2691 = vrot.lane.b32.xlu1 %v4632_v11, %s3781_s24  ;;  %2687 = vrot.lane.b32.xlu0 %v4618_v58, %s3781_s24  ;;  %v1443_v11 = vmul.f32 1.442695, %v1345_v7  ;;  %v4784_v58 = vadd.f32 %v3573_v57, %v4192_v22  ;;  %v1445_v22 = vmul.f32 1.442695, %v1346_v6  ;;  %v1260_v54 = vmax.f32 %v1258_v60, %v1259_v17  ;;  %v4825_v60 = vpop.f32.mrf.mxu1 }
 0x247   :  { %v4812_v7 = vmul.f32 %v3703_v56, %v4514_v47  ;;  %v1583_v6 = vrot.slane %v1582_v43, 2  ;;  %v4828_v17 = vmul.f32 %v3703_v56, %v4543_v61 }
 0x248   :  { %6556 = vst [vmem:[#allocation46_spill] sm:$0xff] %v4784_v58  ;;  %3708 = vpow2.f32 %v1443_v11  ;;  %v1261_v57 = vsel %vm1142_vm1, %v4784_v58, -inf  ;;  %v1083_v61 = vpop.f32.mrf.mxu1 }
 0x249   :  { %3710 = vpow2.f32 %v1445_v22  ;;  %v1262_v15 = vmax.f32 %v1260_v54, %v1261_v57  ;;  %v4823_v11 = vpop.eup %3704  ;;  %v4839_v57 = vmul.f32 %v3703_v56, %v4590_v49  ;;  %v1584_v54 = vadd.f32 %v1583_v6, %v1582_v43 }
 0x24a   :  { %2695 = vrot.lane.b32.xlu1 %v4646_v48, %s3781_s24  ;;  %2693 = vrot.lane.b32.xlu0 %v4676_v40, %s3781_s24  ;;  %v4798_v48 = vmul.f32 %v3703_v56, %v4498_v5  ;;  %v4807_v40 = vmul.f32 %v3703_v56, %v4528_v62  ;;  %v1348_v5 = vsub.f32 %v4576_v18, %v4725_v23  ;;  %3712 = vpow2.f32 %v1447_v13 }
 0x24b   :  { %v1349_v62 = vsub.f32 %v4603_v33, %v4725_v23  ;;  %v1263_v22 = vrot.slane %v1262_v15, 4  ;;  %v1587_v13 = vsel %vm1142_vm1, %v4823_v11, 0.0  ;;  %v1585_v43 = vrot.slane %v1584_v54, 1 }
 0x24c   :  { %v1449_v47 = vmul.f32 1.442695, %v1348_v5  ;;  %v4842_v5 = vmul.f32 %v3703_v56, %v4571_v19  ;;  %v1453_v19 = vmul.f32 1.442695, %v1350_v52  ;;  %v4854_v56 = vpop.f32.mrf.mxu1  ;;  %v4873_v52 = vadd.f32 %v4865_v35, %v4777_v20 }
 0x24d   :  { %v1451_v3 = vmul.f32 1.442695, %v1349_v62  ;;  %v1264_v49 = vmax.f32 %v1262_v15, %v1263_v22  ;;  %v4869_v15 = vadd.f32 %v4865_v35, %v4762_v32 }
 0x24e   :  { %1849 = vrot.lane.b32.xlu1 %v4791_v51, %s3779_s3  ;;  %1847 = vrot.lane.b32.xlu0 %v4798_v48, %s3779_s3  ;;  %3714 = vpow2.f32 %v1449_v47  ;;  %6558 = vst [vmem:[#allocation48_spill] sm:$0xff] %v4873_v52  ;;  %v1093_v18 = vpop.f32.mrf.mxu1  ;;  %v1269_v0 = vsel %vm1142_vm1, %v4873_v52, -inf }
 0x24f   :  { %v4830_v28 = vpop.eup %3706  ;;  %3716 = vpow2.f32 %v1451_v3  ;;  %6557 = vst [vmem:[#allocation47_spill] sm:$0xff] %v4869_v15  ;;  %v1265_v3 = vrot.slane %v1264_v49, 2  ;;  %v1270_v20 = vsel %vm1142_vm1, %v4869_v15, -inf }
 0x250   :  { %v1588_v23 = vsel %vm1142_vm1, %v4830_v28, 0.0  ;;  %3718 = vpow2.f32 %v1453_v19  ;;  %v3588_v46 = vpop.f32.mrf.mxu1  ;;  %v1271_v63 = vmax.f32 %v1269_v0, %v1270_v20 }
 0x251   :  { %v1589_v62 = vadd.f32 %v1588_v23, %v1587_v13  ;;  %v1586_v23 = vadd.f32 %v1585_v43, %v1584_v54  ;;  %v1266_v54 = vmax.f32 %v1264_v49, %v1265_v3  ;;  %v4894_v43 = vadd.f32 %v4865_v35, %v1073_v14 }
 0x252   :  { %1853 = vrot.lane.b32.xlu1 %v4807_v40, %s3779_s3  ;;  %1851 = vrot.lane.b32.xlu0 %v4812_v7, %s3779_s3  ;;  %v4908_v14 = vadd.f32 %v4865_v35, %v4795_v1  ;;  %v1103_v38 = vpop.f32.mrf.mxu1 }
 0x253   :  { %6559 = vst [vmem:[#allocation49_spill] sm:$0xff] %v4894_v43  ;;  %v1267_v49 = vrot.slane %v1266_v54, 1 }
 0x254   :  { %6561 = vst [vmem:[#allocation51_spill] sm:$0xff] %v4908_v14 }
 0x255   :  { %v4848_v33 = vpop.eup %3708 }
 0x256   :  { %1857 = vrot.lane.b32.xlu1 %v4821_v12, %s3779_s3  ;;  %1855 = vrot.lane.b32.xlu0 %v4828_v17, %s3779_s3  ;;  %v1590_v6 = vsel %vm1142_vm1, %v4848_v33, 0.0  ;;  %v4858_v47 = vpop.eup %3710 }
 0x257   :  { %v1591_v53 = vadd.f32 %v1590_v6, %v1589_v62  ;;  %v1592_v32 = vsel %vm1142_vm1, %v4858_v47, 0.0  ;;  %v4883_v9 = vpop.eup %3712  ;;  %v1674_v6 = vmul.f32 64.0, %v1586_v23 }
 0x258   :  { %v1594_v59 = vsel %vm1142_vm1, %v4883_v9, 0.0 }
 0x259   :  { %v1593_v8 = vadd.f32 %v1592_v32, %v1591_v53  ;;  %v1272_v53 = vsel %vm1142_vm1, %v4894_v43, -inf  ;;  %3720 = vrcp.f32 %v1674_v6 }
 0x25a   :  { %1861 = vrot.lane.b32.xlu1 %v4839_v57, %s3779_s3  ;;  %1859 = vrot.lane.b32.xlu0 %v4842_v5, %s3779_s3  ;;  %v1273_v1 = vmax.f32 %v1271_v63, %v1272_v53  ;;  %v3591_v63 = vpop.f32.mrf.mxu1 }
 0x25b   :  { %v4902_v37 = vpop.eup %3714  ;;  %v1595_v32 = vadd.f32 %v1594_v59, %v1593_v8  ;;  %v4931_v59 = vadd.f32 %v4865_v35, %v1083_v61 }
 0x25c   :  { %v1596_v0 = vsel %vm1142_vm1, %v4902_v37, 0.0  ;;  %v4920_v20 = vpop.eup %3716 }
 0x25d   :  { %6564 = vst [vmem:[#allocation54_spill] sm:$0xff] %v4931_v59  ;;  %v1598_v29 = vsel %vm1142_vm1, %v4920_v20, 0.0  ;;  %v4939_v53 = vpop.eup %3718 }
 0x25e   :  { %2274 = vrot.lane.b32.xlu1 %v4791_v51, %s3780_s23  ;;  %2272 = vrot.lane.b32.xlu0 %v4798_v48, %s3780_s23 }
 0x260   :  { %v4877_v22 = vpop.permute.xlu1 %1819  ;;  %v4879_v13 = vpop.permute.xlu0 %1815 }
 0x262   :  { %2278 = vrot.lane.b32.xlu1 %v4807_v40, %s3780_s23  ;;  %2276 = vrot.lane.b32.xlu0 %v4812_v7, %s3780_s23 }
 0x264   :  { %v4896_v62 = vpop.permute.xlu1 %1821  ;;  %v4898_v19 = vpop.permute.xlu0 %1817 }
 0x265   :  { %6560 = vst [vmem:[#allocation50_spill] sm:$0xff] %v4896_v62  ;;  %v4926_v62 = vmax.f32 %v1266_v54, %v1267_v49  ;;  %v4945_v54 = vadd.f32 %v4865_v35, %v4825_v60  ;;  %v4948_v49 = vadd.f32 %v4865_v35, %v3588_v46  ;;  %v1600_v46 = vsel %vm1142_vm1, %v4939_v53, 0.0 }
 0x266   :  { %2282 = vrot.lane.b32.xlu1 %v4821_v12, %s3780_s23  ;;  %2280 = vrot.lane.b32.xlu0 %v4828_v17, %s3780_s23 }
 0x267   :  { %6567 = vst [vmem:[#allocation57_spill] sm:$0xff] %v4945_v54  ;;  %6568 = vst [vmem:[#allocation58_spill] sm:$0xff] %v4948_v49  ;;  %v1351_v60 = vsub.f32 %v4700_v4, %v4926_v62 }
 0x268   :  { %v4914_v3 = vpop.permute.xlu1 %1825  ;;  %v4916_v23 = vpop.permute.xlu0 %1823 }
 0x269   :  { %6562 = vst [vmem:[#allocation52_spill] sm:$0xff] %v4914_v3  ;;  %6563 = vst [vmem:[#allocation53_spill] sm:$0xff] %v4916_v23  ;;  %v1274_v3 = vsel %vm1142_vm1, %v4908_v14, -inf  ;;  %v1597_v23 = vadd.f32 %v1596_v0, %v1595_v32  ;;  %v1276_v32 = vsel %vm1142_vm1, %v4931_v59, -inf  ;;  %v4955_v0 = vadd.f32 %v4865_v35, %v1103_v38 }
 0x26a   :  { %2286 = vrot.lane.b32.xlu1 %v4839_v57, %s3780_s23  ;;  %2284 = vrot.lane.b32.xlu0 %v4842_v5, %s3780_s23  ;;  %v1275_v61 = vmax.f32 %v1273_v1, %v1274_v3  ;;  %v1113_v3 = vpop.f32.mrf.mxu1  ;;  %v1278_v38 = vsel %vm1142_vm1, %v4945_v54, -inf }
 0x26b   :  { %6569 = vst [vmem:[#allocation59_spill] sm:$0xff] %v4955_v0  ;;  %v4981_v4 = vadd.f32 %v4865_v35, %v1113_v3 }
 0x26c   :  { %v4933_v8 = vpop.permute.xlu1 %1829  ;;  %v4935_v6 = vpop.permute.xlu0 %1827  ;;  %v1277_v1 = vmax.f32 %v1275_v61, %v1276_v32  ;;  %v1455_v32 = vmul.f32 1.442695, %v1351_v60  ;;  %v5000_v60 = vadd.f32 %v4865_v35, %v3591_v63  ;;  %v1354_v63 = vsub.f32 %v4728_v41, %v4926_v62 }
 0x26d   :  { %6565 = vst [vmem:[#allocation55_spill] sm:$0xff] %v4933_v8  ;;  %6566 = vst [vmem:[#allocation56_spill] sm:$0xff] %v4935_v6  ;;  %v1599_v6 = vadd.f32 %v1598_v29, %v1597_v23  ;;  %v1291_v29 = vsel %vm1142_vm1, %v4948_v49, -inf  ;;  %v1290_v23 = vsel %vm1142_vm1, %v4955_v0, -inf  ;;  %v3594_v50 = vpop.f32.mrf.mxu1 }
 0x26e   :  { %2699 = vrot.lane.b32.xlu1 %v4791_v51, %s3781_s24  ;;  %2697 = vrot.lane.b32.xlu0 %v4798_v48, %s3781_s24  ;;  %v1352_v48 = vsub.f32 %v4697_v10, %v4926_v62  ;;  %6573 = vst [vmem:[#allocation63_spill] sm:$0xff] %v4981_v4  ;;  %v1279_v3 = vmax.f32 %v1277_v1, %v1278_v38  ;;  %6577 = vst [vmem:[#allocation67_spill] sm:$0xff] %v5000_v60  ;;  %3722 = vpow2.f32 %v1455_v32 }
 0x26f   :  { %v1601_v61 = vadd.f32 %v1600_v46, %v1599_v6  ;;  %v1292_v6 = vmax.f32 %v1290_v23, %v1291_v29  ;;  %v1293_v46 = vsel %vm1142_vm1, %v4981_v4, -inf  ;;  %v1123_v1 = vpop.f32.mrf.mxu1 }
 0x270   :  { %v4957_v8 = vpop.permute.xlu1 %2242  ;;  %v4959_v51 = vpop.permute.xlu0 %2240  ;;  %v1457_v55 = vmul.f32 1.442695, %v1352_v48  ;;  %v5025_v32 = vadd.f32 %v4865_v35, %v1123_v1 }
 0x271   :  { %6570 = vst [vmem:[#allocation60_spill] sm:$0xff] %v4957_v8  ;;  %6571 = vst [vmem:[#allocation61_spill] sm:$0xff] %v4959_v51  ;;  %v4972_v51 = vadd.f32 %v4865_v35, %v1093_v18  ;;  %v4987_v18 = vpop.eup %3720  ;;  %v1353_v8 = vsub.f32 %v4715_v2, %v4926_v62  ;;  %v1602_v38 = vrot.slane %v1601_v61, 4  ;;  %v1294_v2 = vmax.f32 %v1292_v6, %v1293_v46  ;;  %v3597_v6 = vpop.f32.mrf.mxu1 }
 0x272   :  { %2705 = vrot.lane.b32.xlu1 %v4828_v17, %s3781_s24  ;;  %2701 = vrot.lane.b32.xlu0 %v4812_v7, %s3781_s24  ;;  %v4993_v7 = vadd.f32 %v4865_v35, %v4854_v56  ;;  %3724 = vpow2.f32 %v1457_v55  ;;  %6580 = vst [vmem:[#allocation70_spill] sm:$0xff] %v5025_v32  ;;  %v5031_v55 = vmul.f32 %v4987_v18, %v4690_v39 }
 0x273   :  { %6572 = vst [vmem:[#allocation62_spill] sm:$0xff] %v4972_v51  ;;  %v1459_v29 = vmul.f32 1.442695, %v1353_v8  ;;  %v1603_v8 = vadd.f32 %v1602_v38, %v1601_v61  ;;  %v5042_v39 = vadd.f32 %v4865_v35, %v3594_v50  ;;  %v1297_v61 = vsel %vm1142_vm1, %v5025_v32, -inf }
 0x274   :  { %v4983_v17 = vpop.permute.xlu1 %2246  ;;  %v4985_v10 = vpop.permute.xlu0 %2244  ;;  %6576 = vst [vmem:[#allocation66_spill] sm:$0xff] %v4993_v7  ;;  %v5058_v50 = vmul.f32 %v4987_v18, %v4660_v16  ;;  %v5075_v16 = vmul.f32 %v4987_v18, %v4751_v26  ;;  %v1358_v26 = vsub.f32 %v4784_v58, %v4926_v62 }
 0x275   :  { %6574 = vst [vmem:[#allocation64_spill] sm:$0xff] %v4983_v17  ;;  %6575 = vst [vmem:[#allocation65_spill] sm:$0xff] %v4985_v10  ;;  %v1280_v17 = vsel %vm1142_vm1, %v4972_v51, -inf  ;;  %3726 = vpow2.f32 %v1459_v29  ;;  %v1604_v29 = vrot.slane %v1603_v8, 2 }
 0x276   :  { %2709 = vrot.lane.b32.xlu1 %v4842_v5, %s3781_s24  ;;  %2703 = vrot.lane.b32.xlu0 %v4807_v40, %s3781_s24  ;;  %v5012_v5 = vmul.f32 %v4987_v18, %v4666_v27  ;;  %v1282_v40 = vsel %vm1142_vm1, %v4993_v7, -inf  ;;  %v1281_v23 = vmax.f32 %v1279_v3, %v1280_v17  ;;  %v1295_v27 = vsel %vm1142_vm1, %v5000_v60, -inf  ;;  %6583 = vst [vmem:[#allocation73_spill] sm:$0xff] %v5042_v39 }
 0x277   :  { %v1355_v17 = vsub.f32 %v4747_v44, %v4926_v62  ;;  %v1461_v3 = vmul.f32 1.442695, %v1354_v63  ;;  %v1296_v1 = vmax.f32 %v1294_v2, %v1295_v27  ;;  %v5050_v63 = vmul.f32 %v4987_v18, %v4719_v21 }
 0x278   :  { %v5006_v48 = vpop.permute.xlu1 %2250  ;;  %v5008_v56 = vpop.permute.xlu0 %2248  ;;  %v1357_v21 = vsub.f32 %v4773_v31, %v4926_v62  ;;  %v5083_v31 = vmul.f32 %v4987_v18, %v4682_v34  ;;  %v1469_v58 = vmul.f32 1.442695, %v1358_v26 }
 0x279   :  { %6578 = vst [vmem:[#allocation68_spill] sm:$0xff] %v5006_v48  ;;  %6579 = vst [vmem:[#allocation69_spill] sm:$0xff] %v5008_v56  ;;  %3728 = vpow2.f32 %v1461_v3  ;;  %v1463_v2 = vmul.f32 1.442695, %v1355_v17  ;;  %v1298_v44 = vmax.f32 %v1296_v1, %v1297_v61  ;;  %v1299_v17 = vsel %vm1142_vm1, %v5042_v39, -inf }
 0x27a   :  { %1865 = vrot.lane.b32.xlu1 %v5012_v5, %s3779_s3  ;;  %2707 = vrot.lane.b32.xlu0 %v4821_v12, %s3781_s24  ;;  %v1283_v12 = vmax.f32 %v1281_v23, %v1282_v40  ;;  %v1356_v40 = vsub.f32 %v4758_v36, %v4926_v62  ;;  %v1133_v23 = vpop.f32.mrf.mxu1  ;;  %v5104_v62 = vmul.f32 %v4987_v18, %v4704_v42 }
 0x27b   :  { %v5069_v3 = vadd.f32 %v4865_v35, %v1133_v23  ;;  %3730 = vpow2.f32 %v1463_v2  ;;  %v1467_v23 = vmul.f32 1.442695, %v1357_v21 }
 0x27c   :  { %v5027_v41 = vpop.permute.xlu1 %2254  ;;  %v5035_v46 = vpop.permute.xlu0 %2252  ;;  %v1284_v27 = vrot.slane %v1283_v12, 4  ;;  %v1465_v1 = vmul.f32 1.442695, %v1356_v40  ;;  %v5094_v40 = vadd.f32 %v4865_v35, %v3597_v6 }
 0x27d   :  { %6581 = vst [vmem:[#allocation71_spill] sm:$0xff] %v5027_v41  ;;  %6582 = vst [vmem:[#allocation72_spill] sm:$0xff] %v5035_v46  ;;  %v1605_v41 = vadd.f32 %v1604_v29, %v1603_v8  ;;  %v5077_v46 = vpop.eup %3722  ;;  %v1300_v8 = vmax.f32 %v1298_v44, %v1299_v17  ;;  %v1301_v34 = vsel %vm1142_vm1, %v5069_v3, -inf }
 0x27e   :  { %1869 = vrot.lane.b32.xlu1 %v5031_v55, %s3779_s3  ;;  %2711 = vrot.lane.b32.xlu0 %v4839_v57, %s3781_s24  ;;  %6584 = vst [vmem:[#allocation74_spill] sm:$0xff] %v5069_v3  ;;  %v1285_v29 = vmax.f32 %v1283_v12, %v1284_v27  ;;  %6586 = vst [vmem:[#allocation76_spill] sm:$0xff] %v5094_v40  ;;  %3732 = vpow2.f32 %v1465_v1  ;;  %v1608_v44 = vsel %vm1142_vm1, %v5077_v46, 0.0  ;;  %v1303_v42 = vsel %vm1142_vm1, %v5094_v40, -inf }
 0x27f   :  { %v5085_v48 = vpop.eup %3724  ;;  %v1606_v56 = vrot.slane %v1605_v41, 1  ;;  %v1302_v12 = vmax.f32 %v1300_v8, %v1301_v34  ;;  %3734 = vpow2.f32 %v1467_v23 }
 0x280   :  { %v5046_v38 = vpop.permute.xlu1 %2667  ;;  %v5054_v57 = vpop.permute.xlu0 %2665  ;;  %v1609_v35 = vsel %vm1142_vm1, %v5085_v48, 0.0  ;;  %v1286_v21 = vrot.slane %v1285_v29, 2  ;;  %3736 = vpow2.f32 %v1469_v58 }
 0x281   :  { %v1607_v17 = vadd.f32 %v1606_v56, %v1605_v41  ;;  %v1610_v1 = vadd.f32 %v1609_v35, %v1608_v44 }
 0x282   :  { %1873 = vrot.lane.b32.xlu1 %v5050_v63, %s3779_s3  ;;  %1863 = vrot.lane.b32.xlu0 %v5058_v50, %s3779_s3  ;;  %v5110_v6 = vpop.eup %3726  ;;  %v1287_v41 = vmax.f32 %v1285_v29, %v1286_v21 }
 0x283   :  { %v1611_v8 = vsel %vm1142_vm1, %v5110_v6, 0.0  ;;  %v1675_v26 = vmul.f32 64.0, %v1607_v17 }
 0x284   :  { %v5071_v36 = vpop.permute.xlu1 %2671  ;;  %v5079_v61 = vpop.permute.xlu0 %2669  ;;  %v1612_v23 = vadd.f32 %v1611_v8, %v1610_v1  ;;  %v1288_v29 = vrot.slane %v1287_v41, 1 }
 0x285   :  { %6585 = vst [vmem:[#allocation75_spill] sm:$0xff] %v5071_v36  ;;  %v1304_v36 = vmax.f32 %v1302_v12, %v1303_v42  ;;  %3738 = vrcp.f32 %v1675_v26 }
 0x286   :  { %1877 = vrot.lane.b32.xlu1 %v5075_v16, %s3779_s3  ;;  %1867 = vrot.lane.b32.xlu0 %v5083_v31, %s3779_s3  ;;  %v5128_v34 = vpop.eup %3728  ;;  %v5158_v8 = vmax.f32 %v1287_v41, %v1288_v29 }
 0x287   :  { %v1305_v35 = vrot.slane %v1304_v36, 4 }
 0x288   :  { %v5098_v2 = vpop.permute.xlu1 %2677  ;;  %v5100_v10 = vpop.permute.xlu0 %2673 }
 0x289   :  { %6587 = vst [vmem:[#allocation77_spill] sm:$0xff] %v5098_v2  ;;  %6588 = vst [vmem:[#allocation78_spill] sm:$0xff] %v5100_v10  ;;  %v5124_v10 = vmul.f32 %v4987_v18, %v4734_v45  ;;  %v1613_v18 = vsel %vm1142_vm1, %v5128_v34, 0.0  ;;  %v5140_v44 = vpop.eup %3730  ;;  %v1306_v1 = vmax.f32 %v1304_v36, %v1305_v35  ;;  %v1359_v35 = vsub.f32 %v4873_v52, %v5158_v8 }
 0x28a   :  { %2290 = vrot.lane.b32.xlu1 %v5012_v5, %s3780_s23  ;;  %1871 = vrot.lane.b32.xlu0 %v5104_v62, %s3779_s3  ;;  %v1614_v21 = vadd.f32 %v1613_v18, %v1612_v23  ;;  %v1615_v42 = vsel %vm1142_vm1, %v5140_v44, 0.0 }
 0x28b   :  { %v5152_v17 = vpop.eup %3732  ;;  %v1471_v52 = vmul.f32 1.442695, %v1359_v35  ;;  %v1362_v35 = vsub.f32 %v4908_v14, %v5158_v8 }
 0x28c   :  { %v5118_v27 = vpop.permute.xlu1 %1833  ;;  %v5120_v2 = vpop.permute.xlu0 %2675  ;;  %v1616_v26 = vadd.f32 %v1615_v42, %v1614_v21  ;;  %v1617_v18 = vsel %vm1142_vm1, %v5152_v17, 0.0  ;;  %v1360_v42 = vsub.f32 %v4869_v15, %v5158_v8 }
 0x28d   :  { %6589 = vst [vmem:[#allocation79_spill] sm:$0xff] %v5120_v2  ;;  %3740 = vpow2.f32 %v1471_v52  ;;  %v1363_v52 = vsub.f32 %v4931_v59, %v5158_v8 }
 0x28e   :  { %2294 = vrot.lane.b32.xlu1 %v5031_v55, %s3780_s23  ;;  %1875 = vrot.lane.b32.xlu0 %v5124_v10, %s3779_s3  ;;  %v1618_v41 = vadd.f32 %v1617_v18, %v1616_v26 }
 0x290   :  { %v5134_v56 = vpop.permute.xlu1 %1837  ;;  %v5136_v45 = vpop.permute.xlu0 %2679 }
 0x291   :  { %6590 = vst [vmem:[#allocation80_spill] sm:$0xff] %v5134_v56  ;;  %6591 = vst [vmem:[#allocation81_spill] sm:$0xff] %v5136_v45  ;;  %v1307_v56 = vrot.slane %v1306_v1, 2 }
 0x292   :  { %2298 = vrot.lane.b32.xlu1 %v5050_v63, %s3780_s23  ;;  %2288 = vrot.lane.b32.xlu0 %v5058_v50, %s3780_s23 }
 0x294   :  { %v5146_v12 = vpop.permute.xlu1 %1841  ;;  %v5148_v58 = vpop.permute.xlu0 %1831 }
 0x295   :  { %6592 = vst [vmem:[#allocation82_spill] sm:$0xff] %v5146_v12  ;;  %v5166_v12 = vpop.eup %3734 }
 0x296   :  { %2302 = vrot.lane.b32.xlu1 %v5075_v16, %s3780_s23  ;;  %2292 = vrot.lane.b32.xlu0 %v5083_v31, %s3780_s23  ;;  %v1619_v29 = vsel %vm1142_vm1, %v5166_v12, 0.0 }
 0x297   :  { %v1620_v18 = vadd.f32 %v1619_v29, %v1618_v41 }
 0x298   :  { %v5160_v45 = vpop.permute.xlu1 %1845  ;;  %v5162_v23 = vpop.permute.xlu0 %1835 }
 0x299   :  { %6593 = vst [vmem:[#allocation83_spill] sm:$0xff] %v5160_v45  ;;  %6594 = vst [vmem:[#allocation84_spill] sm:$0xff] %v5162_v23  ;;  %v5182_v45 = vpop.eup %3736  ;;  %v1473_v23 = vmul.f32 1.442695, %v1360_v42 }
 0x29a   :  { %2715 = vrot.lane.b32.xlu1 %v5012_v5, %s3781_s24  ;;  %2296 = vrot.lane.b32.xlu0 %v5104_v62, %s3780_s23  ;;  %v1308_v5 = vmax.f32 %v1306_v1, %v1307_v56  ;;  %v1621_v15 = vsel %vm1142_vm1, %v5182_v45, 0.0 }
 0x29b   :  { %v1622_v41 = vadd.f32 %v1621_v15, %v1620_v18  ;;  %3742 = vpow2.f32 %v1473_v23  ;;  %v1477_v23 = vmul.f32 1.442695, %v1362_v35  ;;  %v1364_v35 = vsub.f32 %v4945_v54, %v5158_v8 }
 0x29c   :  { %v5172_v36 = vpop.permute.xlu1 %2258  ;;  %v5178_v21 = vpop.permute.xlu0 %1839 }
 0x29d   :  { %6595 = vst [vmem:[#allocation85_spill] sm:$0xff] %v5172_v36  ;;  %6596 = vst [vmem:[#allocation86_spill] sm:$0xff] %v5178_v21  ;;  %v5190_v36 = vpop.eup %3738  ;;  %v1361_v21 = vsub.f32 %v4894_v43, %v5158_v8  ;;  %v1623_v15 = vrot.slane %v1622_v41, 4  ;;  %v1481_v54 = vmul.f32 1.442695, %v1364_v35 }
 0x29e   :  { %2717 = vrot.lane.b32.xlu1 %v5083_v31, %s3781_s24  ;;  %2300 = vrot.lane.b32.xlu0 %v5124_v10, %s3780_s23  ;;  %v1309_v31 = vrot.slane %v1308_v5, 1  ;;  %v5206_v1 = vmul.f32 %v5190_v36, %v4830_v28  ;;  %v5222_v28 = vmul.f32 %v5190_v36, %v4858_v47  ;;  %v5238_v47 = vmul.f32 %v5190_v36, %v4902_v37 }
 0x29f   :  { %v1475_v42 = vmul.f32 1.442695, %v1361_v21  ;;  %v1624_v18 = vadd.f32 %v1623_v15, %v1622_v41  ;;  %v1719_v43 = vmul.f32 %v5190_v36, %v4823_v11 }
 0x2a0   :  { %v5188_v26 = vpop.permute.xlu1 %2262  ;;  %v5194_v2 = vpop.permute.xlu0 %1843 }
 0x2a1   :  { %3744 = vpow2.f32 %v1475_v42  ;;  %v1479_v42 = vmul.f32 1.442695, %v1363_v52  ;;  %v5258_v52 = vmul.f32 %v5190_v36, %v4939_v53 }
 0x2a2   :  { %2723 = vrot.lane.b32.xlu1 %v5050_v63, %s3781_s24  ;;  %2713 = vrot.lane.b32.xlu0 %v5058_v50, %s3781_s24  ;;  %v5214_v63 = vmax.f32 %v1308_v5, %v1309_v31  ;;  %3746 = vpow2.f32 %v1477_v23  ;;  %v1625_v23 = vrot.slane %v1624_v18, 2 }
 0x2a3   :  { %3748 = vpow2.f32 %v1479_v42 }
 0x2a4   :  { %v5202_v56 = vpop.permute.xlu1 %2266  ;;  %v5210_v29 = vpop.permute.xlu0 %2256  ;;  %v1368_v31 = vsub.f32 %v4948_v49, %v5214_v63  ;;  %v1369_v41 = vsub.f32 %v4981_v4, %v5214_v63  ;;  %v1370_v53 = vsub.f32 %v5000_v60, %v5214_v63  ;;  %v1626_v35 = vadd.f32 %v1625_v23, %v1624_v18 }
 0x2a5   :  { %6597 = vst [vmem:[#allocation87_spill] sm:$0xff] %v5202_v56  ;;  %v1721_v60 = vmul.f32 %v5190_v36, %v4848_v33 }
 0x2a6   :  { %1881 = vrot.lane.b32.xlu1 %v5206_v1, %s3779_s3  ;;  %2719 = vrot.lane.b32.xlu0 %v5031_v55, %s3781_s24  ;;  %v1367_v55 = vsub.f32 %v4955_v0, %v5214_v63  ;;  %v1489_v49 = vmul.f32 1.442695, %v1368_v31  ;;  %v5260_v0 = vpop.eup %3740  ;;  %v1491_v42 = vmul.f32 1.442695, %v1369_v41  ;;  %v1627_v11 = vrot.slane %v1626_v35, 1 }
 0x2a8   :  { %v5218_v50 = vpop.permute.xlu1 %2270  ;;  %v5226_v21 = vpop.permute.xlu0 %2260  ;;  %v1487_v37 = vmul.f32 1.442695, %v1367_v55 }
 0x2a9   :  { %6598 = vst [vmem:[#allocation88_spill] sm:$0xff] %v5218_v50  ;;  %v5264_v14 = vpop.eup %3742 }
 0x2aa   :  { %1885 = vrot.lane.b32.xlu1 %v5222_v28, %s3779_s3  ;;  %2721 = vrot.lane.b32.xlu0 %v5104_v62, %s3781_s24  ;;  %v1365_v62 = vsub.f32 %v4972_v51, %v5158_v8  ;;  %3750 = vpow2.f32 %v1487_v37 }
 0x2ab   :  { %3752 = vpow2.f32 %v1489_v49  ;;  %v1371_v49 = vsub.f32 %v5025_v32, %v5214_v63 }
 0x2ac   :  { %v5234_v5 = vpop.permute.xlu1 %2683  ;;  %v5244_v59 = vpop.permute.xlu0 %2264  ;;  %v1483_v55 = vmul.f32 1.442695, %v1365_v62  ;;  %3754 = vpow2.f32 %v1481_v54  ;;  %v1493_v54 = vmul.f32 1.442695, %v1370_v53  ;;  %v1372_v53 = vsub.f32 %v5042_v39, %v5214_v63 }
 0x2ad   :  { %6599 = vst [vmem:[#allocation89_spill] sm:$0xff] %v5244_v59  ;;  %3756 = vpow2.f32 %v1491_v42  ;;  %v1628_v42 = vadd.f32 %v1627_v11, %v1626_v35  ;;  %v1725_v39 = vmul.f32 %v5190_v36, %v4920_v20 }
 0x2ae   :  { %1889 = vrot.lane.b32.xlu1 %v5238_v47, %s3779_s3  ;;  %2725 = vrot.lane.b32.xlu0 %v5124_v10, %s3781_s24  ;;  %v1366_v10 = vsub.f32 %v4993_v7, %v5158_v8  ;;  %v1629_v8 = vsel %vm1142_vm1, %v5260_v0, 0.0  ;;  %v5284_v62 = vpop.eup %3744  ;;  %3758 = vpow2.f32 %v1483_v55 }
 0x2af   :  { %v1632_v7 = vsel %vm1142_vm1, %v5284_v62, 0.0  ;;  %v5299_v50 = vpop.eup %3746  ;;  %3760 = vpow2.f32 %v1493_v54  ;;  %v1497_v54 = vmul.f32 1.442695, %v1372_v53 }
 0x2b0   :  { %v5254_v15 = vpop.permute.xlu1 %2685  ;;  %v5262_v51 = vpop.permute.xlu0 %2268  ;;  %v1485_v41 = vmul.f32 1.442695, %v1366_v10  ;;  %v1495_v10 = vmul.f32 1.442695, %v1371_v49  ;;  %v1634_v32 = vsel %vm1142_vm1, %v5299_v50, 0.0  ;;  %v1373_v49 = vsub.f32 %v5069_v3, %v5214_v63 }
 0x2b1   :  { %6600 = vst [vmem:[#allocation90_spill] sm:$0xff] %v5262_v51  ;;  %v5314_v51 = vpop.eup %3748 }
 0x2b2   :  { %1893 = vrot.lane.b32.xlu1 %v5258_v52, %s3779_s3  ;;  %2727 = vrot.lane.b32.xlu0 %v5075_v16, %s3781_s24  ;;  %v1630_v16 = vsel %vm1142_vm1, %v5264_v14, 0.0  ;;  %3762 = vpow2.f32 %v1485_v41  ;;  %v1636_v3 = vsel %vm1142_vm1, %v5314_v51, 0.0 }
 0x2b3   :  { %v1631_v37 = vadd.f32 %v1630_v16, %v1629_v8  ;;  %v1723_v16 = vmul.f32 %v5190_v36, %v4883_v9  ;;  %3764 = vpow2.f32 %v1495_v10  ;;  %v1676_v9 = vmul.f32 64.0, %v1628_v42 }
 0x2b4   :  { %v5274_v31 = vpop.permute.xlu1 %2689  ;;  %v5276_v4 = vpop.permute.xlu0 %2681  ;;  %v1374_v10 = vsub.f32 %v5094_v40, %v5214_v63  ;;  %3766 = vpow2.f32 %v1497_v54 }
 0x2b5   :  { %v1633_v8 = vadd.f32 %v1632_v7, %v1631_v37  ;;  %3768 = vrcp.f32 %v1676_v9 }
 0x2b6   :  { %2306 = vrot.lane.b32.xlu1 %v5206_v1, %s3780_s23  ;;  %1879 = vrot.lane.b32.xlu0 %v1719_v43, %s3779_s3  ;;  %v1501_v54 = vmul.f32 1.442695, %v1374_v10 }
 0x2b7   :  { %v5321_v7 = vpop.eup %3750  ;;  %v1635_v11 = vadd.f32 %v1634_v32, %v1633_v8  ;;  %v1499_v32 = vmul.f32 1.442695, %v1373_v49 }
 0x2b8   :  { %v5291_v18 = vpop.permute.xlu1 %2691  ;;  %v5293_v23 = vpop.permute.xlu0 %2687  ;;  %6601 = vst [vmem:[#allocation91_spill] sm:$0xff] %v5321_v7  ;;  %v1650_v20 = vsel %vm1142_vm1, %v5321_v7, 0.0 }
 0x2b9   :  { %v5325_v37 = vpop.eup %3752  ;;  %v1637_v8 = vadd.f32 %v1636_v3, %v1635_v11  ;;  %3770 = vpow2.f32 %v1499_v32 }
 0x2ba   :  { %2310 = vrot.lane.b32.xlu1 %v5222_v28, %s3780_s23  ;;  %1883 = vrot.lane.b32.xlu0 %v1721_v60, %s3779_s3  ;;  %6602 = vst [vmem:[#allocation92_spill] sm:$0xff] %v5325_v37  ;;  %v5333_v53 = vpop.eup %3754  ;;  %v1651_v36 = vsel %vm1142_vm1, %v5325_v37, 0.0  ;;  %3772 = vpow2.f32 %v1501_v54 }
 0x2bb   :  { %v5346_v56 = vpop.eup %3756  ;;  %v1638_v63 = vsel %vm1142_vm1, %v5333_v53, 0.0  ;;  %v1652_v3 = vadd.f32 %v1651_v36, %v1650_v20 }
 0x2bc   :  { %v5306_v55 = vpop.permute.xlu1 %2695  ;;  %v5308_v33 = vpop.permute.xlu0 %2693  ;;  %v1639_v11 = vadd.f32 %v1638_v63, %v1637_v8  ;;  %v1653_v40 = vsel %vm1142_vm1, %v5346_v56, 0.0 }
 0x2bd   :  { %v5352_v49 = vpop.eup %3758 }
 0x2be   :  { %2314 = vrot.lane.b32.xlu1 %v5238_v47, %s3780_s23  ;;  %1887 = vrot.lane.b32.xlu0 %v1723_v16, %s3779_s3  ;;  %v5360_v37 = vpop.eup %3760  ;;  %v1640_v7 = vsel %vm1142_vm1, %v5352_v49, 0.0 }
 0x2bf   :  { %v1641_v32 = vadd.f32 %v1640_v7, %v1639_v11  ;;  %v1655_v8 = vsel %vm1142_vm1, %v5360_v37, 0.0 }
 0x2c0   :  { %v5323_v35 = vpop.permute.xlu1 %1849  ;;  %v5327_v41 = vpop.permute.xlu0 %1847 }
 0x2c2   :  { %2318 = vrot.lane.b32.xlu1 %v5258_v52, %s3780_s23  ;;  %1891 = vrot.lane.b32.xlu0 %v1725_v39, %s3779_s3 }
 0x2c4   :  { %v5340_v42 = vpop.permute.xlu1 %1853  ;;  %v5348_v59 = vpop.permute.xlu0 %1851 }
 0x2c5   :  { %6603 = vst [vmem:[#allocation93_spill] sm:$0xff] %v5340_v42  ;;  %6604 = vst [vmem:[#allocation94_spill] sm:$0xff] %v5348_v59  ;;  %v5366_v59 = vpop.eup %3762 }
 0x2c6   :  { %2729 = vrot.lane.b32.xlu1 %v1719_v43, %s3781_s24  ;;  %2304 = vrot.lane.b32.xlu0 %v1719_v43, %s3780_s23  ;;  %v1654_v43 = vadd.f32 %v1653_v40, %v1652_v3  ;;  %v5374_v20 = vpop.eup %3764  ;;  %v1642_v63 = vsel %vm1142_vm1, %v5366_v59, 0.0 }
 0x2c7   :  { %v5382_v40 = vpop.eup %3766  ;;  %v1643_v7 = vadd.f32 %v1642_v63, %v1641_v32  ;;  %v1657_v54 = vsel %vm1142_vm1, %v5374_v20, 0.0 }
 0x2c8   :  { %v5356_v9 = vpop.permute.xlu1 %1857  ;;  %v5364_v42 = vpop.permute.xlu0 %1855 }
 0x2c9   :  { %6605 = vst [vmem:[#allocation95_spill] sm:$0xff] %v5356_v9  ;;  %v3769_v11 = vpop.eup %3768 }
 0x2ca   :  { %2733 = vrot.lane.b32.xlu1 %v1721_v60, %s3781_s24  ;;  %2308 = vrot.lane.b32.xlu0 %v1721_v60, %s3780_s23  ;;  %v1656_v60 = vadd.f32 %v1655_v8, %v1654_v43  ;;  %v1644_v43 = vrot.slane %v1643_v7, 4  ;;  %v1659_v8 = vsel %vm1142_vm1, %v5382_v40, 0.0  ;;  %v5397_v32 = vpop.eup %3770 }
 0x2cb   :  { %6611 = vst [vmem:[#allocation101_spill] sm:$0xff] %v5397_v32 }
 0x2cc   :  { %v5370_v10 = vpop.permute.xlu1 %1861  ;;  %v5376_v36 = vpop.permute.xlu0 %1859 }
 0x2cd   :  { %6606 = vst [vmem:[#allocation96_spill] sm:$0xff] %v5370_v10  ;;  %6607 = vst [vmem:[#allocation97_spill] sm:$0xff] %v5376_v36  ;;  %v1658_v36 = vadd.f32 %v1657_v54, %v1656_v60  ;;  %v1645_v54 = vadd.f32 %v1644_v43, %v1643_v7 }
 0x2ce   :  { %2737 = vrot.lane.b32.xlu1 %v1723_v16, %s3781_s24  ;;  %2312 = vrot.lane.b32.xlu0 %v1723_v16, %s3780_s23  ;;  %v1728_v16 = vmul.f32 %v3769_v11, %v5085_v48  ;;  %v5409_v48 = vmul.f32 %v3769_v11, %v5128_v34 }
 0x2d0   :  { %v5384_v3 = vpop.permute.xlu1 %2274  ;;  %v5388_v10 = vpop.permute.xlu0 %2272 }
 0x2d1   :  { %6608 = vst [vmem:[#allocation98_spill] sm:$0xff] %v5384_v3  ;;  %6609 = vst [vmem:[#allocation99_spill] sm:$0xff] %v5388_v10  ;;  %v1660_v10 = vadd.f32 %v1659_v8, %v1658_v36  ;;  %v5422_v8 = vmul.f32 %v3769_v11, %v5152_v17 }
 0x2d2   :  { %2741 = vrot.lane.b32.xlu1 %v1725_v39, %s3781_s24  ;;  %2316 = vrot.lane.b32.xlu0 %v1725_v39, %s3780_s23  ;;  %v1661_v39 = vsel %vm1142_vm1, %v5397_v32, 0.0 }
 0x2d4   :  { %v5392_v9 = vpop.permute.xlu1 %2278  ;;  %v5399_v63 = vpop.permute.xlu0 %2276 }
 0x2d5   :  { %6610 = vst [vmem:[#allocation100_spill] sm:$0xff] %v5392_v9  ;;  %6612 = vst [vmem:[#allocation102_spill] sm:$0xff] %v5399_v63  ;;  %v5411_v9 = vpop.eup %3772 }
 0x2d6   :  { %1897 = vrot.lane.b32.xlu1 %v1728_v16, %s3779_s3  ;;  %2731 = vrot.lane.b32.xlu0 %v5206_v1, %s3781_s24  ;;  %6614 = vst [vmem:[#allocation104_spill] sm:$0xff] %v5411_v9  ;;  %v1662_v1 = vadd.f32 %v1661_v39, %v1660_v10  ;;  %v1663_v34 = vsel %vm1142_vm1, %v5411_v9, 0.0  ;;  %v5435_v10 = vmul.f32 %v3769_v11, %v5182_v45  ;;  %v6660_v9 = vld [vmem:[#allocation86_spill] sm:$0xff] }
 0x2d8   :  { %v5406_v60 = vpop.permute.xlu1 %2282  ;;  %v5413_v3 = vpop.permute.xlu0 %2280  ;;  %v1664_v43 = vadd.f32 %v1663_v34, %v1662_v1  ;;  %v5448_v1 = vmul.f32 %v3769_v11, %v5077_v46 }
 0x2d9   :  { %6613 = vst [vmem:[#allocation103_spill] sm:$0xff] %v5406_v60  ;;  %6615 = vst [vmem:[#allocation105_spill] sm:$0xff] %v5413_v3  ;;  %v1646_v60 = vrot.slane %v1645_v54, 2 }
 0x2da   :  { %1901 = vrot.lane.b32.xlu1 %v5409_v48, %s3779_s3  ;;  %2735 = vrot.lane.b32.xlu0 %v5222_v28, %s3781_s24 }
 0x2db   :  { %v1647_v17 = vadd.f32 %v1646_v60, %v1645_v54 }
 0x2dc   :  { %v5419_v36 = vpop.permute.xlu1 %2286  ;;  %v5426_v7 = vpop.permute.xlu0 %2284 }
 0x2dd   :  { %6616 = vst [vmem:[#allocation106_spill] sm:$0xff] %v5419_v36  ;;  %6617 = vst [vmem:[#allocation107_spill] sm:$0xff] %v5426_v7  ;;  %v1665_v36 = vrot.slane %v1664_v43, 4  ;;  %v1648_v3 = vrot.slane %v1647_v17, 1 }
 0x2de   :  { %1905 = vrot.lane.b32.xlu1 %v5422_v8, %s3779_s3  ;;  %2739 = vrot.lane.b32.xlu0 %v5238_v47, %s3781_s24 }
 0x2df   :  { %v1666_v45 = vadd.f32 %v1665_v36, %v1664_v43  ;;  %v1649_v54 = vadd.f32 %v1648_v3, %v1647_v17  ;;  %v5466_v36 = vmul.f32 %v3769_v11, %v5140_v44  ;;  %v5477_v17 = vmul.f32 %v3769_v11, %v5166_v12 }
 0x2e0   :  { %v5432_v28 = vpop.permute.xlu1 %2699  ;;  %v5437_v39 = vpop.permute.xlu0 %2697 }
 0x2e1   :  { %6618 = vst [vmem:[#allocation108_spill] sm:$0xff] %v5432_v28  ;;  %6619 = vst [vmem:[#allocation109_spill] sm:$0xff] %v5437_v39  ;;  %v1667_v46 = vrot.slane %v1666_v45, 2 }
 0x2e2   :  { %1909 = vrot.lane.b32.xlu1 %v5435_v10, %s3779_s3  ;;  %2743 = vrot.lane.b32.xlu0 %v5258_v52, %s3781_s24  ;;  %v1729_v52 = vmul.f32 %v3769_v11, %v5110_v6  ;;  %v2858_v11 = vmul.f32 %v5046_v38, %v4195_v24 }
 0x2e3   :  { %v1668_v6 = vadd.f32 %v1667_v46, %v1666_v45  ;;  %v2857_v45 = vmul.f32 %v5054_v57, %v4198_v25  ;;  %v2009_v57 = vmul.f32 %v4877_v22, %v4208_v30 }
 0x2e4   :  { %v5443_v7 = vpop.permute.xlu1 %2705  ;;  %v5445_v47 = vpop.permute.xlu0 %2701 }
 0x2e5   :  { %6620 = vst [vmem:[#allocation110_spill] sm:$0xff] %v5443_v7  ;;  %6621 = vst [vmem:[#allocation111_spill] sm:$0xff] %v5445_v47  ;;  %v1677_v7 = vmul.f32 64.0, %v1649_v54  ;;  %v1669_v44 = vrot.slane %v1668_v6, 1 }
 0x2e6   :  { %2322 = vrot.lane.b32.xlu1 %v1728_v16, %s3780_s23  ;;  %1895 = vrot.lane.b32.xlu0 %v5448_v1, %s3779_s3 }
 0x2e7   :  { %3774 = vrcp.f32 %v1677_v7  ;;  %v2008_v7 = vmul.f32 %v4898_v19, %v4195_v24  ;;  %v1670_v12 = vadd.f32 %v1669_v44, %v1668_v6  ;;  %v2859_v19 = vmul.f32 %v5079_v61, %v4208_v30 }
 0x2e8   :  { %v5453_v60 = vpop.permute.xlu1 %2709  ;;  %v5455_v34 = vpop.permute.xlu0 %2703  ;;  %v2923_v44 = vsel %vm2921_vm2, %v2858_v11, 0.0  ;;  %v6635_v11 = vld [vmem:[#allocation7_spill] sm:$0xff] }
 0x2e9   :  { %6622 = vst [vmem:[#allocation112_spill] sm:$0xff] %v5453_v60  ;;  %6623 = vst [vmem:[#allocation113_spill] sm:$0xff] %v5455_v34  ;;  %v2073_v6 = vsel %vm2071_vm3, %v2008_v7, 0.0  ;;  %v1678_v38 = vmul.f32 64.0, %v1670_v12  ;;  %v2925_v12 = vsel %vm2921_vm2, %v2859_v19, 0.0  ;;  %v6643_v60 = vld [vmem:[#allocation10_spill] sm:$0xff] }
 0x2ea   :  { %2326 = vrot.lane.b32.xlu1 %v5409_v48, %s3780_s23  ;;  %1899 = vrot.lane.b32.xlu0 %v1729_v52, %s3779_s3  ;;  %v6649_v34 = vld [vmem:[#allocation9_spill] sm:$0xff] }
 0x2eb   :  { %3776 = vrcp.f32 %v1678_v38  ;;  %v2868_v39 = vmul.f32 %v5293_v23, %v6649_v34 }
 0x2ec   :  { %v5461_v63 = vpop.permute.xlu1 %1865  ;;  %v5463_v47 = vpop.permute.xlu0 %2707 }
 0x2ed   :  { %6624 = vst [vmem:[#allocation114_spill] sm:$0xff] %v5461_v63  ;;  %6625 = vst [vmem:[#allocation115_spill] sm:$0xff] %v5463_v47  ;;  %v6644_v47 = vld [vmem:[#allocation84_spill] sm:$0xff] }
 0x2ee   :  { %2330 = vrot.lane.b32.xlu1 %v5422_v8, %s3780_s23  ;;  %1903 = vrot.lane.b32.xlu0 %v5466_v36, %s3779_s3 }
 0x2f0   :  { %v5472_v3 = vpop.permute.xlu1 %1869  ;;  %v5474_v43 = vpop.permute.xlu0 %2711 }
 0x2f1   :  { %6626 = vst [vmem:[#allocation116_spill] sm:$0xff] %v5472_v3  ;;  %6627 = vst [vmem:[#allocation117_spill] sm:$0xff] %v5474_v43  ;;  %v6633_v43 = vld [vmem:[#allocation8_spill] sm:$0xff] }
 0x2f2   :  { %2334 = vrot.lane.b32.xlu1 %v5435_v10, %s3780_s23  ;;  %1907 = vrot.lane.b32.xlu0 %v5477_v17, %s3779_s3 }
 0x2f4   :  { %v5483_v54 = vpop.permute.xlu1 %1873  ;;  %v5485_v63 = vpop.permute.xlu0 %1863 }
 0x2f5   :  { %6628 = vst [vmem:[#allocation118_spill] sm:$0xff] %v5483_v54  ;;  %6629 = vst [vmem:[#allocation119_spill] sm:$0xff] %v5485_v63  ;;  %v2007_v54 = vmul.f32 %v4879_v13, %v4198_v25  ;;  %v2922_v13 = vsel %vm2921_vm2, %v2857_v45, 0.0  ;;  %v5513_v3 = vpop.eup %3774  ;;  %v2866_v45 = vmul.f32 %v5234_v5, %v6635_v11  ;;  %v6639_v5 = vld [vmem:[#allocation50_spill] sm:$0xff] }
 0x2f6   :  { %2747 = vrot.lane.b32.xlu1 %v1728_v16, %s3781_s24  ;;  %2320 = vrot.lane.b32.xlu0 %v5448_v1, %s3780_s23  ;;  %v2924_v22 = vadd.f32 %v2923_v44, %v2922_v13 }
 0x2f7   :  { %v2072_v61 = vsel %vm2071_vm3, %v2007_v54, 0.0  ;;  %v2075_v54 = vsel %vm2071_vm3, %v2009_v57, 0.0  ;;  %v5545_v57 = vmul.f32 %v5513_v3, %v5260_v0  ;;  %v2944_v0 = vsel %vm2921_vm2, %v2866_v45, 0.0 }
 0x2f8   :  { %v5496_v46 = vpop.permute.xlu1 %1877  ;;  %v5500_v16 = vpop.permute.xlu0 %1867  ;;  %v2926_v13 = vadd.f32 %v2925_v12, %v2924_v22  ;;  %v6646_v22 = vld [vmem:[#allocation3_spill] sm:$0xff] }
 0x2f9   :  { %6630 = vst [vmem:[#allocation120_spill] sm:$0xff] %v5496_v46  ;;  %6631 = vst [vmem:[#allocation121_spill] sm:$0xff] %v5500_v16  ;;  %v2865_v16 = vmul.f32 %v5276_v4, %v6633_v43  ;;  %v6637_v4 = vld [vmem:[#allocation75_spill] sm:$0xff] }
 0x2fa   :  { %2749 = vrot.lane.b32.xlu1 %v1729_v52, %s3781_s24  ;;  %2324 = vrot.lane.b32.xlu0 %v1729_v52, %s3780_s23  ;;  %v2074_v52 = vadd.f32 %v2073_v6, %v2072_v61  ;;  %v2015_v6 = vmul.f32 %v5148_v58, %v6633_v43  ;;  %v6641_v58 = vld [vmem:[#allocation4_spill] sm:$0xff] }
 0x2fb   :  { %v2943_v38 = vsel %vm2921_vm2, %v2865_v16, 0.0  ;;  %v6645_v16 = vld [vmem:[#allocation53_spill] sm:$0xff] }
 0x2fc   :  { %v5511_v46 = vpop.permute.xlu1 %2290  ;;  %v5518_v7 = vpop.permute.xlu0 %1871  ;;  %v2011_v12 = vmul.f32 %v6645_v16, %v6641_v58  ;;  %v2945_v16 = vadd.f32 %v2944_v0, %v2943_v38 }
 0x2fd   :  { %6632 = vst [vmem:[#allocation122_spill] sm:$0xff] %v5511_v46  ;;  %6634 = vst [vmem:[#allocation8_spill] sm:$0xff] %v5518_v7  ;;  %v6636_v46 = vld [vmem:[#allocation2_spill] sm:$0xff] }
 0x2fe   :  { %2751 = vrot.lane.b32.xlu1 %v5409_v48, %s3781_s24  ;;  %2328 = vrot.lane.b32.xlu0 %v5466_v36, %s3780_s23  ;;  %v2860_v63 = vmul.f32 %v6637_v4, %v6636_v46  ;;  %v5536_v48 = vmul.f32 %v5513_v3, %v5264_v14  ;;  %v2010_v44 = vmul.f32 %v6639_v5, %v6636_v46  ;;  %v2079_v23 = vsel %vm2071_vm3, %v2011_v12, 0.0 }
 0x2ff   :  { %v2076_v4 = vadd.f32 %v2075_v54, %v2074_v52  ;;  %v2016_v14 = vmul.f32 %v5118_v27, %v6635_v11  ;;  %v2017_v5 = vmul.f32 %v6644_v47, %v6643_v60  ;;  %v2867_v52 = vmul.f32 %v5254_v15, %v6643_v60  ;;  %v6647_v54 = vld [vmem:[#allocation79_spill] sm:$0xff] }
 0x300   :  { %v5532_v19 = vpop.permute.xlu1 %2294  ;;  %v5541_v61 = vpop.permute.xlu0 %1875  ;;  %v5564_v27 = vmul.f32 %v5513_v3, %v5299_v50  ;;  %v2927_v47 = vsel %vm2921_vm2, %v2860_v63, 0.0  ;;  %v2077_v45 = vsel %vm2071_vm3, %v2010_v44, 0.0  ;;  %v5579_v50 = vmul.f32 %v5513_v3, %v5284_v62  ;;  %v6651_v44 = vld [vmem:[#allocation52_spill] sm:$0xff] }
 0x301   :  { %6638 = vst [vmem:[#allocation7_spill] sm:$0xff] %v5532_v19  ;;  %6640 = vst [vmem:[#allocation2_spill] sm:$0xff] %v5541_v61  ;;  %v6642_v19 = vld [vmem:[#allocation78_spill] sm:$0xff]  ;;  %v2928_v15 = vadd.f32 %v2927_v47, %v2926_v13  ;;  %v2078_v63 = vadd.f32 %v2077_v45, %v2076_v4  ;;  %v2096_v38 = vsel %vm2071_vm3, %v2017_v5, 0.0  ;;  %v2012_v13 = vmul.f32 %v6651_v44, %v6646_v22  ;;  %v6652_v62 = vld [vmem:[#allocation60_spill] sm:$0xff] }
 0x302   :  { %v2861_v7 = vmul.f32 %v6642_v19, %v6641_v58  ;;  %2755 = vrot.lane.b32.xlu1 %v5422_v8, %s3781_s24  ;;  %2332 = vrot.lane.b32.xlu0 %v5477_v17, %s3780_s23  ;;  %v2862_v8 = vmul.f32 %v6647_v54, %v6646_v22  ;;  %v2093_v19 = vsel %vm2071_vm3, %v2015_v6, 0.0  ;;  %v2094_v6 = vsel %vm2071_vm3, %v2016_v14, 0.0  ;;  %v6653_v14 = vld [vmem:[#allocation80_spill] sm:$0xff]  ;;  %v6655_v44 = vld [vmem:[#allocation61_spill] sm:$0xff] }
 0x303   :  { %v2095_v0 = vadd.f32 %v2094_v6, %v2093_v19  ;;  %v2946_v47 = vsel %vm2921_vm2, %v2867_v52, 0.0  ;;  %v2018_v5 = vmul.f32 %v6653_v14, %v6649_v34  ;;  %v2432_v12 = vmul.f32 %v6655_v44, %v4198_v25  ;;  %v6661_v25 = vld [vmem:[#allocation65_spill] sm:$0xff] }
 0x304   :  { %v5570_v61 = vpop.permute.xlu1 %2298  ;;  %v5575_v28 = vpop.permute.xlu0 %2288  ;;  %v2929_v54 = vsel %vm2921_vm2, %v2861_v7, 0.0  ;;  %v2433_v7 = vmul.f32 %v6652_v62, %v4195_v24  ;;  %v2931_v4 = vsel %vm2921_vm2, %v2862_v8, 0.0  ;;  %v2948_v52 = vsel %vm2921_vm2, %v2868_v39, 0.0  ;;  %v6658_v24 = vld [vmem:[#allocation77_spill] sm:$0xff]  ;;  %v6659_v8 = vld [vmem:[#allocation12_spill] sm:$0xff] }
 0x305   :  { %6648 = vst [vmem:[#allocation75_spill] sm:$0xff] %v5570_v61  ;;  %6650 = vst [vmem:[#allocation50_spill] sm:$0xff] %v5575_v28  ;;  %v2930_v19 = vadd.f32 %v2929_v54, %v2928_v15  ;;  %v2097_v6 = vadd.f32 %v2096_v38, %v2095_v0  ;;  %v6657_v28 = vld [vmem:[#allocation6_spill] sm:$0xff]  ;;  %v2019_v32 = vmul.f32 %v6660_v9, %v6659_v8  ;;  %v5624_v54 = vpop.eup %3776  ;;  %v6662_v38 = vld [vmem:[#allocation5_spill] sm:$0xff] }
 0x306   :  { %2757 = vrot.lane.b32.xlu1 %v5477_v17, %s3781_s24  ;;  %2745 = vrot.lane.b32.xlu0 %v5448_v1, %s3781_s24  ;;  %v2947_v17 = vadd.f32 %v2946_v47, %v2945_v16  ;;  %v2080_v1 = vadd.f32 %v2079_v23, %v2078_v63  ;;  %v2863_v62 = vmul.f32 %v6658_v24, %v6657_v28  ;;  %v6663_v23 = vld [vmem:[#allocation81_spill] sm:$0xff] }
 0x307   :  { %v5612_v16 = vmul.f32 %v5513_v3, %v5333_v53  ;;  %v2434_v15 = vmul.f32 %v6661_v25, %v4208_v30  ;;  %v2932_v39 = vadd.f32 %v2931_v4, %v2930_v19  ;;  %v2869_v63 = vmul.f32 %v5274_v31, %v6659_v8  ;;  %v6664_v31 = vld [vmem:[#allocation56_spill] sm:$0xff] }
 0x308   :  { %v5597_v45 = vpop.permute.xlu1 %2302  ;;  %v5602_v61 = vpop.permute.xlu0 %2292  ;;  %v5622_v9 = vmul.f32 %v5513_v3, %v5314_v51  ;;  %v2098_v53 = vsel %vm2071_vm3, %v2018_v5, 0.0  ;;  %v2864_v30 = vmul.f32 %v6663_v23, %v6662_v38  ;;  %v2949_v0 = vadd.f32 %v2948_v52, %v2947_v17 }
 0x309   :  { %6654 = vst [vmem:[#allocation4_spill] sm:$0xff] %v5597_v45  ;;  %6656 = vst [vmem:[#allocation78_spill] sm:$0xff] %v5602_v61  ;;  %v2013_v4 = vmul.f32 %v6664_v31, %v6657_v28  ;;  %v2497_v51 = vsel %vm2496_vm4, %v2432_v12, 0.0  ;;  %v2099_v14 = vadd.f32 %v2098_v53, %v2097_v6  ;;  %v2100_v5 = vsel %vm2071_vm3, %v2019_v32, 0.0  ;;  %v6667_v6 = vld [vmem:[#allocation11_spill] sm:$0xff]  ;;  %v6670_v53 = vld [vmem:[#allocation64_spill] sm:$0xff] }
 0x30a   :  { %2759 = vrot.lane.b32.xlu1 %v5435_v10, %s3781_s24  ;;  %2753 = vrot.lane.b32.xlu0 %v5466_v36, %s3781_s24  ;;  %v2081_v10 = vsel %vm2071_vm3, %v2012_v13, 0.0  ;;  %v2498_v36 = vsel %vm2496_vm4, %v2433_v7, 0.0  ;;  %v2933_v13 = vsel %vm2921_vm2, %v2863_v62, 0.0  ;;  %v5644_v17 = vmul.f32 %v5513_v3, %v5366_v59  ;;  %v6668_v62 = vld [vmem:[#allocation82_spill] sm:$0xff]  ;;  %v6700_v45 = vld [vmem:[#allocation32_spill] sm:$0xff] }
 0x30b   :  { %v2082_v19 = vadd.f32 %v2081_v10, %v2080_v1  ;;  %v2500_v52 = vsel %vm2496_vm4, %v2434_v15, 0.0  ;;  %v2934_v7 = vadd.f32 %v2933_v13, %v2932_v39  ;;  %v2950_v12 = vsel %vm2921_vm2, %v2869_v63, 0.0  ;;  %v6669_v15 = vld [vmem:[#allocation55_spill] sm:$0xff] }
 0x30c   :  { %v5630_v47 = vpop.permute.xlu1 %2715  ;;  %v5636_v44 = vpop.permute.xlu0 %2296  ;;  %6666 = vst [vmem:[#allocation84_spill] sm:$0xff] %v5644_v17  ;;  %v2870_v24 = vmul.f32 %v5291_v18, %v6667_v6  ;;  %v2499_v1 = vadd.f32 %v2498_v36, %v2497_v51  ;;  %v2935_v32 = vsel %vm2921_vm2, %v2864_v30, 0.0  ;;  %v2020_v25 = vmul.f32 %v6668_v62, %v6667_v6  ;;  %v6672_v30 = vld [vmem:[#allocation69_spill] sm:$0xff]  ;;  %v6673_v62 = vld [vmem:[#allocation14_spill] sm:$0xff] }
 0x30d   :  { %6665 = vst [vmem:[#allocation10_spill] sm:$0xff] %v5636_v44  ;;  %v2951_v10 = vadd.f32 %v2950_v12, %v2949_v0  ;;  %v2014_v39 = vmul.f32 %v6669_v15, %v6662_v38  ;;  %v2083_v63 = vsel %vm2071_vm3, %v2013_v4, 0.0  ;;  %v2435_v18 = vmul.f32 %v6670_v53, %v6636_v46  ;;  %v6675_v15 = vld [vmem:[#allocation13_spill] sm:$0xff]  ;;  %v6677_v53 = vld [vmem:[#allocation83_spill] sm:$0xff] }
 0x30e   :  { %1913 = vrot.lane.b32.xlu1 %v5536_v48, %s3779_s3  ;;  %1911 = vrot.lane.b32.xlu0 %v5545_v57, %s3779_s3  ;;  %v2101_v23 = vadd.f32 %v2100_v5, %v2099_v14  ;;  %v2084_v36 = vadd.f32 %v2083_v63, %v2082_v19  ;;  %v2501_v51 = vadd.f32 %v2500_v52, %v2499_v1  ;;  %v2952_v46 = vsel %vm2921_vm2, %v2870_v24, 0.0  ;;  %v6674_v19 = vld [vmem:[#allocation85_spill] sm:$0xff] }
 0x30f   :  { %v2436_v13 = vmul.f32 %v6672_v30, %v6641_v58  ;;  %v2021_v0 = vmul.f32 %v5194_v2, %v6673_v62  ;;  %v2936_v12 = vadd.f32 %v2935_v32, %v2934_v7  ;;  %v2440_v4 = vmul.f32 %v5210_v29, %v6633_v43 }
 0x310   :  { %v5655_v59 = vpop.permute.xlu1 %2717  ;;  %v5662_v31 = vpop.permute.xlu0 %2300  ;;  %v2871_v14 = vmul.f32 %v5308_v33, %v6673_v62  ;;  %v2102_v58 = vsel %vm2071_vm3, %v2020_v25, 0.0  ;;  %v2441_v2 = vmul.f32 %v6674_v19, %v6635_v11  ;;  %v2953_v5 = vadd.f32 %v2952_v46, %v2951_v10  ;;  %v6680_v19 = vld [vmem:[#allocation72_spill] sm:$0xff] }
 0x311   :  { %6671 = vst [vmem:[#allocation53_spill] sm:$0xff] %v5662_v31  ;;  %v5684_v7 = vmul.f32 %v5513_v3, %v5352_v49  ;;  %v2085_v29 = vsel %vm2071_vm3, %v2014_v39, 0.0  ;;  %v2502_v43 = vsel %vm2496_vm4, %v2435_v18, 0.0  ;;  %v2103_v33 = vadd.f32 %v2102_v58, %v2101_v23 }
 0x312   :  { %1917 = vrot.lane.b32.xlu1 %v5564_v27, %s3779_s3  ;;  %1915 = vrot.lane.b32.xlu0 %v5579_v50, %s3779_s3  ;;  %v2442_v24 = vmul.f32 %v5226_v21, %v6643_v60  ;;  %v2086_v32 = vadd.f32 %v2085_v29, %v2084_v36  ;;  %v2503_v25 = vadd.f32 %v2502_v43, %v2501_v51  ;;  %v2504_v11 = vsel %vm2496_vm4, %v2436_v13, 0.0  ;;  %v6676_v21 = vld [vmem:[#allocation68_spill] sm:$0xff] }
 0x313   :  { %v2104_v10 = vsel %vm2071_vm3, %v2021_v0, 0.0  ;;  %v2937_v49 = vrot.slane %v2936_v12, 4  ;;  %v2518_v3 = vsel %vm2496_vm4, %v2440_v4, 0.0  ;;  %v2872_v39 = vmul.f32 %v5306_v55, %v6675_v15  ;;  %v6678_v55 = vld [vmem:[#allocation15_spill] sm:$0xff]  ;;  %v6679_v4 = vld [vmem:[#allocation16_spill] sm:$0xff] }
 0x314   :  { %v5680_v52 = vpop.permute.xlu1 %2723  ;;  %v5690_v1 = vpop.permute.xlu0 %2713  ;;  %v2954_v63 = vsel %vm2921_vm2, %v2871_v14, 0.0  ;;  %v2437_v60 = vmul.f32 %v6676_v21, %v6646_v22  ;;  %v2022_v18 = vmul.f32 %v6677_v53, %v6675_v15  ;;  %v2519_v23 = vsel %vm2496_vm4, %v2441_v2, 0.0 }
 0x315   :  { %v2955_v36 = vadd.f32 %v2954_v63, %v2953_v5  ;;  %v2105_v30 = vadd.f32 %v2104_v10, %v2103_v33  ;;  %v2521_v13 = vsel %vm2496_vm4, %v2442_v24, 0.0  ;;  %v2024_v0 = vmul.f32 %v5323_v35, %v6678_v55  ;;  %v6681_v33 = vld [vmem:[#allocation17_spill] sm:$0xff]  ;;  %v6682_v24 = vld [vmem:[#allocation94_spill] sm:$0xff] }
 0x316   :  { %1921 = vrot.lane.b32.xlu1 %v5612_v16, %s3779_s3  ;;  %1919 = vrot.lane.b32.xlu0 %v5622_v9, %s3779_s3  ;;  %v2023_v46 = vmul.f32 %v5327_v41, %v6679_v4  ;;  %v2087_v22 = vrot.slane %v2086_v32, 4  ;;  %v2505_v58 = vadd.f32 %v2504_v11, %v2503_v25  ;;  %v2438_v29 = vmul.f32 %v6680_v19, %v6657_v28 }
 0x317   :  { %v2520_v2 = vadd.f32 %v2519_v23, %v2518_v3  ;;  %v2938_v5 = vadd.f32 %v2937_v49, %v2936_v12  ;;  %v2443_v43 = vmul.f32 %v5188_v26, %v6649_v34  ;;  %v2956_v35 = vsel %vm2921_vm2, %v2872_v39, 0.0  ;;  %v6683_v49 = vld [vmem:[#allocation89_spill] sm:$0xff] }
 0x318   :  { %v5707_v51 = vpop.permute.xlu1 %1881  ;;  %v5714_v14 = vpop.permute.xlu0 %2719  ;;  %v2025_v41 = vmul.f32 %v6682_v24, %v6681_v33  ;;  %v2506_v25 = vsel %vm2496_vm4, %v2437_v60, 0.0  ;;  %v2106_v28 = vsel %vm2071_vm3, %v2022_v18, 0.0  ;;  %v2957_v10 = vadd.f32 %v2956_v35, %v2955_v36  ;;  %v6686_v35 = vld [vmem:[#allocation93_spill] sm:$0xff] }
 0x319   :  { %v2522_v11 = vadd.f32 %v2521_v13, %v2520_v2  ;;  %v2107_v12 = vadd.f32 %v2106_v28, %v2105_v30  ;;  %v2444_v26 = vmul.f32 %v6683_v49, %v6659_v8  ;;  %v2115_v34 = vsel %vm2071_vm3, %v2024_v0, 0.0  ;;  %v6685_v2 = vld [vmem:[#allocation18_spill] sm:$0xff]  ;;  %v6688_v28 = vld [vmem:[#allocation92_spill] sm:$0xff]  ;;  %v6689_v49 = vld [vmem:[#allocation87_spill] sm:$0xff] }
 0x31a   :  { %1925 = vrot.lane.b32.xlu1 %v5644_v17, %s3779_s3  ;;  %1923 = vrot.lane.b32.xlu0 %v5684_v7, %s3779_s3  ;;  %v2114_v39 = vsel %vm2071_vm3, %v2023_v46, 0.0  ;;  %v2507_v21 = vadd.f32 %v2506_v25, %v2505_v58  ;;  %v2508_v60 = vsel %vm2496_vm4, %v2438_v29, 0.0  ;;  %v2939_v53 = vrot.slane %v2938_v5, 2  ;;  %v6684_v46 = vld [vmem:[#allocation71_spill] sm:$0xff] }
 0x31b   :  { %v2523_v18 = vsel %vm2496_vm4, %v2443_v43, 0.0  ;;  %v2117_v23 = vsel %vm2071_vm3, %v2025_v41, 0.0  ;;  %v2088_v8 = vadd.f32 %v2087_v22, %v2086_v32  ;;  %v2958_v30 = vrot.slane %v2957_v10, 4  ;;  %v6687_v32 = vld [vmem:[#allocation91_spill] sm:$0xff] }
 0x31c   :  { %v5729_v3 = vpop.permute.xlu1 %1885  ;;  %v5735_v63 = vpop.permute.xlu0 %2721  ;;  %v2524_v36 = vadd.f32 %v2523_v18, %v2522_v11  ;;  %v2116_v13 = vadd.f32 %v2115_v34, %v2114_v39  ;;  %v2439_v58 = vmul.f32 %v6684_v46, %v6662_v38  ;;  %v2108_v19 = vrot.slane %v2107_v12, 4  ;;  %v6690_v34 = vld [vmem:[#allocation19_spill] sm:$0xff] }
 0x31d   :  { %v2525_v29 = vsel %vm2496_vm4, %v2444_v26, 0.0  ;;  %v2026_v43 = vmul.f32 %v6686_v35, %v6685_v2  ;;  %v2509_v41 = vadd.f32 %v2508_v60, %v2507_v21  ;;  %v5757_v22 = vmul.f32 %v5624_v54, %v6687_v32 }
 0x31e   :  { %2338 = vrot.lane.b32.xlu1 %v5536_v48, %s3780_s23  ;;  %2336 = vrot.lane.b32.xlu0 %v5545_v57, %s3780_s23  ;;  %v2118_v25 = vadd.f32 %v2117_v23, %v2116_v13  ;;  %v5761_v38 = vmul.f32 %v5624_v54, %v6688_v28  ;;  %v2940_v11 = vadd.f32 %v2939_v53, %v2938_v5  ;;  %v2089_v60 = vrot.slane %v2088_v8, 2 }
 0x31f   :  { %v2445_v26 = vmul.f32 %v6689_v49, %v6667_v6  ;;  %v2027_v39 = vmul.f32 %v5364_v42, %v6690_v34  ;;  %v5771_v21 = vmul.f32 %v5624_v54, %v5346_v56  ;;  %v2526_v18 = vadd.f32 %v2525_v29, %v2524_v36  ;;  %v6691_v42 = vld [vmem:[#allocation90_spill] sm:$0xff] }
 0x320   :  { %v5744_v0 = vpop.permute.xlu1 %1889  ;;  %v5751_v24 = vpop.permute.xlu0 %2725  ;;  %v2959_v23 = vadd.f32 %v2958_v30, %v2957_v10  ;;  %v5777_v5 = vmul.f32 %v5624_v54, %v5360_v37  ;;  %v2510_v6 = vsel %vm2496_vm4, %v2439_v58, 0.0  ;;  %v2109_v53 = vadd.f32 %v2108_v19, %v2107_v12  ;;  %v6693_v30 = vld [vmem:[#allocation88_spill] sm:$0xff] }
 0x321   :  { %v2446_v46 = vmul.f32 %v6691_v42, %v6673_v62  ;;  %v2119_v35 = vsel %vm2071_vm3, %v2026_v43, 0.0  ;;  %v5785_v56 = vadd.f32 %v2510_v6, %v2509_v41  ;;  %v5791_v37 = vmul.f32 %v5624_v54, %v5374_v20  ;;  %v6694_v20 = vld [vmem:[#allocation101_spill] sm:$0xff]  ;;  %v6698_v6 = vld [vmem:[#allocation95_spill] sm:$0xff] }
 0x322   :  { %2342 = vrot.lane.b32.xlu1 %v5564_v27, %s3780_s23  ;;  %2340 = vrot.lane.b32.xlu0 %v5579_v50, %s3780_s23  ;;  %v2120_v36 = vadd.f32 %v2119_v35, %v2118_v25  ;;  %v5795_v10 = vmul.f32 %v5624_v54, %v5382_v40  ;;  %v2941_v12 = vrot.slane %v2940_v11, 1  ;;  %v2527_v62 = vsel %vm2496_vm4, %v2445_v26, 0.0  ;;  %v6695_v40 = vld [vmem:[#allocation104_spill] sm:$0xff] }
 0x323   :  { %6692 = vst [vmem:[#allocation3_spill] sm:$0xff] %v5785_v56  ;;  %v2447_v58 = vmul.f32 %v6693_v30, %v6675_v15  ;;  %v2121_v19 = vsel %vm2071_vm3, %v2027_v39, 0.0  ;;  %v2528_v29 = vadd.f32 %v2527_v62, %v2526_v18  ;;  %v2960_v43 = vrot.slane %v2959_v23, 2  ;;  %v6697_v39 = vld [vmem:[#allocation20_spill] sm:$0xff]  ;;  %v6699_v30 = vld [vmem:[#allocation31_spill] sm:$0xff] }
 0x324   :  { %v5773_v13 = vpop.permute.xlu1 %1893  ;;  %v5783_v32 = vpop.permute.xlu0 %2727  ;;  %v5807_v25 = vmul.f32 %v5624_v54, %v6694_v20  ;;  %v5811_v28 = vmul.f32 %v5624_v54, %v6695_v40  ;;  %v5813_v49 = vadd.f32 %v2089_v60, %v2088_v8  ;;  %v2110_v15 = vrot.slane %v2109_v53, 2  ;;  %v6701_v60 = vld [vmem:[#allocation108_spill] sm:$0xff]  ;;  %v6702_v40 = vld [vmem:[#allocation109_spill] sm:$0xff] }
 0x325   :  { %v2529_v26 = vsel %vm2496_vm4, %v2446_v46, 0.0  ;;  %v2028_v42 = vmul.f32 %v6698_v6, %v6697_v39  ;;  %v2122_v62 = vadd.f32 %v2121_v19, %v2120_v36  ;;  %v2040_v20 = vmul.f32 %v5707_v51, %v6699_v30  ;;  %v6703_v19 = vld [vmem:[#allocation21_spill] sm:$0xff]  ;;  %v6707_v56 = vld [vmem:[#allocation96_spill] sm:$0xff] }
 0x326   :  { %2346 = vrot.lane.b32.xlu1 %v5612_v16, %s3780_s23  ;;  %2344 = vrot.lane.b32.xlu0 %v5622_v9, %s3780_s23  ;;  %6696 = vst [vmem:[#allocation79_spill] sm:$0xff] %v5813_v49  ;;  %v5824_v54 = vadd.f32 %v2941_v12, %v2940_v11  ;;  %v2531_v8 = vsel %vm2496_vm4, %v2447_v58, 0.0  ;;  %v2874_v46 = vmul.f32 %v6701_v60, %v6678_v55  ;;  %v6706_v60 = vld [vmem:[#allocation22_spill] sm:$0xff] }
 0x327   :  { %v2873_v6 = vmul.f32 %v6702_v40, %v6679_v4  ;;  %v2530_v36 = vadd.f32 %v2529_v26, %v2528_v29  ;;  %v2961_v51 = vadd.f32 %v2960_v43, %v2959_v23  ;;  %v5838_v12 = vadd.f32 %v2110_v15, %v2109_v53  ;;  %v6708_v40 = vld [vmem:[#allocation111_spill] sm:$0xff]  ;;  %v6709_v43 = vld [vmem:[#allocation34_spill] sm:$0xff] }
 0x328   :  { %v5803_v41 = vpop.permute.xlu1 %2306  ;;  %v1880_v18 = vpop.permute.xlu0 %1879  ;;  %v2123_v58 = vsel %vm2071_vm3, %v2028_v42, 0.0  ;;  %v2030_v49 = vmul.f32 %v6707_v56, %v6706_v60  ;;  %v2875_v44 = vmul.f32 %v6708_v40, %v6681_v33  ;;  %v2157_v23 = vsel %vm2071_vm3, %v2040_v20, 0.0  ;;  %v6711_v56 = vld [vmem:[#allocation24_spill] sm:$0xff] }
 0x329   :  { %v2039_v31 = vmul.f32 %v1880_v18, %v6700_v45  ;;  %v6704_v18 = vld [vmem:[#allocation97_spill] sm:$0xff]  ;;  %6705 = vst [vmem:[#allocation9_spill] sm:$0xff] %v5838_v12  ;;  %v2124_v29 = vadd.f32 %v2123_v58, %v2122_v62  ;;  %v2042_v26 = vmul.f32 %v5729_v3, %v6709_v43  ;;  %v2965_v53 = vsel %vm2921_vm2, %v2874_v46, 0.0  ;;  %v6714_v12 = vld [vmem:[#allocation23_spill] sm:$0xff] }
 0x32a   :  { %2763 = vrot.lane.b32.xlu1 %v5536_v48, %s3781_s24  ;;  %2761 = vrot.lane.b32.xlu0 %v5545_v57, %s3781_s24  ;;  %v2029_v35 = vmul.f32 %v6704_v18, %v6703_v19  ;;  %v2964_v15 = vsel %vm2921_vm2, %v2873_v6, 0.0  ;;  %v2881_v42 = vmul.f32 %v5690_v1, %v6711_v56  ;;  %v5857_v62 = vadd.f32 %v2531_v8, %v2530_v36  ;;  %v6713_v46 = vld [vmem:[#allocation113_spill] sm:$0xff]  ;;  %v6715_v36 = vld [vmem:[#allocation36_spill] sm:$0xff] }
 0x32b   :  { %v2156_v48 = vsel %vm2071_vm3, %v2039_v31, 0.0  ;;  %v6710_v31 = vld [vmem:[#allocation33_spill] sm:$0xff]  ;;  %v2962_v20 = vrot.slane %v2961_v51, 1  ;;  %v2876_v6 = vmul.f32 %v6713_v46, %v6685_v2  ;;  %v2882_v1 = vmul.f32 %v5630_v47, %v6714_v12 }
 0x32c   :  { %v5836_v11 = vpop.permute.xlu1 %2310  ;;  %v1884_v57 = vpop.permute.xlu0 %1883  ;;  %v2158_v40 = vadd.f32 %v2157_v23, %v2156_v48  ;;  %6712 = vst [vmem:[#allocation52_spill] sm:$0xff] %v5857_v62  ;;  %v2125_v3 = vsel %vm2071_vm3, %v2029_v35, 0.0  ;;  %v2161_v8 = vsel %vm2071_vm3, %v2042_v26, 0.0  ;;  %v2044_v35 = vmul.f32 %v5744_v0, %v6715_v36  ;;  %v6716_v62 = vld [vmem:[#allocation35_spill] sm:$0xff]  ;;  %v6717_v26 = vld [vmem:[#allocation98_spill] sm:$0xff] }
 0x32d   :  { %v2041_v18 = vmul.f32 %v1884_v57, %v6710_v31  ;;  %v2126_v46 = vadd.f32 %v2125_v3, %v2124_v29  ;;  %v2985_v61 = vsel %vm2921_vm2, %v2881_v42, 0.0  ;;  %v6718_v29 = vld [vmem:[#allocation25_spill] sm:$0xff] }
 0x32e   :  { %2765 = vrot.lane.b32.xlu1 %v5579_v50, %s3781_s24  ;;  %2767 = vrot.lane.b32.xlu0 %v5564_v27, %s3781_s24  ;;  %v2967_v50 = vsel %vm2921_vm2, %v2875_v44, 0.0  ;;  %v2966_v27 = vadd.f32 %v2965_v53, %v2964_v15  ;;  %v2127_v44 = vsel %vm2071_vm3, %v2030_v49, 0.0  ;;  %v2963_v53 = vadd.f32 %v2962_v20, %v2961_v51  ;;  %v6719_v51 = vld [vmem:[#allocation38_spill] sm:$0xff]  ;;  %v6720_v20 = vld [vmem:[#allocation37_spill] sm:$0xff] }
 0x32f   :  { %v2159_v58 = vsel %vm2071_vm3, %v2041_v18, 0.0  ;;  %v2449_v15 = vmul.f32 %v6717_v26, %v6678_v55  ;;  %v2986_v49 = vsel %vm2921_vm2, %v2882_v1, 0.0  ;;  %v2883_v42 = vmul.f32 %v5655_v59, %v6718_v29 }
 0x330   :  { %v5861_v57 = vpop.permute.xlu1 %2314  ;;  %v2160_v48 = vadd.f32 %v2159_v58, %v2158_v40  ;;  %v1888_v23 = vpop.permute.xlu0 %1887  ;;  %v2968_v0 = vadd.f32 %v2967_v50, %v2966_v27  ;;  %v2046_v55 = vmul.f32 %v5773_v13, %v6719_v51  ;;  %v5893_v27 = vadd.f32 %v2127_v44, %v2126_v46 }
 0x331   :  { %v2043_v18 = vmul.f32 %v1888_v23, %v6716_v62  ;;  %v2987_v23 = vadd.f32 %v2986_v49, %v2985_v61  ;;  %v6723_v61 = vld [vmem:[#allocation110_spill] sm:$0xff] }
 0x332   :  { %2769 = vrot.lane.b32.xlu1 %v5622_v9, %s3781_s24  ;;  %v2162_v47 = vadd.f32 %v2161_v8, %v2160_v48  ;;  %2771 = vrot.lane.b32.xlu0 %v5612_v16, %s3781_s24  ;;  %v2969_v9 = vsel %vm2921_vm2, %v2876_v6, 0.0  ;;  %v2165_v16 = vsel %vm2071_vm3, %v2044_v35, 0.0  ;;  %v6721_v6 = vld [vmem:[#allocation99_spill] sm:$0xff]  ;;  %v6722_v8 = vld [vmem:[#allocation26_spill] sm:$0xff]  ;;  %v2877_v13 = vmul.f32 %v6723_v61, %v6690_v34 }
 0x333   :  { %v2163_v40 = vsel %vm2071_vm3, %v2043_v18, 0.0  ;;  %v2448_v1 = vmul.f32 %v6721_v6, %v6679_v4  ;;  %v2884_v59 = vmul.f32 %v5714_v14, %v6722_v8  ;;  %v2970_v35 = vadd.f32 %v2969_v9, %v2968_v0  ;;  %v6724_v4 = vld [vmem:[#allocation115_spill] sm:$0xff] }
 0x334   :  { %v5881_v58 = vpop.permute.xlu1 %2318  ;;  %v2164_v3 = vadd.f32 %v2163_v40, %v2162_v47  ;;  %v1892_v48 = vpop.permute.xlu0 %1891  ;;  %v2465_v47 = vmul.f32 %v5803_v41, %v6699_v30  ;;  %v2878_v26 = vmul.f32 %v6724_v4, %v6697_v39  ;;  %v2988_v14 = vsel %vm2921_vm2, %v2883_v42, 0.0  ;;  %v6725_v40 = vld [vmem:[#allocation27_spill] sm:$0xff] }
 0x335   :  { %v2045_v50 = vmul.f32 %v1892_v48, %v6720_v20  ;;  %v2885_v49 = vmul.f32 %v5735_v63, %v6725_v40  ;;  %v2989_v0 = vadd.f32 %v2988_v14, %v2987_v23  ;;  %v2169_v9 = vsel %vm2071_vm3, %v2046_v55, 0.0  ;;  %v6726_v23 = vld [vmem:[#allocation112_spill] sm:$0xff] }
 0x336   :  { %2348 = vrot.lane.b32.xlu1 %v5684_v7, %s3780_s23  ;;  %v2166_v18 = vadd.f32 %v2165_v16, %v2164_v3  ;;  %2350 = vrot.lane.b32.xlu0 %v5644_v17, %s3780_s23  ;;  %v2540_v16 = vsel %vm2496_vm4, %v2449_v15, 0.0  ;;  %v2990_v6 = vsel %vm2921_vm2, %v2884_v59, 0.0  ;;  %v5926_v63 = vsel %vm3098_vm5, %v2963_v53, %v5824_v54  ;;  %v6727_v54 = vld [vmem:[#allocation119_spill] sm:$0xff] }
 0x337   :  { %v2167_v44 = vsel %vm2071_vm3, %v2045_v50, 0.0  ;;  %v2539_v50 = vsel %vm2496_vm4, %v2448_v1, 0.0  ;;  %v2971_v15 = vsel %vm2921_vm2, %v2877_v13, 0.0  ;;  %v2879_v55 = vmul.f32 %v6726_v23, %v6703_v19 }
 0x338   :  { %v5906_v46 = vpop.permute.xlu1 %2729  ;;  %v2168_v3 = vadd.f32 %v2167_v44, %v2166_v18  ;;  %v2305_v48 = vpop.permute.xlu0 %2304  ;;  %v2972_v59 = vadd.f32 %v2971_v15, %v2970_v35  ;;  %v2973_v61 = vsel %vm2921_vm2, %v2878_v26, 0.0  ;;  %v2992_v44 = vsel %vm2921_vm2, %v2885_v49, 0.0  ;;  %v6728_v35 = vld [vmem:[#allocation102_spill] sm:$0xff] }
 0x339   :  { %v2464_v41 = vmul.f32 %v2305_v48, %v6700_v45  ;;  %v2031_v53 = vmul.f32 %v6727_v54, %v6711_v56  ;;  %v2991_v13 = vadd.f32 %v2990_v6, %v2989_v0  ;;  %v5944_v48 = vadd.f32 %v2540_v16, %v2539_v50  ;;  %v6729_v49 = vld [vmem:[#allocation114_spill] sm:$0xff]  ;;  %v6731_v0 = vld [vmem:[#allocation121_spill] sm:$0xff] }
 0x33a   :  { %2773 = vrot.lane.b32.xlu1 %v5684_v7, %s3781_s24  ;;  %v5920_v42 = vadd.f32 %v2169_v9, %v2168_v3  ;;  %1927 = vrot.lane.b32.xlu0 %v5757_v22, %s3779_s3  ;;  %v2582_v7 = vsel %vm2496_vm4, %v2465_v47, 0.0  ;;  %v2467_v3 = vmul.f32 %v5836_v11, %v6709_v43  ;;  %v2450_v26 = vmul.f32 %v6728_v35, %v6681_v33 }
 0x33b   :  { %v2581_v1 = vsel %vm2496_vm4, %v2464_v41, 0.0  ;;  %v2032_v9 = vmul.f32 %v6729_v49, %v6714_v12  ;;  %v6730_v41 = vld [vmem:[#allocation28_spill] sm:$0xff]  ;;  %v2975_v11 = vsel %vm2921_vm2, %v2879_v55, 0.0  ;;  %v2033_v6 = vmul.f32 %v6731_v0, %v6718_v29 }
 0x33c   :  { %v5933_v18 = vpop.permute.xlu1 %2733  ;;  %v2583_v4 = vadd.f32 %v2582_v7, %v2581_v1  ;;  %v2309_v14 = vpop.permute.xlu0 %2308  ;;  %v2886_v15 = vmul.f32 %v5680_v52, %v6730_v41  ;;  %v2993_v23 = vadd.f32 %v2992_v44, %v2991_v13  ;;  %v2974_v33 = vadd.f32 %v2973_v61, %v2972_v59  ;;  %v6732_v7 = vld [vmem:[#allocation117_spill] sm:$0xff] }
 0x33d   :  { %v2466_v47 = vmul.f32 %v2309_v14, %v6710_v31  ;;  %v2880_v1 = vmul.f32 %v6732_v7, %v6706_v60  ;;  %v6733_v14 = vld [vmem:[#allocation29_spill] sm:$0xff]  ;;  %v2135_v49 = vsel %vm2071_vm3, %v2031_v53, 0.0  ;;  %v2586_v55 = vsel %vm2496_vm4, %v2467_v3, 0.0  ;;  %v6735_v53 = vld [vmem:[#allocation116_spill] sm:$0xff] }
 0x33e   :  { %1929 = vrot.lane.b32.xlu1 %v5761_v38, %s3779_s3  ;;  %1931 = vrot.lane.b32.xlu0 %v5771_v21, %s3779_s3  ;;  %v2887_v52 = vmul.f32 %v5751_v24, %v6733_v14  ;;  %v2469_v44 = vmul.f32 %v5861_v57, %v6715_v36  ;;  %v2136_v59 = vsel %vm2071_vm3, %v2032_v9, 0.0  ;;  %v2994_v61 = vsel %vm2921_vm2, %v2886_v15, 0.0 }
 0x33f   :  { %v2584_v16 = vsel %vm2496_vm4, %v2466_v47, 0.0  ;;  %v6734_v47 = vld [vmem:[#allocation30_spill] sm:$0xff]  ;;  %v2034_v3 = vmul.f32 %v6735_v53, %v6722_v8  ;;  %v2138_v57 = vsel %vm2071_vm3, %v2033_v6, 0.0  ;;  %v2995_v0 = vadd.f32 %v2994_v61, %v2993_v23  ;;  %v6736_v23 = vld [vmem:[#allocation100_spill] sm:$0xff] }
 0x340   :  { %v5958_v50 = vpop.permute.xlu1 %2737  ;;  %v2585_v54 = vadd.f32 %v2584_v16, %v2583_v4  ;;  %v2313_v35 = vpop.permute.xlu0 %2312  ;;  %v2888_v24 = vmul.f32 %v5783_v32, %v6734_v47  ;;  %v2976_v9 = vadd.f32 %v2975_v11, %v2974_v33  ;;  %v2996_v15 = vsel %vm2921_vm2, %v2887_v52, 0.0 }
 0x341   :  { %v2468_v13 = vmul.f32 %v2313_v35, %v6716_v62  ;;  %v2137_v35 = vadd.f32 %v2136_v59, %v2135_v49  ;;  %v2471_v53 = vmul.f32 %v5881_v58, %v6719_v51  ;;  %v2451_v11 = vmul.f32 %v6736_v23, %v6685_v2 }
 0x342   :  { %1933 = vrot.lane.b32.xlu1 %v5777_v5, %s3779_s3  ;;  %v2587_v4 = vadd.f32 %v2586_v55, %v2585_v54  ;;  %1935 = vrot.lane.b32.xlu0 %v5791_v37, %s3779_s3  ;;  %v2977_v54 = vsel %vm2921_vm2, %v2880_v1, 0.0  ;;  %v2590_v55 = vsel %vm2496_vm4, %v2469_v44, 0.0  ;;  %v2998_v52 = vsel %vm2921_vm2, %v2888_v24, 0.0  ;;  %v6737_v1 = vld [vmem:[#allocation8_spill] sm:$0xff] }
 0x343   :  { %v2588_v16 = vsel %vm2496_vm4, %v2468_v13, 0.0  ;;  %v2139_v33 = vadd.f32 %v2138_v57, %v2137_v35  ;;  %v2035_v44 = vmul.f32 %v6737_v1, %v6725_v40  ;;  %v2997_v13 = vadd.f32 %v2996_v15, %v2995_v0 }
 0x344   :  { %v5981_v7 = vpop.permute.xlu1 %2741  ;;  %v2589_v17 = vadd.f32 %v2588_v16, %v2587_v4  ;;  %v2317_v32 = vpop.permute.xlu0 %2316  ;;  %v2889_v58 = vmul.f32 %v5906_v46, %v6700_v45  ;;  %v2542_v2 = vsel %vm2496_vm4, %v2450_v26, 0.0  ;;  %v2140_v4 = vsel %vm2071_vm3, %v2034_v3, 0.0 }
 0x345   :  { %v2470_v6 = vmul.f32 %v2317_v32, %v6720_v20  ;;  %v2978_v24 = vadd.f32 %v2977_v54, %v2976_v9  ;;  %v2999_v16 = vadd.f32 %v2998_v52, %v2997_v13  ;;  %v2594_v35 = vsel %vm2496_vm4, %v2471_v53, 0.0 }
 0x346   :  { %1937 = vrot.lane.b32.xlu1 %v5795_v10, %s3779_s3  ;;  %v2591_v49 = vadd.f32 %v2590_v55, %v2589_v17  ;;  %1939 = vrot.lane.b32.xlu0 %v5807_v25, %s3779_s3  ;;  %v2891_v0 = vmul.f32 %v5933_v18, %v6710_v31  ;;  %v2129_v45 = vrot.slane %v5893_v27, 4  ;;  %v2544_v46 = vsel %vm2496_vm4, %v2451_v11, 0.0  ;;  %v6738_v55 = vld [vmem:[#allocation118_spill] sm:$0xff] }
 0x347   :  { %v2592_v59 = vsel %vm2496_vm4, %v2470_v6, 0.0  ;;  %v2141_v26 = vadd.f32 %v2140_v4, %v2139_v33  ;;  %v2543_v9 = vadd.f32 %v2542_v2, %v5944_v48  ;;  %v2142_v32 = vsel %vm2071_vm3, %v2035_v44, 0.0  ;;  %v6739_v6 = vld [vmem:[#allocation50_spill] sm:$0xff]  ;;  %v6740_v44 = vld [vmem:[#allocation103_spill] sm:$0xff] }
 0x348   :  { %v6001_v61 = vpop.permute.xlu1 %1897  ;;  %v2593_v17 = vadd.f32 %v2592_v59, %v2591_v49  ;;  %v2732_v57 = vpop.permute.xlu0 %2731  ;;  %v3006_v31 = vsel %vm2921_vm2, %v2889_v58, 0.0  ;;  %v2979_v54 = vrot.slane %v2978_v24, 4  ;;  %v2036_v53 = vmul.f32 %v6738_v55, %v6730_v41  ;;  %v6741_v58 = vld [vmem:[#allocation105_spill] sm:$0xff]  ;;  %v6742_v4 = vld [vmem:[#allocation122_spill] sm:$0xff] }
 0x349   :  { %v2890_v15 = vmul.f32 %v2732_v57, %v6699_v30  ;;  %v2456_v23 = vmul.f32 %v6739_v6, %v6711_v56  ;;  %v3000_v52 = vrot.slane %v2999_v16, 4  ;;  %v3009_v48 = vsel %vm2921_vm2, %v2891_v0, 0.0 }
 0x34a   :  { %1941 = vrot.lane.b32.xlu1 %v5811_v28, %s3779_s3  ;;  %v6013_v3 = vadd.f32 %v2594_v35, %v2593_v17  ;;  %2352 = vrot.lane.b32.xlu0 %v5757_v22, %s3780_s23  ;;  %v2893_v49 = vmul.f32 %v5958_v50, %v6716_v62  ;;  %v2453_v13 = vmul.f32 %v6740_v44, %v6697_v39  ;;  %v6743_v62 = vld [vmem:[#allocation2_spill] sm:$0xff] }
 0x34b   :  { %v3007_v30 = vsel %vm2921_vm2, %v2890_v15, 0.0  ;;  %v2452_v59 = vmul.f32 %v6741_v58, %v6690_v34  ;;  %v2143_v56 = vadd.f32 %v2142_v32, %v2141_v26  ;;  %v2457_v17 = vmul.f32 %v6742_v4, %v6714_v12  ;;  %v6744_v50 = vld [vmem:[#allocation78_spill] sm:$0xff] }
 0x34c   :  { %v6021_v18 = vpop.permute.xlu1 %1901  ;;  %v3008_v11 = vadd.f32 %v3007_v30, %v3006_v31  ;;  %v2736_v33 = vpop.permute.xlu0 %2735  ;;  %v2458_v57 = vmul.f32 %v6744_v50, %v6718_v29  ;;  %v2980_v0 = vadd.f32 %v2979_v54, %v2978_v24  ;;  %v2144_v34 = vsel %vm2071_vm3, %v2036_v53, 0.0 }
 0x34d   :  { %v2892_v1 = vmul.f32 %v2736_v33, %v6709_v43  ;;  %v2037_v43 = vmul.f32 %v6743_v62, %v6733_v14  ;;  %v2560_v15 = vsel %vm2496_vm4, %v2456_v23, 0.0  ;;  %v3001_v32 = vadd.f32 %v3000_v52, %v2999_v16  ;;  %v6746_v33 = vld [vmem:[#allocation7_spill] sm:$0xff] }
 0x34e   :  { %2354 = vrot.lane.b32.xlu1 %v5761_v38, %s3780_s23  ;;  %v3010_v2 = vadd.f32 %v3009_v48, %v3008_v11  ;;  %2777 = vrot.lane.b32.xlu0 %v5757_v22, %s3781_s24  ;;  %v3013_v12 = vsel %vm2921_vm2, %v2893_v49, 0.0  ;;  %v2895_v31 = vmul.f32 %v5981_v7, %v6720_v20  ;;  %v2545_v29 = vadd.f32 %v2544_v46, %v2543_v9  ;;  %v6749_v62 = vld [vmem:[#allocation39_spill] sm:$0xff] }
 0x34f   :  { %v3011_v35 = vsel %vm2921_vm2, %v2892_v1, 0.0  ;;  %v2546_v24 = vsel %vm2496_vm4, %v2452_v59, 0.0  ;;  %v2145_v54 = vadd.f32 %v2144_v34, %v2143_v56  ;;  %v2561_v16 = vsel %vm2496_vm4, %v2457_v17, 0.0 }
 0x350   :  { %v6046_v39 = vpop.permute.xlu1 %1905  ;;  %v3012_v26 = vadd.f32 %v3011_v35, %v3010_v2  ;;  %v2740_v22 = vpop.permute.xlu0 %2739  ;;  %v2146_v53 = vsel %vm2071_vm3, %v2037_v43, 0.0  ;;  %v2563_v6 = vsel %vm2496_vm4, %v2458_v57, 0.0  ;;  %v2981_v7 = vrot.slane %v2980_v0, 2  ;;  %v6747_v2 = vld [vmem:[#allocation107_spill] sm:$0xff] }
 0x351   :  { %v2894_v30 = vmul.f32 %v2740_v22, %v6715_v36  ;;  %v2562_v9 = vadd.f32 %v2561_v16, %v2560_v15  ;;  %v2459_v52 = vmul.f32 %v6746_v33, %v6722_v8  ;;  %v3002_v48 = vrot.slane %v3001_v32, 2  ;;  %v6748_v8 = vld [vmem:[#allocation10_spill] sm:$0xff] }
 0x352   :  { %2779 = vrot.lane.b32.xlu1 %v5761_v38, %s3781_s24  ;;  %v3014_v55 = vadd.f32 %v3013_v12, %v3012_v26  ;;  %2356 = vrot.lane.b32.xlu0 %v5771_v21, %s3780_s23  ;;  %v6745_v38 = vld [vmem:[#allocation120_spill] sm:$0xff]  ;;  %v3017_v49 = vsel %vm2921_vm2, %v2895_v31, 0.0  ;;  %v2547_v44 = vadd.f32 %v2546_v24, %v2545_v29  ;;  %v2147_v58 = vadd.f32 %v2146_v53, %v2145_v54 }
 0x353   :  { %v3015_v20 = vsel %vm2921_vm2, %v2894_v30, 0.0  ;;  %v2038_v46 = vmul.f32 %v6745_v38, %v6734_v47  ;;  %v2564_v59 = vadd.f32 %v2563_v6, %v2562_v9  ;;  %v2454_v4 = vmul.f32 %v6747_v2, %v6703_v19 }
 0x354   :  { %v6063_v36 = vpop.permute.xlu1 %1909  ;;  %v3016_v23 = vadd.f32 %v3015_v20, %v3014_v55  ;;  %v2744_v11 = vpop.permute.xlu0 %2743  ;;  %v2460_v17 = vmul.f32 %v6748_v8, %v6725_v40  ;;  %v2048_v43 = vmul.f32 %v6001_v61, %v6749_v62  ;;  %v6087_v57 = vadd.f32 %v2129_v45, %v5893_v27  ;;  %v6750_v61 = vld [vmem:[#allocation40_spill] sm:$0xff] }
 0x355   :  { %v2896_v1 = vmul.f32 %v2744_v11, %v6719_v51  ;;  %v2982_v35 = vadd.f32 %v2981_v7, %v2980_v0  ;;  %v2148_v15 = vsel %vm2071_vm3, %v2038_v46, 0.0  ;;  %v2565_v40 = vsel %vm2496_vm4, %v2459_v52, 0.0  ;;  %v6752_v7 = vld [vmem:[#allocation42_spill] sm:$0xff]  ;;  %v6753_v46 = vld [vmem:[#allocation41_spill] sm:$0xff] }
 0x356   :  { %2358 = vrot.lane.b32.xlu1 %v5777_v5, %s3780_s23  ;;  %v3018_v56 = vadd.f32 %v3017_v49, %v3016_v23  ;;  %2781 = vrot.lane.b32.xlu0 %v5771_v21, %s3781_s24  ;;  %v2548_v21 = vsel %vm2496_vm4, %v2453_v13, 0.0  ;;  %v3003_v26 = vadd.f32 %v3002_v48, %v3001_v32  ;;  %v2149_v31 = vadd.f32 %v2148_v15, %v2147_v58  ;;  %v6754_v23 = vld [vmem:[#allocation106_spill] sm:$0xff]  ;;  %v6755_v49 = vld [vmem:[#allocation53_spill] sm:$0xff] }
 0x357   :  { %v3019_v51 = vsel %vm2921_vm2, %v2896_v1, 0.0  ;;  %v2549_v12 = vadd.f32 %v2548_v21, %v2547_v44  ;;  %v2566_v30 = vadd.f32 %v2565_v40, %v2564_v59  ;;  %v2550_v45 = vsel %vm2496_vm4, %v2454_v4, 0.0 }
 0x358   :  { %v6082_v50 = vpop.permute.xlu1 %2322  ;;  %v3020_v34 = vadd.f32 %v3019_v51, %v3018_v56  ;;  %v1896_v19 = vpop.permute.xlu0 %1895  ;;  %v2567_v13 = vsel %vm2496_vm4, %v2460_v17, 0.0  ;;  %v2178_v0 = vsel %vm2071_vm3, %v2048_v43, 0.0  ;;  %v2983_v24 = vrot.slane %v2982_v35, 1  ;;  %v6757_v51 = vld [vmem:[#allocation43_spill] sm:$0xff] }
 0x359   :  { %v2047_v22 = vmul.f32 %v1896_v19, %v6750_v61  ;;  %v2131_v6 = vrot.slane %v6087_v57, 2  ;;  %v3004_v20 = vrot.slane %v3003_v26, 1  ;;  %v2050_v38 = vmul.f32 %v6021_v18, %v6752_v7 }
 0x35a   :  { %2783 = vrot.lane.b32.xlu1 %v5777_v5, %s3781_s24  ;;  %v3021_v27 = vrot.slane %v3020_v34, 4  ;;  %2360 = vrot.lane.b32.xlu0 %v5791_v37, %s3780_s23  ;;  %v6751_v5 = vld [vmem:[#allocation75_spill] sm:$0xff]  ;;  %v2455_v11 = vmul.f32 %v6754_v23, %v6706_v60  ;;  %v2150_v33 = vrot.slane %v2149_v31, 4  ;;  %v2551_v48 = vadd.f32 %v2550_v45, %v2549_v12 }
 0x35b   :  { %v2177_v32 = vsel %vm2071_vm3, %v2047_v22, 0.0  ;;  %v2461_v54 = vmul.f32 %v6751_v5, %v6730_v41  ;;  %v2568_v41 = vadd.f32 %v2567_v13, %v2566_v30  ;;  %v2462_v1 = vmul.f32 %v6755_v49, %v6733_v14  ;;  %v6759_v13 = vld [vmem:[#allocation46_spill] sm:$0xff] }
 0x35c   :  { %v6101_v29 = vpop.permute.xlu1 %2326  ;;  %v3022_v55 = vadd.f32 %v3021_v27, %v3020_v34  ;;  %v2179_v16 = vadd.f32 %v2178_v0, %v2177_v32  ;;  %v1900_v53 = vpop.permute.xlu0 %1899  ;;  %v2171_v18 = vrot.slane %v5920_v42, 4  ;;  %v2984_v59 = vadd.f32 %v2983_v24, %v2982_v35 }
 0x35d   :  { %v2049_v9 = vmul.f32 %v1900_v53, %v6753_v46  ;;  %v2569_v56 = vsel %vm2496_vm4, %v2461_v54, 0.0  ;;  %v3005_v8 = vadd.f32 %v3004_v20, %v3003_v26  ;;  %v2182_v17 = vsel %vm2071_vm3, %v2050_v38, 0.0  ;;  %v6761_v38 = vld [vmem:[#allocation79_spill] sm:$0xff] }
 0x35e   :  { %2362 = vrot.lane.b32.xlu1 %v5795_v10, %s3780_s23  ;;  %v3023_v52 = vrot.slane %v3022_v55, 2  ;;  %2785 = vrot.lane.b32.xlu0 %v5791_v37, %s3781_s24  ;;  %v6756_v37 = vld [vmem:[#allocation44_spill] sm:$0xff]  ;;  %v2151_v21 = vadd.f32 %v2150_v33, %v2149_v31  ;;  %v2570_v34 = vadd.f32 %v2569_v56, %v2568_v41  ;;  %v2571_v15 = vsel %vm2496_vm4, %v2462_v1, 0.0 }
 0x35f   :  { %v2180_v44 = vsel %vm2071_vm3, %v2049_v9, 0.0  ;;  %v2052_v43 = vmul.f32 %v6046_v39, %v6756_v37  ;;  %v2172_v40 = vadd.f32 %v2171_v18, %v5920_v42  ;;  %v6758_v39 = vld [vmem:[#allocation4_spill] sm:$0xff]  ;;  %v3142_v45 = vsel %vm3100_vm6, %v2984_v59, %v5926_v63  ;;  %v6760_v42 = vld [vmem:[#allocation45_spill] sm:$0xff] }
 0x360   :  { %v6119_v58 = vpop.permute.xlu1 %2330  ;;  %v3024_v60 = vadd.f32 %v3023_v52, %v3022_v55  ;;  %v2181_v2 = vadd.f32 %v2180_v44, %v2179_v16  ;;  %v1904_v4 = vpop.permute.xlu0 %1903  ;;  %v2463_v12 = vmul.f32 %v6758_v39, %v6734_v47  ;;  %v2054_v0 = vmul.f32 %v6063_v36, %v6759_v13  ;;  %v6762_v52 = vld [vmem:[#allocation9_spill] sm:$0xff]  ;;  %v6765_v56 = vld [vmem:[#allocation84_spill] sm:$0xff] }
 0x361   :  { %v2051_v14 = vmul.f32 %v1904_v4, %v6757_v51  ;;  %v3143_v24 = vsel %vm3102_vm7, %v3005_v8, %v3142_v45  ;;  %v2152_v5 = vrot.slane %v2151_v21, 2  ;;  %v2572_v47 = vadd.f32 %v2571_v15, %v2570_v34 }
 0x362   :  { %2364 = vrot.lane.b32.xlu1 %v5807_v25, %s3780_s23  ;;  %v3025_v19 = vrot.slane %v3024_v60, 1  ;;  %v2183_v35 = vadd.f32 %v2182_v17, %v2181_v2  ;;  %2787 = vrot.lane.b32.xlu0 %v5795_v10, %s3781_s24  ;;  %v2186_v10 = vsel %vm2071_vm3, %v2052_v43, 0.0  ;;  %v2552_v55 = vsel %vm2496_vm4, %v2455_v11, 0.0 }
 0x363   :  { %v2184_v26 = vsel %vm2071_vm3, %v2051_v14, 0.0  ;;  %v2173_v16 = vrot.slane %v2172_v40, 2  ;;  %v2473_v36 = vmul.f32 %v6082_v50, %v6749_v62  ;;  %v2091_v9 = vrot.slane %v6761_v38, 1  ;;  %v6763_v50 = vld [vmem:[#allocation3_spill] sm:$0xff] }
 0x364   :  { %v6133_v22 = vpop.permute.xlu1 %2334  ;;  %v3026_v30 = vadd.f32 %v3025_v19, %v3024_v60  ;;  %v2185_v31 = vadd.f32 %v2184_v26, %v2183_v35  ;;  %v1908_v27 = vpop.permute.xlu0 %1907  ;;  %v2132_v23 = vadd.f32 %v2131_v6, %v6087_v57  ;;  %v2553_v33 = vadd.f32 %v2552_v55, %v2551_v48  ;;  %v6766_v60 = vld [vmem:[#allocation52_spill] sm:$0xff] }
 0x365   :  { %v2053_v32 = vmul.f32 %v1908_v27, %v6760_v42  ;;  %v2112_v49 = vrot.slane %v6762_v52, 1  ;;  %v2573_v1 = vsel %vm2496_vm4, %v2463_v12, 0.0  ;;  %v2190_v11 = vsel %vm2071_vm3, %v2054_v0, 0.0 }
 0x366   :  { %2366 = vrot.lane.b32.xlu1 %v5811_v28, %s3780_s23  ;;  %v2187_v54 = vadd.f32 %v2186_v10, %v2185_v31  ;;  %2789 = vrot.lane.b32.xlu0 %v5807_v25, %s3781_s24  ;;  %v6149_v63 = vsel %vm3104_vm8, %v3026_v30, %v3143_v24  ;;  %v6764_v44 = vrot.slane %v6763_v50, 4  ;;  %v2153_v57 = vadd.f32 %v2152_v5, %v2151_v21 }
 0x367   :  { %v2188_v53 = vsel %vm2071_vm3, %v2053_v32, 0.0  ;;  %v2574_v6 = vadd.f32 %v2573_v1, %v2572_v47  ;;  %v2533_v2 = vrot.slane %v6766_v60, 4  ;;  %v2174_v4 = vadd.f32 %v2173_v16, %v2172_v40 }
 0x368   :  { %v6155_v20 = vpop.permute.xlu1 %2747  ;;  %v2189_v41 = vadd.f32 %v2188_v53, %v2187_v54  ;;  %v2321_v25 = vpop.permute.xlu0 %2320  ;;  %v6168_v59 = vadd.f32 %v6764_v44, %v6763_v50  ;;  %v2603_v8 = vsel %vm2496_vm4, %v2473_v36, 0.0  ;;  %v2554_v14 = vrot.slane %v2553_v33, 4 }
 0x369   :  { %v2472_v18 = vmul.f32 %v2321_v25, %v6750_v61  ;;  %v2092_v21 = vadd.f32 %v2091_v9, %v6761_v38  ;;  %v2113_v15 = vadd.f32 %v2112_v49, %v6762_v52  ;;  %v2475_v26 = vmul.f32 %v6101_v29, %v6752_v7 }
 0x36a   :  { %2791 = vrot.lane.b32.xlu1 %v5811_v28, %s3781_s24  ;;  %v2191_v48 = vadd.f32 %v2190_v11, %v2189_v41  ;;  %2775 = vrot.lane.b32.xlu0 %v6765_v56, %s3781_s24  ;;  %v2133_v28 = vrot.slane %v2132_v23, 1  ;;  %v2514_v40 = vrot.slane %v6168_v59, 2  ;;  %v2154_v12 = vrot.slane %v2153_v57, 1 }
 0x36b   :  { %v2602_v17 = vsel %vm2496_vm4, %v2472_v18, 0.0  ;;  %v2575_v30 = vrot.slane %v2574_v6, 4  ;;  %v2534_v27 = vadd.f32 %v2533_v2, %v6766_v60  ;;  %v2175_v45 = vrot.slane %v2174_v4, 1 }
 0x36c   :  { %v2750_v43 = vpop.permute.xlu1 %2749  ;;  %v2192_v34 = vrot.slane %v2191_v48, 4  ;;  %v2604_v19 = vadd.f32 %v2603_v8, %v2602_v17  ;;  %v2325_v35 = vpop.permute.xlu0 %2324  ;;  %v2596_v10 = vrot.slane %v6013_v3, 4  ;;  %v2134_v24 = vadd.f32 %v2133_v28, %v2132_v23 }
 0x36d   :  { %v2474_v39 = vmul.f32 %v2325_v35, %v6753_v46  ;;  %v2555_v5 = vadd.f32 %v2554_v14, %v2553_v33  ;;  %v2607_v55 = vsel %vm2496_vm4, %v2475_v26, 0.0  ;;  %v2477_v16 = vmul.f32 %v6119_v58, %v6756_v37 }
 0x36e   :  { %v2193_v31 = vadd.f32 %v2192_v34, %v2191_v48  ;;  %v3099_v53 = vsel %vm3098_vm5, %v2113_v15, %v2092_v21  ;;  %v2155_v38 = vadd.f32 %v2154_v12, %v2153_v57  ;;  %v2576_v9 = vadd.f32 %v2575_v30, %v2574_v6 }
 0x36f   :  { %v2605_v0 = vsel %vm2496_vm4, %v2474_v39, 0.0  ;;  %v2535_v52 = vrot.slane %v2534_v27, 2  ;;  %v2176_v49 = vadd.f32 %v2175_v45, %v2174_v4  ;;  %v2597_v23 = vadd.f32 %v2596_v10, %v6013_v3 }
 0x370   :  { %v2752_v32 = vpop.permute.xlu1 %2751  ;;  %v2194_v47 = vrot.slane %v2193_v31, 2  ;;  %v2606_v54 = vadd.f32 %v2605_v0, %v2604_v19  ;;  %v2329_v29 = vpop.permute.xlu0 %2328  ;;  %v2556_v11 = vrot.slane %v2555_v5, 2  ;;  %v3101_v58 = vsel %vm3100_vm6, %v2134_v24, %v3099_v53 }
 0x371   :  { %v2476_v36 = vmul.f32 %v2329_v29, %v6757_v51  ;;  %v2611_v48 = vsel %vm2496_vm4, %v2477_v16, 0.0  ;;  %v2479_v57 = vmul.f32 %v6133_v22, %v6759_v13  ;;  %v2577_v56 = vrot.slane %v2576_v9, 2 }
 0x372   :  { %v2195_v41 = vadd.f32 %v2194_v47, %v2193_v31  ;;  %v2608_v25 = vadd.f32 %v2607_v55, %v2606_v54  ;;  %v3103_v2 = vsel %vm3102_vm7, %v2155_v38, %v3101_v58  ;;  %v2598_v4 = vrot.slane %v2597_v23, 2 }
 0x373   :  { %v2609_v33 = vsel %vm2496_vm4, %v2476_v36, 0.0  ;;  %v2898_v8 = vmul.f32 %v6155_v20, %v6749_v62  ;;  %v3105_v14 = vsel %vm3104_vm8, %v2176_v49, %v3103_v2  ;;  %v2536_v34 = vadd.f32 %v2535_v52, %v2534_v27 }
 0x374   :  { %v2756_v1 = vpop.permute.xlu1 %2755  ;;  %v2196_v18 = vrot.slane %v2195_v41, 1  ;;  %v2610_v50 = vadd.f32 %v2609_v33, %v2608_v25  ;;  %v2333_v44 = vpop.permute.xlu0 %2332  ;;  %v2557_v21 = vadd.f32 %v2556_v11, %v2555_v5  ;;  %v2615_v15 = vsel %vm2496_vm4, %v2479_v57, 0.0 }
 0x375   :  { %v2478_v6 = vmul.f32 %v2333_v44, %v6760_v42  ;;  %v2899_v26 = vmul.f32 %v2750_v43, %v6753_v46  ;;  %v2515_v62 = vadd.f32 %v2514_v40, %v6168_v59  ;;  %v2578_v20 = vadd.f32 %v2577_v56, %v2576_v9 }
 0x376   :  { %v2197_v60 = vadd.f32 %v2196_v18, %v2195_v41  ;;  %v2612_v3 = vadd.f32 %v2611_v48, %v2610_v50  ;;  %v2599_v30 = vadd.f32 %v2598_v4, %v2597_v23  ;;  %v3028_v31 = vsel %vm2921_vm2, %v2898_v8, 0.0 }
 0x377   :  { %v2613_v17 = vsel %vm2496_vm4, %v2478_v6, 0.0  ;;  %v2900_v27 = vmul.f32 %v2752_v32, %v6752_v7  ;;  %v2537_v0 = vrot.slane %v2536_v34, 1  ;;  %v2558_v54 = vrot.slane %v2557_v21, 1 }
 0x378   :  { %v2758_v28 = vpop.permute.xlu1 %2757  ;;  %v2614_v19 = vadd.f32 %v2613_v17, %v2612_v3  ;;  %v2746_v22 = vpop.permute.xlu0 %2745  ;;  %v6202_v35 = vsel %vm3106_vm9, %v2197_v60, %v3105_v14  ;;  %v3030_v46 = vsel %vm2921_vm2, %v2899_v26, 0.0  ;;  %v2516_v59 = vrot.slane %v2515_v62, 1 }
 0x379   :  { %v2897_v39 = vmul.f32 %v2746_v22, %v6750_v61  ;;  %v2579_v43 = vrot.slane %v2578_v20, 1  ;;  %v2600_v55 = vrot.slane %v2599_v30, 1  ;;  %v3032_v16 = vsel %vm2921_vm2, %v2900_v27, 0.0  ;;  %v6769_v27 = vld [vmem:[#allocation49_spill] sm:$0xff] }
 0x37a   :  { %v2616_v12 = vadd.f32 %v2615_v15, %v2614_v19  ;;  %v2902_v7 = vmul.f32 %v2756_v1, %v6756_v37  ;;  %v2538_v36 = vadd.f32 %v2537_v0, %v2536_v34  ;;  %v2559_v41 = vadd.f32 %v2558_v54, %v2557_v21 }
 0x37b   :  { %v3027_v45 = vsel %vm2921_vm2, %v2897_v39, 0.0  ;;  %v2903_v25 = vmul.f32 %v2758_v28, %v6760_v42  ;;  %v2580_v49 = vadd.f32 %v2579_v43, %v2578_v20  ;;  %v2601_v11 = vadd.f32 %v2600_v55, %v2599_v30  ;;  %v6767_v39 = vld [vmem:[#allocation47_spill] sm:$0xff]  ;;  %v6768_v20 = vld [vmem:[#allocation48_spill] sm:$0xff] }
 0x37c   :  { %v2760_v10 = vpop.permute.xlu1 %2759  ;;  %v2617_v24 = vrot.slane %v2616_v12, 4  ;;  %v3029_v5 = vadd.f32 %v3028_v31, %v3027_v45  ;;  %v2754_v47 = vpop.permute.xlu0 %2753  ;;  %v3036_v18 = vsel %vm2921_vm2, %v2902_v7, 0.0  ;;  %v6770_v43 = vld [vmem:[#allocation51_spill] sm:$0xff] }
 0x37d   :  { %v2901_v61 = vmul.f32 %v2754_v47, %v6757_v51  ;;  %v2517_v51 = vadd.f32 %v2516_v59, %v2515_v62  ;;  %v2904_v50 = vmul.f32 %v2760_v10, %v6759_v13  ;;  %v3038_v57 = vsel %vm2921_vm2, %v2903_v25, 0.0 }
 0x37e   :  { %v2618_v40 = vadd.f32 %v2617_v24, %v2616_v12  ;;  %v3031_v29 = vadd.f32 %v3030_v46, %v3029_v5 }
 0x37f   :  { %v3034_v52 = vsel %vm2921_vm2, %v2901_v61, 0.0  ;;  %v3123_v48 = vsel %vm3098_vm5, %v2538_v36, %v2517_v51  ;;  %v3040_v3 = vsel %vm2921_vm2, %v2904_v50, 0.0 }
 0x380   :  { %v1914_v32 = vpop.permute.xlu1 %1913  ;;  %v2619_v53 = vrot.slane %v2618_v40, 2  ;;  %v3033_v38 = vadd.f32 %v3032_v16, %v3031_v29  ;;  %v1912_v9 = vpop.permute.xlu0 %1911  ;;  %v3124_v42 = vsel %vm3100_vm6, %v2559_v41, %v3123_v48  ;;  %v6771_v16 = vld [vmem:[#allocation54_spill] sm:$0xff]  ;;  %v6772_v41 = vld [vmem:[#allocation57_spill] sm:$0xff] }
 0x381   :  { %v3125_v60 = vsel %vm3102_vm7, %v2580_v49, %v3124_v42  ;;  %v2056_v62 = vmul.f32 %v1914_v32, %v6767_v39  ;;  %v2055_v12 = vmul.f32 %v1912_v9, %v6768_v20  ;;  %v6773_v49 = vld [vmem:[#allocation62_spill] sm:$0xff] }
 0x382   :  { %v2620_v23 = vadd.f32 %v2619_v53, %v2618_v40  ;;  %v3035_v33 = vadd.f32 %v3034_v52, %v3033_v38  ;;  %v3126_v4 = vsel %vm3104_vm8, %v2601_v11, %v3125_v60 }
 0x383   :  { %v2199_v24 = vsel %vm2071_vm3, %v2056_v62, 0.0  ;;  %v2198_v5 = vsel %vm2071_vm3, %v2055_v12, 0.0 }
 0x384   :  { %v1918_v37 = vpop.permute.xlu1 %1917  ;;  %v2621_v1 = vrot.slane %v2620_v23, 1  ;;  %v3037_v44 = vadd.f32 %v3036_v18, %v3035_v33  ;;  %v1916_v58 = vpop.permute.xlu0 %1915  ;;  %v2200_v59 = vadd.f32 %v2199_v24, %v2198_v5  ;;  %v6778_v24 = vld [vmem:[#allocation67_spill] sm:$0xff] }
 0x385   :  { %v2057_v45 = vmul.f32 %v1916_v58, %v6769_v27  ;;  %v2058_v40 = vmul.f32 %v1918_v37, %v6770_v43 }
 0x386   :  { %v2622_v6 = vadd.f32 %v2621_v1, %v2620_v23  ;;  %v3039_v56 = vadd.f32 %v3038_v57, %v3037_v44  ;;  %v6774_v44 = vld [vmem:[#allocation66_spill] sm:$0xff] }
 0x387   :  { %v2201_v46 = vsel %vm2071_vm3, %v2057_v45, 0.0  ;;  %v2203_v36 = vsel %vm2071_vm3, %v2058_v40, 0.0  ;;  %v6779_v40 = vld [vmem:[#allocation70_spill] sm:$0xff] }
 0x388   :  { %v1922_v2 = vpop.permute.xlu1 %1921  ;;  %v3041_v13 = vadd.f32 %v3040_v3, %v3039_v56  ;;  %v1920_v8 = vpop.permute.xlu0 %1919  ;;  %v6226_v17 = vsel %vm3106_vm9, %v2622_v6, %v3126_v4  ;;  %v2202_v29 = vadd.f32 %v2201_v46, %v2200_v59  ;;  %v6775_v56 = vld [vmem:[#allocation59_spill] sm:$0xff] }
 0x389   :  { %v2059_v7 = vmul.f32 %v1920_v8, %v6771_v16  ;;  %v2060_v25 = vmul.f32 %v1922_v2, %v6772_v41  ;;  %v6776_v8 = vld [vmem:[#allocation58_spill] sm:$0xff] }
 0x38a   :  { %v3042_v28 = vrot.slane %v3041_v13, 4  ;;  %v2204_v53 = vadd.f32 %v2203_v36, %v2202_v29 }
 0x38b   :  { %v2205_v38 = vsel %vm2071_vm3, %v2059_v7, 0.0  ;;  %v2207_v11 = vsel %vm2071_vm3, %v2060_v25, 0.0 }
 0x38c   :  { %v1926_v14 = vpop.permute.xlu1 %1925  ;;  %v3043_v34 = vadd.f32 %v3042_v28, %v3041_v13  ;;  %v1924_v19 = vpop.permute.xlu0 %1923  ;;  %v2206_v52 = vadd.f32 %v2205_v38, %v2204_v53 }
 0x38d   :  { %v2061_v23 = vmul.f32 %v1924_v19, %v6773_v49  ;;  %v2062_v58 = vmul.f32 %v1926_v14, %v6774_v44  ;;  %v6777_v19 = vld [vmem:[#allocation63_spill] sm:$0xff] }
 0x38e   :  { %v3044_v22 = vrot.slane %v3043_v34, 2  ;;  %v2208_v18 = vadd.f32 %v2207_v11, %v2206_v52  ;;  %v6780_v11 = vld [vmem:[#allocation73_spill] sm:$0xff] }
 0x38f   :  { %v2209_v37 = vsel %vm2071_vm3, %v2061_v23, 0.0  ;;  %v2211_v6 = vsel %vm2071_vm3, %v2062_v58, 0.0 }
 0x390   :  { %v2339_v21 = vpop.permute.xlu1 %2338  ;;  %v3045_v15 = vadd.f32 %v3044_v22, %v3043_v34  ;;  %v2337_v26 = vpop.permute.xlu0 %2336  ;;  %v2210_v48 = vadd.f32 %v2209_v37, %v2208_v18 }
 0x391   :  { %v2481_v4 = vmul.f32 %v2339_v21, %v6767_v39  ;;  %v2480_v13 = vmul.f32 %v2337_v26, %v6768_v20 }
 0x392   :  { %v3046_v30 = vrot.slane %v3045_v15, 1  ;;  %v2212_v3 = vadd.f32 %v2211_v6, %v2210_v48 }
 0x393   :  { %v2623_v21 = vsel %vm2496_vm4, %v2480_v13, 0.0 }
 0x394   :  { %v6230_v31 = vpop.permute.xlu1 %2342  ;;  %v2341_v10 = vpop.permute.xlu0 %2340  ;;  %v3047_v0 = vadd.f32 %v3046_v30, %v3045_v15  ;;  %v2213_v12 = vrot.slane %v2212_v3, 4 }
 0x395   :  { %v2482_v14 = vmul.f32 %v2341_v10, %v6769_v27  ;;  %v2483_v52 = vmul.f32 %v6230_v31, %v6770_v43 }
 0x396   :  { %v6237_v47 = vsel %vm3106_vm9, %v3047_v0, %v6149_v63  ;;  %v2624_v0 = vsel %vm2496_vm4, %v2481_v4, 0.0  ;;  %v2214_v36 = vadd.f32 %v2213_v12, %v2212_v3 }
 0x397   :  { %v2626_v10 = vsel %vm2496_vm4, %v2482_v14, 0.0  ;;  %v2625_v53 = vadd.f32 %v2624_v0, %v2623_v21 }
 0x398   :  { %v6239_v54 = vpop.permute.xlu1 %2346  ;;  %v2345_v61 = vpop.permute.xlu0 %2344  ;;  %v2215_v3 = vrot.slane %v2214_v36, 2 }
 0x399   :  { %v2627_v58 = vadd.f32 %v2626_v10, %v2625_v53  ;;  %v2485_v21 = vmul.f32 %v6239_v54, %v6772_v41 }
 0x39b   :  { %v2632_v53 = vsel %vm2496_vm4, %v2485_v21, 0.0 }
 0x39c   :  { %v6243_v55 = vpop.permute.xlu1 %2763  ;;  %v6246_v32 = vpop.permute.xlu0 %2761 }
 0x39d   :  { %v2905_v54 = vmul.f32 %v6246_v32, %v6768_v20 }
 0x3a0   :  { %v6249_v63 = vpop.permute.xlu1 %2765  ;;  %v6252_v9 = vpop.permute.xlu0 %2767 }
 0x3a4   :  { %v6255_v51 = vpop.permute.xlu1 %2769  ;;  %v6258_v33 = vpop.permute.xlu0 %2771 }
 0x3a8   :  { %v2349_v50 = vpop.permute.xlu1 %2348  ;;  %v6262_v1 = vpop.permute.xlu0 %2350 }
 0x3ac   :  { %v6265_v57 = vpop.permute.xlu1 %2773  ;;  %v1928_v42 = vpop.permute.xlu0 %1927 }
 0x3ad   :  { %v2063_v60 = vmul.f32 %v1928_v42, %v6775_v56  ;;  %v6781_v42 = vld [vmem:[#allocation74_spill] sm:$0xff] }
 0x3af   :  { %v2219_v15 = vsel %vm2071_vm3, %v2063_v60, 0.0  ;;  %v2484_v60 = vmul.f32 %v2345_v61, %v6771_v16 }
 0x3b0   :  { %v1930_v2 = vpop.permute.xlu1 %1929  ;;  %v1932_v34 = vpop.permute.xlu0 %1931 }
 0x3b1   :  { %v2064_v28 = vmul.f32 %v1930_v2, %v6776_v8  ;;  %v2065_v22 = vmul.f32 %v1932_v34, %v6777_v19  ;;  %v6782_v34 = vld [vmem:[#allocation76_spill] sm:$0xff]  ;;  %v2630_v12 = vsel %vm2496_vm4, %v2484_v60, 0.0 }
 0x3b3   :  { %v2220_v62 = vsel %vm2071_vm3, %v2064_v28, 0.0  ;;  %v2222_v26 = vsel %vm2071_vm3, %v2065_v22, 0.0  ;;  %v2628_v28 = vsel %vm2496_vm4, %v2483_v52, 0.0 }
 0x3b4   :  { %v2221_v30 = vadd.f32 %v2220_v62, %v2219_v15  ;;  %v1934_v45 = vpop.permute.xlu1 %1933  ;;  %v1936_v46 = vpop.permute.xlu0 %1935  ;;  %v2629_v15 = vadd.f32 %v2628_v28, %v2627_v58 }
 0x3b5   :  { %v2066_v5 = vmul.f32 %v1934_v45, %v6778_v24  ;;  %v2067_v29 = vmul.f32 %v1936_v46, %v6779_v40  ;;  %v2216_v45 = vadd.f32 %v2215_v3, %v2214_v36 }
 0x3b6   :  { %v2223_v59 = vadd.f32 %v2222_v26, %v2221_v30  ;;  %v2486_v26 = vmul.f32 %v2349_v50, %v6773_v49  ;;  %v2631_v46 = vadd.f32 %v2630_v12, %v2629_v15  ;;  %v2487_v50 = vmul.f32 %v6262_v1, %v6774_v44 }
 0x3b7   :  { %v2224_v7 = vsel %vm2071_vm3, %v2066_v5, 0.0  ;;  %v2226_v23 = vsel %vm2071_vm3, %v2067_v29, 0.0  ;;  %v2217_v29 = vrot.slane %v2216_v45, 1  ;;  %v2908_v12 = vmul.f32 %v6252_v9, %v6770_v43 }
 0x3b8   :  { %v2225_v38 = vadd.f32 %v2224_v7, %v2223_v59  ;;  %v1938_v25 = vpop.permute.xlu1 %1937  ;;  %v1940_v37 = vpop.permute.xlu0 %1939  ;;  %v2633_v52 = vadd.f32 %v2632_v53, %v2631_v46  ;;  %v2636_v32 = vsel %vm2496_vm4, %v2487_v50, 0.0 }
 0x3b9   :  { %v2068_v18 = vmul.f32 %v1938_v25, %v6780_v11  ;;  %v2069_v6 = vmul.f32 %v1940_v37, %v6781_v42 }
 0x3ba   :  { %v2227_v48 = vadd.f32 %v2226_v23, %v2225_v38  ;;  %v2634_v38 = vsel %vm2496_vm4, %v2486_v26, 0.0  ;;  %v2906_v23 = vmul.f32 %v6243_v55, %v6767_v39  ;;  %v3048_v55 = vsel %vm2921_vm2, %v2905_v54, 0.0 }
 0x3bb   :  { %v2228_v2 = vsel %vm2071_vm3, %v2068_v18, 0.0  ;;  %v2230_v31 = vsel %vm2071_vm3, %v2069_v6, 0.0  ;;  %v2635_v18 = vadd.f32 %v2634_v38, %v2633_v52  ;;  %v2907_v6 = vmul.f32 %v6249_v63, %v6769_v27 }
 0x3bc   :  { %v2229_v4 = vadd.f32 %v2228_v2, %v2227_v48  ;;  %v1942_v13 = vpop.permute.xlu1 %1941  ;;  %v2353_v14 = vpop.permute.xlu0 %2352  ;;  %v2218_v48 = vadd.f32 %v2217_v29, %v2216_v45  ;;  %v3049_v20 = vsel %vm2921_vm2, %v2906_v23, 0.0 }
 0x3bd   :  { %v2070_v22 = vmul.f32 %v1942_v13, %v6782_v34  ;;  %v2488_v39 = vmul.f32 %v2353_v14, %v6775_v56  ;;  %v3051_v63 = vsel %vm2921_vm2, %v2907_v6, 0.0 }
 0x3be   :  { %v2231_v62 = vadd.f32 %v2230_v31, %v2229_v4  ;;  %v2637_v4 = vadd.f32 %v2636_v32, %v2635_v18  ;;  %v3109_v27 = vsel %vm3108_vm10, %v2218_v48, %v6202_v35 }
 0x3bf   :  { %v2232_v30 = vsel %vm2071_vm3, %v2070_v22, 0.0 }
 0x3c0   :  { %v2233_v61 = vadd.f32 %v2232_v30, %v2231_v62  ;;  %v2355_v0 = vpop.permute.xlu1 %2354  ;;  %v2778_v5 = vpop.permute.xlu0 %2777  ;;  %v3050_v62 = vadd.f32 %v3049_v20, %v3048_v55  ;;  %v2644_v30 = vsel %vm2496_vm4, %v2488_v39, 0.0  ;;  %v2638_v26 = vrot.slane %v2637_v4, 4 }
 0x3c1   :  { %v2489_v60 = vmul.f32 %v2355_v0, %v6776_v8  ;;  %v2911_v39 = vmul.f32 %v6265_v57, %v6773_v49 }
 0x3c2   :  { %v2234_v59 = vrot.slane %v2233_v61, 4  ;;  %v2639_v50 = vadd.f32 %v2638_v26, %v2637_v4 }
 0x3c3   :  { %v2645_v31 = vsel %vm2496_vm4, %v2489_v60, 0.0  ;;  %v3059_v49 = vsel %vm2921_vm2, %v2911_v39, 0.0 }
 0x3c4   :  { %v2235_v10 = vadd.f32 %v2234_v59, %v2233_v61  ;;  %v2780_v7 = vpop.permute.xlu1 %2779  ;;  %v2357_v25 = vpop.permute.xlu0 %2356  ;;  %v2913_v61 = vmul.f32 %v2778_v5, %v6775_v56  ;;  %v2646_v46 = vadd.f32 %v2645_v31, %v2644_v30  ;;  %v2640_v4 = vrot.slane %v2639_v50, 2 }
 0x3c5   :  { %v2490_v1 = vmul.f32 %v2357_v25, %v6777_v19  ;;  %v2914_v22 = vmul.f32 %v2780_v7, %v6776_v8  ;;  %v3052_v8 = vadd.f32 %v3051_v63, %v3050_v62 }
 0x3c6   :  { %v2236_v36 = vrot.slane %v2235_v10, 2  ;;  %v3069_v53 = vsel %vm2921_vm2, %v2913_v61, 0.0 }
 0x3c7   :  { %v2647_v35 = vsel %vm2496_vm4, %v2490_v1, 0.0  ;;  %v3070_v43 = vsel %vm2921_vm2, %v2914_v22, 0.0 }
 0x3c8   :  { %v2237_v37 = vadd.f32 %v2236_v36, %v2235_v10  ;;  %v2359_v58 = vpop.permute.xlu1 %2358  ;;  %v2782_v2 = vpop.permute.xlu0 %2781  ;;  %v2909_v10 = vmul.f32 %v6255_v51, %v6771_v16  ;;  %v2648_v7 = vadd.f32 %v2647_v35, %v2646_v46  ;;  %v3071_v23 = vadd.f32 %v3070_v43, %v3069_v53 }
 0x3c9   :  { %v2491_v14 = vmul.f32 %v2359_v58, %v6778_v24  ;;  %v2915_v0 = vmul.f32 %v2782_v2, %v6777_v19  ;;  %v3053_v19 = vsel %vm2921_vm2, %v2908_v12, 0.0  ;;  %v2641_v12 = vadd.f32 %v2640_v4, %v2639_v50 }
 0x3ca   :  { %v2238_v3 = vrot.slane %v2237_v37, 1  ;;  %v3054_v36 = vadd.f32 %v3053_v19, %v3052_v8  ;;  %v3055_v58 = vsel %vm2921_vm2, %v2909_v10, 0.0 }
 0x3cb   :  { %v2649_v9 = vsel %vm2496_vm4, %v2491_v14, 0.0  ;;  %v3072_v38 = vsel %vm2921_vm2, %v2915_v0, 0.0 }
 0x3cc   :  { %v2784_v13 = vpop.permute.xlu1 %2783  ;;  %v2239_v28 = vadd.f32 %v2238_v3, %v2237_v37  ;;  %v2361_v15 = vpop.permute.xlu0 %2360  ;;  %v3073_v48 = vadd.f32 %v3072_v38, %v3071_v23  ;;  %v3056_v1 = vadd.f32 %v3055_v58, %v3054_v36 }
 0x3cd   :  { %v2492_v21 = vmul.f32 %v2361_v15, %v6779_v40  ;;  %v2916_v29 = vmul.f32 %v2784_v13, %v6778_v24  ;;  %v2650_v24 = vadd.f32 %v2649_v9, %v2648_v7 }
 0x3ce   :  { %v3111_v45 = vsel %vm3110_vm11, %v2239_v28, %v3109_v27 }
 0x3cf   :  { %3112 = vrot.lane.b32.xlu0 %v3111_v45, %s3782_s4  ;;  %v2651_v25 = vsel %vm2496_vm4, %v2492_v21, 0.0  ;;  %v3074_v18 = vsel %vm2921_vm2, %v2916_v29, 0.0 }
 0x3d0   :  { %v2363_v59 = vpop.permute.xlu1 %2362  ;;  %v2786_v5 = vpop.permute.xlu0 %2785  ;;  %v2652_v6 = vadd.f32 %v2651_v25, %v2650_v24  ;;  %v3075_v20 = vadd.f32 %v3074_v18, %v3073_v48 }
 0x3d1   :  { %v2493_v56 = vmul.f32 %v2363_v59, %v6780_v11  ;;  %v2917_v52 = vmul.f32 %v2786_v5, %v6779_v40  ;;  %v2910_v40 = vmul.f32 %v6258_v33, %v6772_v41  ;;  %v2642_v59 = vrot.slane %v2641_v12, 1 }
 0x3d3   :  { %v2653_v37 = vsel %vm2496_vm4, %v2493_v56, 0.0  ;;  %v3076_v2 = vsel %vm2921_vm2, %v2917_v52, 0.0  ;;  %v3057_v33 = vsel %vm2921_vm2, %v2910_v40, 0.0 }
 0x3d4   :  { %v2365_v54 = vpop.permute.xlu1 %2364  ;;  %v2788_v51 = vpop.permute.xlu0 %2787  ;;  %v2654_v55 = vadd.f32 %v2653_v37, %v2652_v6  ;;  %v3077_v27 = vadd.f32 %v3076_v2, %v3075_v20  ;;  %v3058_v62 = vadd.f32 %v3057_v33, %v3056_v1 }
 0x3d5   :  { %v2494_v16 = vmul.f32 %v2365_v54, %v6781_v42  ;;  %v2918_v60 = vmul.f32 %v2788_v51, %v6780_v11 }
 0x3d6   :  { %v3060_v0 = vadd.f32 %v3059_v49, %v3058_v62 }
 0x3d7   :  { %v2655_v3 = vsel %vm2496_vm4, %v2494_v16, 0.0  ;;  %v3078_v13 = vsel %vm2921_vm2, %v2918_v60, 0.0 }
 0x3d8   :  { %v2367_v32 = vpop.permute.xlu1 %2366  ;;  %v2790_v11 = vpop.permute.xlu0 %2789  ;;  %v2656_v63 = vadd.f32 %v2655_v3, %v2654_v55  ;;  %v3079_v57 = vadd.f32 %v3078_v13, %v3077_v27 }
 0x3d9   :  { %v2495_v28 = vmul.f32 %v2367_v32, %v6782_v34  ;;  %v2919_v41 = vmul.f32 %v2790_v11, %v6781_v42 }
 0x3db   :  { %v2657_v31 = vsel %vm2496_vm4, %v2495_v28, 0.0  ;;  %v3080_v14 = vsel %vm2921_vm2, %v2919_v41, 0.0 }
 0x3dc   :  { %v2658_v22 = vadd.f32 %v2657_v31, %v2656_v63  ;;  %v2792_v15 = vpop.permute.xlu1 %2791  ;;  %v2776_v45 = vpop.permute.xlu0 %2775  ;;  %v3081_v35 = vadd.f32 %v3080_v14, %v3079_v57 }
 0x3dd   :  { %v2920_v30 = vmul.f32 %v2792_v15, %v6782_v34  ;;  %v2912_v42 = vmul.f32 %v2776_v45, %v6774_v44  ;;  %v2643_v34 = vadd.f32 %v2642_v59, %v2641_v12 }
 0x3de   :  { %v2659_v61 = vrot.slane %v2658_v22, 4 }
 0x3df   :  { %v3082_v21 = vsel %vm2921_vm2, %v2920_v30, 0.0  ;;  %v3061_v46 = vsel %vm2921_vm2, %v2912_v42, 0.0  ;;  %v3128_v36 = vsel %vm3108_vm10, %v2643_v34, %v6226_v17 }
 0x3e0   :  { %v2660_v8 = vadd.f32 %v2659_v61, %v2658_v22  ;;  %v3083_v26 = vadd.f32 %v3082_v21, %v3081_v35  ;;  %v3062_v43 = vadd.f32 %v3061_v46, %v3060_v0 }
 0x3e2   :  { %v2661_v9 = vrot.slane %v2660_v8, 2  ;;  %v3084_v29 = vrot.slane %v3083_v26, 4  ;;  %v3063_v56 = vrot.slane %v3062_v43, 4 }
 0x3e4   :  { %v2662_v5 = vadd.f32 %v2661_v9, %v2660_v8  ;;  %v3085_v19 = vadd.f32 %v3084_v29, %v3083_v26  ;;  %v3064_v10 = vadd.f32 %v3063_v56, %v3062_v43 }
 0x3e6   :  { %v2663_v7 = vrot.slane %v2662_v5, 1  ;;  %v3086_v53 = vrot.slane %v3085_v19, 2  ;;  %v3065_v38 = vrot.slane %v3064_v10, 2 }
 0x3e8   :  { %v3087_v44 = vadd.f32 %v3086_v53, %v3085_v19  ;;  %v2664_v25 = vadd.f32 %v2663_v7, %v2662_v5  ;;  %v3066_v52 = vadd.f32 %v3065_v38, %v3064_v10 }
 0x3ea   :  { %v3088_v23 = vrot.slane %v3087_v44, 1  ;;  %v3129_v24 = vsel %vm3110_vm11, %v2664_v25, %v3128_v36  ;;  %v3067_v54 = vrot.slane %v3066_v52, 1 }
 0x3eb   :  { %3130 = vrot.lane.b32.xlu1 %v3129_v24, %s3782_s4 }
 0x3ec   :  { %v3089_v50 = vadd.f32 %v3088_v23, %v3087_v44  ;;  %v3068_v18 = vadd.f32 %v3067_v54, %v3066_v52 }
 0x3ee   :  { %v3146_v37 = vsel %vm3108_vm10, %v3068_v18, %v6237_v47 }
 0x3ef   :  { %v3147_v16 = vsel %vm3110_vm11, %v3089_v50, %v3146_v37 }
 0x3f0   :  { %3148 = vrot.lane.b32.xlu0 %v3147_v16, %s3782_s4 }
 0x441   :  { %v3113_v51 = vpop.permute.xlu0 %3112 }
 0x45d   :  { %v3131_v58 = vpop.permute.xlu1 %3130 }
 0x45e   :  { %v3151_v17 = vsel %vm1142_vm1, %v3113_v51, %v3131_v58 }
 0x462   :  { %v3149_v48 = vpop.permute.xlu0 %3148 }
 0x463   :  { %v3153_v6 = vsel %vm3152_vm12, %v3151_v17, %v3149_v48 }
 0x464   :  { %v3155_v60 = vsel %vm3154_vm13, %v3153_v6, 0.0 }
 0x465   :  { %3156 = vst [vmem:[%s6379_s5] sm:$0xff] %v3155_v60 }

</bundles_post_ra>
